<compile_context>
chip_gen: v6e
topology: v6e:2x2x1
jax: 0.10.0
libtpu: 0.0.40
codegen_flags: <defaults>
</compile_context>

<pallas_src>
import math
import functools

import jax
import jax.numpy as jnp
from jax.experimental import pallas as pl
from jax.experimental.pallas import tpu as pltpu

# ----------------------------- model config ---------------------------------
D_MODEL = 128      # input_dim / d_model
D_FF = 128         # hidden_dim (dim_feedforward)
N_HEADS = 4
N_LAYERS = 2       # module constructor arg (default 6); kept small for demo
N_CLASSES = 10
C_PAD = 128        # lane-dense padded output width for the final fc
MAX_SEQ_LEN = 100
LN_EPS = 1e-5

# Demo shapes
BATCH = 2
SEQ = 8


# ----------------------------- in-kernel helpers ----------------------------
def _layernorm(x, w, b):
    mu = jnp.mean(x, axis=-1, keepdims=True)
    var = jnp.mean((x - mu) ** 2, axis=-1, keepdims=True)
    return (x - mu) * jax.lax.rsqrt(var + LN_EPS) * w + b


def _gelu_exact(x):
    # PyTorch activation='gelu' default is the exact (erf) GELU.
    return 0.5 * x * (1.0 + jax.lax.erf(x * 0.7071067811865476))


def _softmax_last(s):
    s = s - jnp.max(s, axis=-1, keepdims=True)
    p = jnp.exp(s)
    return p / jnp.sum(p, axis=-1, keepdims=True)


# ----------------------------- fused Pallas kernel --------------------------
def fused_transformer_kernel(x_ref, pe_ref,
                             w_in_ref, b_in_ref, w_out_ref, b_out_ref,
                             ln1w_ref, ln1b_ref, ln2w_ref, ln2b_ref,
                             w_f1_ref, b_f1_ref, w_f2_ref, b_f2_ref,
                             fc_w_ref, fc_b_ref,
                             o_ref, *, n_layers, n_heads):
    B, S, D = x_ref.shape
    dh = D // n_heads
    scale = 1.0 / math.sqrt(dh)

    # Positional encoding add (broadcast over batch), then fold batch into rows.
    x = x_ref[...] + pe_ref[...][None, :, :]          # (B, S, D)
    x = x.reshape(B * S, D)                           # (B*S, D)

    # Static layer loop — all weights already resident in VMEM.
    for l in range(n_layers):
        w_in = w_in_ref[l]                            # (D, 3D)  pre-transposed
        b_in = b_in_ref[l]                            # (1, 3D)
        w_out = w_out_ref[l]                          # (D, D)   pre-transposed
        b_out = b_out_ref[l]                          # (1, D)

        # ---- self-attention: single big QKV projection on the MXU ----
        qkv = jnp.dot(x, w_in, preferred_element_type=jnp.float32) + b_in
        q = qkv[:, :D]                                # (B*S, D) lane slices
        k = qkv[:, D:2 * D]
        v = qkv[:, 2 * D:]

        attn = jnp.zeros((B * S, D), jnp.float32)
        for h in range(n_heads):
            # Per-head (B, S, dh) views: sublane split only, lane dim untouched.
            qh = q[:, h * dh:(h + 1) * dh].reshape(B, S, dh)
            kh = k[:, h * dh:(h + 1) * dh].reshape(B, S, dh)
            vh = v[:, h * dh:(h + 1) * dh].reshape(B, S, dh)
            s = jnp.einsum('bqd,bkd->bqk', qh, kh,
                           preferred_element_type=jnp.float32) * scale
            p = _softmax_last(s)
            hh = jnp.einsum('bqk,bkd->bqd', p, vh,
                            preferred_element_type=jnp.float32)   # (B, S, dh)
            # Accumulate the output projection per head instead of concatenating.
            attn = attn + jnp.dot(hh.reshape(B * S, dh),
                                  w_out[h * dh:(h + 1) * dh, :],
                                  preferred_element_type=jnp.float32)
        attn = attn + b_out

        # ---- residual + LayerNorm1 (post-norm) ----
        x = _layernorm(x + attn, ln1w_ref[l], ln1b_ref[l])

        # ---- feed-forward (pre-transposed weights, no in-kernel .T) ----
        h1 = jnp.dot(x, w_f1_ref[l], preferred_element_type=jnp.float32) + b_f1_ref[l]
        h1 = _gelu_exact(h1)
        h2 = jnp.dot(h1, w_f2_ref[l], preferred_element_type=jnp.float32) + b_f2_ref[l]

        # ---- residual + LayerNorm2 ----
        x = _layernorm(x + h2, ln2w_ref[l], ln2b_ref[l])

    # ---- last-token rows + final fc (lane-dense padded output) ----
    last = x.reshape(B, S, D)[:, S - 1, :]            # (B, D)
    o_ref[...] = (jnp.dot(last, fc_w_ref[...],
                          preferred_element_type=jnp.float32) + fc_b_ref[...])


# ----------------------------- wrapper ---------------------------------------
def _vmem_spec():
    return pl.BlockSpec(memory_space=pltpu.MemorySpace.VMEM)


def transformer_intent_forward(x, params, pe):
    B, S, D = x.shape
    assert S <= MAX_SEQ_LEN, f"Sequence length {S} exceeds max {MAX_SEQ_LEN}"
    layers = params["layers"]
    L = len(layers)

    # Pre-transpose (in_features, out_features) and stack over layers ONCE in
    # the wrapper — the kernel sees transpose-free, layer-stacked weights.
    w_in = jnp.stack([l["in_w"].T for l in layers])    # (L, D, 3D)
    b_in = jnp.stack([l["in_b"] for l in layers])      # (L, 1, 3D)
    w_out = jnp.stack([l["out_w"].T for l in layers])  # (L, D, D)
    b_out = jnp.stack([l["out_b"] for l in layers])    # (L, 1, D)
    ln1w = jnp.stack([l["ln1_w"] for l in layers])     # (L, 1, D)
    ln1b = jnp.stack([l["ln1_b"] for l in layers])
    ln2w = jnp.stack([l["ln2_w"] for l in layers])
    ln2b = jnp.stack([l["ln2_b"] for l in layers])
    w_f1 = jnp.stack([l["f1_w"].T for l in layers])    # (L, D, Dff)
    b_f1 = jnp.stack([l["f1_b"] for l in layers])      # (L, 1, Dff)
    w_f2 = jnp.stack([l["f2_w"].T for l in layers])    # (L, Dff, D)
    b_f2 = jnp.stack([l["f2_b"] for l in layers])      # (L, 1, D)

    # Lane-dense padded fc weights (zeros beyond N_CLASSES → padded cols are 0).
    C = params["fc_w"].shape[0]
    fc_w = jnp.zeros((D, C_PAD), jnp.float32).at[:, :C].set(params["fc_w"].T)
    fc_b = jnp.zeros((1, C_PAD), jnp.float32).at[:, :C].set(params["fc_b"])

    kernel = functools.partial(fused_transformer_kernel,
                               n_layers=L, n_heads=N_HEADS)

    # Single fused pallas_call: everything resident in VMEM, no grid.
    # NOTE(v7x): with a single fused program only one TensorCore is used; if
    # batch grows, add a leading "parallel" grid axis over batch chunks.
    out_pad = pl.pallas_call(
        kernel,
        out_shape=jax.ShapeDtypeStruct((B, C_PAD), jnp.float32),
        in_specs=[_vmem_spec()] * 16,
        out_specs=_vmem_spec(),
    )(x, pe[:S, :], w_in, b_in, w_out, b_out,
      ln1w, ln1b, ln2w, ln2b, w_f1, b_f1, w_f2, b_f2, fc_w, fc_b)

    return out_pad[:, :C]


# ----------------------------- parameter init --------------------------------
def xavier_uniform(key, shape):
    fan_out, fan_in = shape
    limit = math.sqrt(6.0 / (fan_in + fan_out))
    return jax.random.uniform(key, shape, jnp.float32, -limit, limit)


def init_params(key):
    params = {"layers": []}
    for _ in range(N_LAYERS):
        key, k1, k2, k3, k4 = jax.random.split(key, 5)
        layer = dict(
            in_w=xavier_uniform(k1, (3 * D_MODEL, D_MODEL)),
            in_b=jnp.zeros((1, 3 * D_MODEL), jnp.float32),
            out_w=xavier_uniform(k2, (D_MODEL, D_MODEL)),
            out_b=jnp.zeros((1, D_MODEL), jnp.float32),
            ln1_w=jnp.ones((1, D_MODEL), jnp.float32),
            ln1_b=jnp.zeros((1, D_MODEL), jnp.float32),
            ln2_w=jnp.ones((1, D_MODEL), jnp.float32),
            ln2_b=jnp.zeros((1, D_MODEL), jnp.float32),
            f1_w=xavier_uniform(k3, (D_FF, D_MODEL)),
            f1_b=jnp.zeros((1, D_FF), jnp.float32),
            f2_w=xavier_uniform(k4, (D_MODEL, D_FF)),
            f2_b=jnp.zeros((1, D_MODEL), jnp.float32),
        )
        params["layers"].append(layer)
    key, kf = jax.random.split(key)
    params["fc_w"] = xavier_uniform(kf, (N_CLASSES, D_MODEL))
    params["fc_b"] = jnp.zeros((1, N_CLASSES), jnp.float32)
    return params


def make_pos_encoding(max_len, d_model):
    position = jnp.arange(max_len, dtype=jnp.float32)[:, None]
    div_term = jnp.exp(jnp.arange(0, d_model, 2, dtype=jnp.float32)
                       * (-math.log(10000.0) / d_model))
    pe = jnp.zeros((max_len, d_model), jnp.float32)
    pe = pe.at[:, 0::2].set(jnp.sin(position * div_term))
    pe = pe.at[:, 1::2].set(jnp.cos(position * div_term))
    return pe


# ----------------------------- pure-JAX reference ----------------------------
def _ref_forward(x, params, pe):
    def ln(x, w, b):
        mu = x.mean(-1, keepdims=True)
        var = ((x - mu) ** 2).mean(-1, keepdims=True)
        return (x - mu) / jnp.sqrt(var + LN_EPS) * w + b

    x = x + pe[None, :x.shape[1], :]
    B, S, D = x.shape
    dh = D // N_HEADS
    for lyr in params["layers"]:
        qkv = x @ lyr["in_w"].T + lyr["in_b"]
        q, k, v = qkv[..., :D], qkv[..., D:2 * D], qkv[..., 2 * D:]
        q = q.reshape(B, S, N_HEADS, dh).transpose(0, 2, 1, 3)
        k = k.reshape(B, S, N_HEADS, dh).transpose(0, 2, 1, 3)
        v = v.reshape(B, S, N_HEADS, dh).transpose(0, 2, 1, 3)
        s = jnp.einsum("bhqd,bhkd->bhqk", q, k) / math.sqrt(dh)
        p = jax.nn.softmax(s, axis=-1)
        a = jnp.einsum("bhqk,bhkd->bhqd", p, v).transpose(0, 2, 1, 3).reshape(B, S, D)
        a = a @ lyr["out_w"].T + lyr["out_b"]
        x = ln(x + a, lyr["ln1_w"], lyr["ln1_b"])
        h = jax.nn.gelu(x @ lyr["f1_w"].T + lyr["f1_b"], approximate=False)
        h = h @ lyr["f2_w"].T + lyr["f2_b"]
        x = ln(x + h, lyr["ln2_w"], lyr["ln2_b"])
    return x[:, -1, :] @ params["fc_w"].T + params["fc_b"]


# ----------------------------- main -------------------------------------------
if __name__ == "__main__":
    key = jax.random.PRNGKey(0)
    key, kx, kp = jax.random.split(key, 3)

    x = jax.random.normal(kx, (BATCH, SEQ, D_MODEL), jnp.float32)
    params = init_params(kp)
    pe = make_pos_encoding(MAX_SEQ_LEN, D_MODEL)

    out = transformer_intent_forward(x, params, pe)
    out = jax.block_until_ready(out)
    assert out.shape == (BATCH, N_CLASSES), out.shape

    ref = jax.block_until_ready(_ref_forward(x, params, pe))
    assert jnp.allclose(out, ref, rtol=2e-3, atol=2e-3), (
        f"max abs diff {jnp.max(jnp.abs(out - ref))}")

    print("KERNEL_OK")
</pallas_src>

<mosaic_0001>
module attributes {stable_mosaic.version = 11 : i64} {
  func.func @fused_transformer_kernel(%arg0: memref<2x8x128xf32, #tpu.memory_space<vmem>>, %arg1: memref<8x128xf32, #tpu.memory_space<vmem>>, %arg2: memref<2x128x384xf32, #tpu.memory_space<vmem>>, %arg3: memref<2x1x384xf32, #tpu.memory_space<vmem>>, %arg4: memref<2x128x128xf32, #tpu.memory_space<vmem>>, %arg5: memref<2x1x128xf32, #tpu.memory_space<vmem>>, %arg6: memref<2x1x128xf32, #tpu.memory_space<vmem>>, %arg7: memref<2x1x128xf32, #tpu.memory_space<vmem>>, %arg8: memref<2x1x128xf32, #tpu.memory_space<vmem>>, %arg9: memref<2x1x128xf32, #tpu.memory_space<vmem>>, %arg10: memref<2x128x128xf32, #tpu.memory_space<vmem>>, %arg11: memref<2x1x128xf32, #tpu.memory_space<vmem>>, %arg12: memref<2x128x128xf32, #tpu.memory_space<vmem>>, %arg13: memref<2x1x128xf32, #tpu.memory_space<vmem>>, %arg14: memref<128x128xf32, #tpu.memory_space<vmem>>, %arg15: memref<1x128xf32, #tpu.memory_space<vmem>>, %arg16: memref<2x128xf32, #tpu.memory_space<vmem>>) attributes {dimension_semantics = [], scalar_prefetch = 0 : i64, scratch_operands = 0 : i64, tpu.core_type = #tpu.core_type<tc>} {
    %c0 = arith.constant 0 : index
    %c0_0 = arith.constant 0 : index
    %c0_1 = arith.constant 0 : index
    %0 = vector.load %arg0[%c0, %c0_0, %c0_1] : memref<2x8x128xf32, #tpu.memory_space<vmem>>, vector<2x8x128xf32>
    %c0_2 = arith.constant 0 : index
    %c0_3 = arith.constant 0 : index
    %1 = vector.load %arg1[%c0_2, %c0_3] : memref<8x128xf32, #tpu.memory_space<vmem>>, vector<8x128xf32>
    %2 = vector.shape_cast %1 : vector<8x128xf32> to vector<1x8x128xf32>
    %3 = vector.broadcast %2 : vector<1x8x128xf32> to vector<2x8x128xf32>
    %4 = arith.addf %0, %3 : vector<2x8x128xf32>
    %5 = vector.shape_cast %4 : vector<2x8x128xf32> to vector<16x128xf32>
    %c0_4 = arith.constant 0 : index
    %c0_5 = arith.constant 0 : index
    %c0_6 = arith.constant 0 : index
    %6 = vector.load %arg2[%c0_4, %c0_5, %c0_6] : memref<2x128x384xf32, #tpu.memory_space<vmem>>, vector<1x128x384xf32>
    %7 = vector.shape_cast %6 : vector<1x128x384xf32> to vector<128x384xf32>
    %c0_7 = arith.constant 0 : index
    %c0_8 = arith.constant 0 : index
    %c0_9 = arith.constant 0 : index
    %8 = vector.load %arg3[%c0_7, %c0_8, %c0_9] : memref<2x1x384xf32, #tpu.memory_space<vmem>>, vector<1x1x384xf32>
    %9 = vector.shape_cast %8 : vector<1x1x384xf32> to vector<1x384xf32>
    %c0_10 = arith.constant 0 : index
    %c0_11 = arith.constant 0 : index
    %c0_12 = arith.constant 0 : index
    %10 = vector.load %arg4[%c0_10, %c0_11, %c0_12] : memref<2x128x128xf32, #tpu.memory_space<vmem>>, vector<1x128x128xf32>
    %11 = vector.shape_cast %10 : vector<1x128x128xf32> to vector<128x128xf32>
    %c0_13 = arith.constant 0 : index
    %c0_14 = arith.constant 0 : index
    %c0_15 = arith.constant 0 : index
    %12 = vector.load %arg5[%c0_13, %c0_14, %c0_15] : memref<2x1x128xf32, #tpu.memory_space<vmem>>, vector<1x1x128xf32>
    %13 = vector.shape_cast %12 : vector<1x1x128xf32> to vector<1x128xf32>
    %cst = arith.constant dense<0.000000e+00> : vector<16x384xf32>
    %14 = tpu.matmul %5, %7, %cst {dimension_numbers = #tpu.dot_dimension_numbers<[1], [0], [0], [1], [0, 0, 1, 1], [], []>} : vector<16x128xf32>, vector<128x384xf32>, vector<16x384xf32> -> vector<16x384xf32>
    %15 = vector.broadcast %9 : vector<1x384xf32> to vector<16x384xf32>
    %16 = arith.addf %14, %15 : vector<16x384xf32>
    %17 = vector.extract_strided_slice %16 {offsets = [0, 0], sizes = [16, 128], strides = [1, 1]} : vector<16x384xf32> to vector<16x128xf32>
    %18 = vector.extract_strided_slice %16 {offsets = [0, 128], sizes = [16, 128], strides = [1, 1]} : vector<16x384xf32> to vector<16x128xf32>
    %19 = vector.extract_strided_slice %16 {offsets = [0, 256], sizes = [16, 128], strides = [1, 1]} : vector<16x384xf32> to vector<16x128xf32>
    %cst_16 = arith.constant 0.000000e+00 : f32
    %20 = vector.broadcast %cst_16 : f32 to vector<16x128xf32>
    %21 = vector.extract_strided_slice %17 {offsets = [0, 0], sizes = [16, 32], strides = [1, 1]} : vector<16x128xf32> to vector<16x32xf32>
    %22 = vector.shape_cast %21 : vector<16x32xf32> to vector<2x8x32xf32>
    %23 = vector.extract_strided_slice %18 {offsets = [0, 0], sizes = [16, 32], strides = [1, 1]} : vector<16x128xf32> to vector<16x32xf32>
    %24 = vector.shape_cast %23 : vector<16x32xf32> to vector<2x8x32xf32>
    %25 = vector.extract_strided_slice %19 {offsets = [0, 0], sizes = [16, 32], strides = [1, 1]} : vector<16x128xf32> to vector<16x32xf32>
    %26 = vector.shape_cast %25 : vector<16x32xf32> to vector<2x8x32xf32>
    "tpu.trace_start"() <{level = 10 : i32, message = "bqd,bkd->bqk"}> : () -> ()
    %cst_17 = arith.constant dense<0.000000e+00> : vector<2x8x8xf32>
    %27 = tpu.matmul %22, %24, %cst_17 {dimension_numbers = #tpu.dot_dimension_numbers<[2], [2], [1], [1], [0, 0, 0, 1, 1, 1], [0], [0]>} : vector<2x8x32xf32>, vector<2x8x32xf32>, vector<2x8x8xf32> -> vector<2x8x8xf32>
    "tpu.trace_stop"() : () -> ()
    %cst_18 = arith.constant 0.176776692 : f32
    %28 = vector.broadcast %cst_18 : f32 to vector<2x8x8xf32>
    %29 = arith.mulf %27, %28 : vector<2x8x8xf32>
    %cst_19 = arith.constant dense<0xFF800000> : vector<2x8xf32>
    %30 = vector.multi_reduction <maximumf>, %29, %cst_19 [2] : vector<2x8x8xf32> to vector<2x8xf32>
    %31 = vector.shape_cast %30 : vector<2x8xf32> to vector<2x8x1xf32>
    %32 = vector.broadcast %31 : vector<2x8x1xf32> to vector<2x8x8xf32>
    %33 = arith.subf %29, %32 : vector<2x8x8xf32>
    %34 = math.exp %33 : vector<2x8x8xf32>
    %cst_20 = arith.constant dense<0.000000e+00> : vector<2x8xf32>
    %35 = vector.multi_reduction <add>, %34, %cst_20 [2] : vector<2x8x8xf32> to vector<2x8xf32>
    %36 = vector.shape_cast %35 : vector<2x8xf32> to vector<2x8x1xf32>
    %37 = vector.broadcast %36 : vector<2x8x1xf32> to vector<2x8x8xf32>
    %38 = arith.divf %34, %37 : vector<2x8x8xf32>
    "tpu.trace_start"() <{level = 10 : i32, message = "bqk,bkd->bqd"}> : () -> ()
    %cst_21 = arith.constant dense<0.000000e+00> : vector<2x8x32xf32>
    %39 = tpu.matmul %38, %26, %cst_21 {dimension_numbers = #tpu.dot_dimension_numbers<[2], [1], [1], [2], [0, 0, 0, 1, 1, 2], [0], [0]>} : vector<2x8x8xf32>, vector<2x8x32xf32>, vector<2x8x32xf32> -> vector<2x8x32xf32>
    "tpu.trace_stop"() : () -> ()
    %40 = vector.shape_cast %39 : vector<2x8x32xf32> to vector<16x32xf32>
    %41 = vector.extract_strided_slice %11 {offsets = [0, 0], sizes = [32, 128], strides = [1, 1]} : vector<128x128xf32> to vector<32x128xf32>
    %cst_22 = arith.constant dense<0.000000e+00> : vector<16x128xf32>
    %42 = tpu.matmul %40, %41, %cst_22 {dimension_numbers = #tpu.dot_dimension_numbers<[1], [0], [0], [1], [0, 0, 1, 1], [], []>} : vector<16x32xf32>, vector<32x128xf32>, vector<16x128xf32> -> vector<16x128xf32>
    %43 = arith.addf %20, %42 : vector<16x128xf32>
    %44 = vector.extract_strided_slice %17 {offsets = [0, 32], sizes = [16, 32], strides = [1, 1]} : vector<16x128xf32> to vector<16x32xf32>
    %45 = vector.shape_cast %44 : vector<16x32xf32> to vector<2x8x32xf32>
    %46 = vector.extract_strided_slice %18 {offsets = [0, 32], sizes = [16, 32], strides = [1, 1]} : vector<16x128xf32> to vector<16x32xf32>
    %47 = vector.shape_cast %46 : vector<16x32xf32> to vector<2x8x32xf32>
    %48 = vector.extract_strided_slice %19 {offsets = [0, 32], sizes = [16, 32], strides = [1, 1]} : vector<16x128xf32> to vector<16x32xf32>
    %49 = vector.shape_cast %48 : vector<16x32xf32> to vector<2x8x32xf32>
    "tpu.trace_start"() <{level = 10 : i32, message = "bqd,bkd->bqk"}> : () -> ()
    %cst_23 = arith.constant dense<0.000000e+00> : vector<2x8x8xf32>
    %50 = tpu.matmul %45, %47, %cst_23 {dimension_numbers = #tpu.dot_dimension_numbers<[2], [2], [1], [1], [0, 0, 0, 1, 1, 1], [0], [0]>} : vector<2x8x32xf32>, vector<2x8x32xf32>, vector<2x8x8xf32> -> vector<2x8x8xf32>
    "tpu.trace_stop"() : () -> ()
    %cst_24 = arith.constant 0.176776692 : f32
    %51 = vector.broadcast %cst_24 : f32 to vector<2x8x8xf32>
    %52 = arith.mulf %50, %51 : vector<2x8x8xf32>
    %cst_25 = arith.constant dense<0xFF800000> : vector<2x8xf32>
    %53 = vector.multi_reduction <maximumf>, %52, %cst_25 [2] : vector<2x8x8xf32> to vector<2x8xf32>
    %54 = vector.shape_cast %53 : vector<2x8xf32> to vector<2x8x1xf32>
    %55 = vector.broadcast %54 : vector<2x8x1xf32> to vector<2x8x8xf32>
    %56 = arith.subf %52, %55 : vector<2x8x8xf32>
    %57 = math.exp %56 : vector<2x8x8xf32>
    %cst_26 = arith.constant dense<0.000000e+00> : vector<2x8xf32>
    %58 = vector.multi_reduction <add>, %57, %cst_26 [2] : vector<2x8x8xf32> to vector<2x8xf32>
    %59 = vector.shape_cast %58 : vector<2x8xf32> to vector<2x8x1xf32>
    %60 = vector.broadcast %59 : vector<2x8x1xf32> to vector<2x8x8xf32>
    %61 = arith.divf %57, %60 : vector<2x8x8xf32>
    "tpu.trace_start"() <{level = 10 : i32, message = "bqk,bkd->bqd"}> : () -> ()
    %cst_27 = arith.constant dense<0.000000e+00> : vector<2x8x32xf32>
    %62 = tpu.matmul %61, %49, %cst_27 {dimension_numbers = #tpu.dot_dimension_numbers<[2], [1], [1], [2], [0, 0, 0, 1, 1, 2], [0], [0]>} : vector<2x8x8xf32>, vector<2x8x32xf32>, vector<2x8x32xf32> -> vector<2x8x32xf32>
    "tpu.trace_stop"() : () -> ()
    %63 = vector.shape_cast %62 : vector<2x8x32xf32> to vector<16x32xf32>
    %64 = vector.extract_strided_slice %11 {offsets = [32, 0], sizes = [32, 128], strides = [1, 1]} : vector<128x128xf32> to vector<32x128xf32>
    %cst_28 = arith.constant dense<0.000000e+00> : vector<16x128xf32>
    %65 = tpu.matmul %63, %64, %cst_28 {dimension_numbers = #tpu.dot_dimension_numbers<[1], [0], [0], [1], [0, 0, 1, 1], [], []>} : vector<16x32xf32>, vector<32x128xf32>, vector<16x128xf32> -> vector<16x128xf32>
    %66 = arith.addf %43, %65 : vector<16x128xf32>
    %67 = vector.extract_strided_slice %17 {offsets = [0, 64], sizes = [16, 32], strides = [1, 1]} : vector<16x128xf32> to vector<16x32xf32>
    %68 = vector.shape_cast %67 : vector<16x32xf32> to vector<2x8x32xf32>
    %69 = vector.extract_strided_slice %18 {offsets = [0, 64], sizes = [16, 32], strides = [1, 1]} : vector<16x128xf32> to vector<16x32xf32>
    %70 = vector.shape_cast %69 : vector<16x32xf32> to vector<2x8x32xf32>
    %71 = vector.extract_strided_slice %19 {offsets = [0, 64], sizes = [16, 32], strides = [1, 1]} : vector<16x128xf32> to vector<16x32xf32>
    %72 = vector.shape_cast %71 : vector<16x32xf32> to vector<2x8x32xf32>
    "tpu.trace_start"() <{level = 10 : i32, message = "bqd,bkd->bqk"}> : () -> ()
    %cst_29 = arith.constant dense<0.000000e+00> : vector<2x8x8xf32>
    %73 = tpu.matmul %68, %70, %cst_29 {dimension_numbers = #tpu.dot_dimension_numbers<[2], [2], [1], [1], [0, 0, 0, 1, 1, 1], [0], [0]>} : vector<2x8x32xf32>, vector<2x8x32xf32>, vector<2x8x8xf32> -> vector<2x8x8xf32>
    "tpu.trace_stop"() : () -> ()
    %cst_30 = arith.constant 0.176776692 : f32
    %74 = vector.broadcast %cst_30 : f32 to vector<2x8x8xf32>
    %75 = arith.mulf %73, %74 : vector<2x8x8xf32>
    %cst_31 = arith.constant dense<0xFF800000> : vector<2x8xf32>
    %76 = vector.multi_reduction <maximumf>, %75, %cst_31 [2] : vector<2x8x8xf32> to vector<2x8xf32>
    %77 = vector.shape_cast %76 : vector<2x8xf32> to vector<2x8x1xf32>
    %78 = vector.broadcast %77 : vector<2x8x1xf32> to vector<2x8x8xf32>
    %79 = arith.subf %75, %78 : vector<2x8x8xf32>
    %80 = math.exp %79 : vector<2x8x8xf32>
    %cst_32 = arith.constant dense<0.000000e+00> : vector<2x8xf32>
    %81 = vector.multi_reduction <add>, %80, %cst_32 [2] : vector<2x8x8xf32> to vector<2x8xf32>
    %82 = vector.shape_cast %81 : vector<2x8xf32> to vector<2x8x1xf32>
    %83 = vector.broadcast %82 : vector<2x8x1xf32> to vector<2x8x8xf32>
    %84 = arith.divf %80, %83 : vector<2x8x8xf32>
    "tpu.trace_start"() <{level = 10 : i32, message = "bqk,bkd->bqd"}> : () -> ()
    %cst_33 = arith.constant dense<0.000000e+00> : vector<2x8x32xf32>
    %85 = tpu.matmul %84, %72, %cst_33 {dimension_numbers = #tpu.dot_dimension_numbers<[2], [1], [1], [2], [0, 0, 0, 1, 1, 2], [0], [0]>} : vector<2x8x8xf32>, vector<2x8x32xf32>, vector<2x8x32xf32> -> vector<2x8x32xf32>
    "tpu.trace_stop"() : () -> ()
    %86 = vector.shape_cast %85 : vector<2x8x32xf32> to vector<16x32xf32>
    %87 = vector.extract_strided_slice %11 {offsets = [64, 0], sizes = [32, 128], strides = [1, 1]} : vector<128x128xf32> to vector<32x128xf32>
    %cst_34 = arith.constant dense<0.000000e+00> : vector<16x128xf32>
    %88 = tpu.matmul %86, %87, %cst_34 {dimension_numbers = #tpu.dot_dimension_numbers<[1], [0], [0], [1], [0, 0, 1, 1], [], []>} : vector<16x32xf32>, vector<32x128xf32>, vector<16x128xf32> -> vector<16x128xf32>
    %89 = arith.addf %66, %88 : vector<16x128xf32>
    %90 = vector.extract_strided_slice %17 {offsets = [0, 96], sizes = [16, 32], strides = [1, 1]} : vector<16x128xf32> to vector<16x32xf32>
    %91 = vector.shape_cast %90 : vector<16x32xf32> to vector<2x8x32xf32>
    %92 = vector.extract_strided_slice %18 {offsets = [0, 96], sizes = [16, 32], strides = [1, 1]} : vector<16x128xf32> to vector<16x32xf32>
    %93 = vector.shape_cast %92 : vector<16x32xf32> to vector<2x8x32xf32>
    %94 = vector.extract_strided_slice %19 {offsets = [0, 96], sizes = [16, 32], strides = [1, 1]} : vector<16x128xf32> to vector<16x32xf32>
    %95 = vector.shape_cast %94 : vector<16x32xf32> to vector<2x8x32xf32>
    "tpu.trace_start"() <{level = 10 : i32, message = "bqd,bkd->bqk"}> : () -> ()
    %cst_35 = arith.constant dense<0.000000e+00> : vector<2x8x8xf32>
    %96 = tpu.matmul %91, %93, %cst_35 {dimension_numbers = #tpu.dot_dimension_numbers<[2], [2], [1], [1], [0, 0, 0, 1, 1, 1], [0], [0]>} : vector<2x8x32xf32>, vector<2x8x32xf32>, vector<2x8x8xf32> -> vector<2x8x8xf32>
    "tpu.trace_stop"() : () -> ()
    %cst_36 = arith.constant 0.176776692 : f32
    %97 = vector.broadcast %cst_36 : f32 to vector<2x8x8xf32>
    %98 = arith.mulf %96, %97 : vector<2x8x8xf32>
    %cst_37 = arith.constant dense<0xFF800000> : vector<2x8xf32>
    %99 = vector.multi_reduction <maximumf>, %98, %cst_37 [2] : vector<2x8x8xf32> to vector<2x8xf32>
    %100 = vector.shape_cast %99 : vector<2x8xf32> to vector<2x8x1xf32>
    %101 = vector.broadcast %100 : vector<2x8x1xf32> to vector<2x8x8xf32>
    %102 = arith.subf %98, %101 : vector<2x8x8xf32>
    %103 = math.exp %102 : vector<2x8x8xf32>
    %cst_38 = arith.constant dense<0.000000e+00> : vector<2x8xf32>
    %104 = vector.multi_reduction <add>, %103, %cst_38 [2] : vector<2x8x8xf32> to vector<2x8xf32>
    %105 = vector.shape_cast %104 : vector<2x8xf32> to vector<2x8x1xf32>
    %106 = vector.broadcast %105 : vector<2x8x1xf32> to vector<2x8x8xf32>
    %107 = arith.divf %103, %106 : vector<2x8x8xf32>
    "tpu.trace_start"() <{level = 10 : i32, message = "bqk,bkd->bqd"}> : () -> ()
    %cst_39 = arith.constant dense<0.000000e+00> : vector<2x8x32xf32>
    %108 = tpu.matmul %107, %95, %cst_39 {dimension_numbers = #tpu.dot_dimension_numbers<[2], [1], [1], [2], [0, 0, 0, 1, 1, 2], [0], [0]>} : vector<2x8x8xf32>, vector<2x8x32xf32>, vector<2x8x32xf32> -> vector<2x8x32xf32>
    "tpu.trace_stop"() : () -> ()
    %109 = vector.shape_cast %108 : vector<2x8x32xf32> to vector<16x32xf32>
    %110 = vector.extract_strided_slice %11 {offsets = [96, 0], sizes = [32, 128], strides = [1, 1]} : vector<128x128xf32> to vector<32x128xf32>
    %cst_40 = arith.constant dense<0.000000e+00> : vector<16x128xf32>
    %111 = tpu.matmul %109, %110, %cst_40 {dimension_numbers = #tpu.dot_dimension_numbers<[1], [0], [0], [1], [0, 0, 1, 1], [], []>} : vector<16x32xf32>, vector<32x128xf32>, vector<16x128xf32> -> vector<16x128xf32>
    %112 = arith.addf %89, %111 : vector<16x128xf32>
    %113 = vector.broadcast %13 : vector<1x128xf32> to vector<16x128xf32>
    %114 = arith.addf %112, %113 : vector<16x128xf32>
    %115 = arith.addf %5, %114 : vector<16x128xf32>
    %c0_41 = arith.constant 0 : index
    %c0_42 = arith.constant 0 : index
    %c0_43 = arith.constant 0 : index
    %116 = vector.load %arg6[%c0_41, %c0_42, %c0_43] : memref<2x1x128xf32, #tpu.memory_space<vmem>>, vector<1x1x128xf32>
    %117 = vector.shape_cast %116 : vector<1x1x128xf32> to vector<1x128xf32>
    %c0_44 = arith.constant 0 : index
    %c0_45 = arith.constant 0 : index
    %c0_46 = arith.constant 0 : index
    %118 = vector.load %arg7[%c0_44, %c0_45, %c0_46] : memref<2x1x128xf32, #tpu.memory_space<vmem>>, vector<1x1x128xf32>
    %119 = vector.shape_cast %118 : vector<1x1x128xf32> to vector<1x128xf32>
    %cst_47 = arith.constant dense<0.000000e+00> : vector<16xf32>
    %120 = vector.multi_reduction <add>, %115, %cst_47 [1] : vector<16x128xf32> to vector<16xf32>
    %121 = vector.shape_cast %120 : vector<16xf32> to vector<16x1xf32>
    %cst_48 = arith.constant 1.280000e+02 : f32
    %122 = vector.broadcast %cst_48 : f32 to vector<16x1xf32>
    %123 = arith.divf %121, %122 : vector<16x1xf32>
    %124 = vector.broadcast %123 : vector<16x1xf32> to vector<16x128xf32>
    %125 = arith.subf %115, %124 : vector<16x128xf32>
    %126 = arith.mulf %125, %125 : vector<16x128xf32>
    %cst_49 = arith.constant dense<0.000000e+00> : vector<16xf32>
    %127 = vector.multi_reduction <add>, %126, %cst_49 [1] : vector<16x128xf32> to vector<16xf32>
    %128 = vector.shape_cast %127 : vector<16xf32> to vector<16x1xf32>
    %cst_50 = arith.constant 1.280000e+02 : f32
    %129 = vector.broadcast %cst_50 : f32 to vector<16x1xf32>
    %130 = arith.divf %128, %129 : vector<16x1xf32>
    %131 = vector.broadcast %123 : vector<16x1xf32> to vector<16x128xf32>
    %132 = arith.subf %115, %131 : vector<16x128xf32>
    %cst_51 = arith.constant 9.99999974E-6 : f32
    %133 = vector.broadcast %cst_51 : f32 to vector<16x1xf32>
    %134 = arith.addf %130, %133 : vector<16x1xf32>
    %135 = math.rsqrt %134 : vector<16x1xf32>
    %136 = vector.broadcast %135 : vector<16x1xf32> to vector<16x128xf32>
    %137 = arith.mulf %132, %136 : vector<16x128xf32>
    %138 = vector.broadcast %117 : vector<1x128xf32> to vector<16x128xf32>
    %139 = arith.mulf %137, %138 : vector<16x128xf32>
    %140 = vector.broadcast %119 : vector<1x128xf32> to vector<16x128xf32>
    %141 = arith.addf %139, %140 : vector<16x128xf32>
    %c0_52 = arith.constant 0 : index
    %c0_53 = arith.constant 0 : index
    %c0_54 = arith.constant 0 : index
    %142 = vector.load %arg10[%c0_52, %c0_53, %c0_54] : memref<2x128x128xf32, #tpu.memory_space<vmem>>, vector<1x128x128xf32>
    %143 = vector.shape_cast %142 : vector<1x128x128xf32> to vector<128x128xf32>
    %cst_55 = arith.constant dense<0.000000e+00> : vector<16x128xf32>
    %144 = tpu.matmul %141, %143, %cst_55 {dimension_numbers = #tpu.dot_dimension_numbers<[1], [0], [0], [1], [0, 0, 1, 1], [], []>} : vector<16x128xf32>, vector<128x128xf32>, vector<16x128xf32> -> vector<16x128xf32>
    %c0_56 = arith.constant 0 : index
    %c0_57 = arith.constant 0 : index
    %c0_58 = arith.constant 0 : index
    %145 = vector.load %arg11[%c0_56, %c0_57, %c0_58] : memref<2x1x128xf32, #tpu.memory_space<vmem>>, vector<1x1x128xf32>
    %146 = vector.shape_cast %145 : vector<1x1x128xf32> to vector<1x128xf32>
    %147 = vector.broadcast %146 : vector<1x128xf32> to vector<16x128xf32>
    %148 = arith.addf %144, %147 : vector<16x128xf32>
    %cst_59 = arith.constant 5.000000e-01 : f32
    %149 = vector.broadcast %cst_59 : f32 to vector<16x128xf32>
    %150 = arith.mulf %149, %148 : vector<16x128xf32>
    %cst_60 = arith.constant 0.707106769 : f32
    %151 = vector.broadcast %cst_60 : f32 to vector<16x128xf32>
    %152 = arith.mulf %148, %151 : vector<16x128xf32>
    %153 = math.erf %152 : vector<16x128xf32>
    %cst_61 = arith.constant 1.000000e+00 : f32
    %154 = vector.broadcast %cst_61 : f32 to vector<16x128xf32>
    %155 = arith.addf %154, %153 : vector<16x128xf32>
    %156 = arith.mulf %150, %155 : vector<16x128xf32>
    %c0_62 = arith.constant 0 : index
    %c0_63 = arith.constant 0 : index
    %c0_64 = arith.constant 0 : index
    %157 = vector.load %arg12[%c0_62, %c0_63, %c0_64] : memref<2x128x128xf32, #tpu.memory_space<vmem>>, vector<1x128x128xf32>
    %158 = vector.shape_cast %157 : vector<1x128x128xf32> to vector<128x128xf32>
    %cst_65 = arith.constant dense<0.000000e+00> : vector<16x128xf32>
    %159 = tpu.matmul %156, %158, %cst_65 {dimension_numbers = #tpu.dot_dimension_numbers<[1], [0], [0], [1], [0, 0, 1, 1], [], []>} : vector<16x128xf32>, vector<128x128xf32>, vector<16x128xf32> -> vector<16x128xf32>
    %c0_66 = arith.constant 0 : index
    %c0_67 = arith.constant 0 : index
    %c0_68 = arith.constant 0 : index
    %160 = vector.load %arg13[%c0_66, %c0_67, %c0_68] : memref<2x1x128xf32, #tpu.memory_space<vmem>>, vector<1x1x128xf32>
    %161 = vector.shape_cast %160 : vector<1x1x128xf32> to vector<1x128xf32>
    %162 = vector.broadcast %161 : vector<1x128xf32> to vector<16x128xf32>
    %163 = arith.addf %159, %162 : vector<16x128xf32>
    %164 = arith.addf %141, %163 : vector<16x128xf32>
    %c0_69 = arith.constant 0 : index
    %c0_70 = arith.constant 0 : index
    %c0_71 = arith.constant 0 : index
    %165 = vector.load %arg8[%c0_69, %c0_70, %c0_71] : memref<2x1x128xf32, #tpu.memory_space<vmem>>, vector<1x1x128xf32>
    %166 = vector.shape_cast %165 : vector<1x1x128xf32> to vector<1x128xf32>
    %c0_72 = arith.constant 0 : index
    %c0_73 = arith.constant 0 : index
    %c0_74 = arith.constant 0 : index
    %167 = vector.load %arg9[%c0_72, %c0_73, %c0_74] : memref<2x1x128xf32, #tpu.memory_space<vmem>>, vector<1x1x128xf32>
    %168 = vector.shape_cast %167 : vector<1x1x128xf32> to vector<1x128xf32>
    %cst_75 = arith.constant dense<0.000000e+00> : vector<16xf32>
    %169 = vector.multi_reduction <add>, %164, %cst_75 [1] : vector<16x128xf32> to vector<16xf32>
    %170 = vector.shape_cast %169 : vector<16xf32> to vector<16x1xf32>
    %cst_76 = arith.constant 1.280000e+02 : f32
    %171 = vector.broadcast %cst_76 : f32 to vector<16x1xf32>
    %172 = arith.divf %170, %171 : vector<16x1xf32>
    %173 = vector.broadcast %172 : vector<16x1xf32> to vector<16x128xf32>
    %174 = arith.subf %164, %173 : vector<16x128xf32>
    %175 = arith.mulf %174, %174 : vector<16x128xf32>
    %cst_77 = arith.constant dense<0.000000e+00> : vector<16xf32>
    %176 = vector.multi_reduction <add>, %175, %cst_77 [1] : vector<16x128xf32> to vector<16xf32>
    %177 = vector.shape_cast %176 : vector<16xf32> to vector<16x1xf32>
    %cst_78 = arith.constant 1.280000e+02 : f32
    %178 = vector.broadcast %cst_78 : f32 to vector<16x1xf32>
    %179 = arith.divf %177, %178 : vector<16x1xf32>
    %180 = vector.broadcast %172 : vector<16x1xf32> to vector<16x128xf32>
    %181 = arith.subf %164, %180 : vector<16x128xf32>
    %cst_79 = arith.constant 9.99999974E-6 : f32
    %182 = vector.broadcast %cst_79 : f32 to vector<16x1xf32>
    %183 = arith.addf %179, %182 : vector<16x1xf32>
    %184 = math.rsqrt %183 : vector<16x1xf32>
    %185 = vector.broadcast %184 : vector<16x1xf32> to vector<16x128xf32>
    %186 = arith.mulf %181, %185 : vector<16x128xf32>
    %187 = vector.broadcast %166 : vector<1x128xf32> to vector<16x128xf32>
    %188 = arith.mulf %186, %187 : vector<16x128xf32>
    %189 = vector.broadcast %168 : vector<1x128xf32> to vector<16x128xf32>
    %190 = arith.addf %188, %189 : vector<16x128xf32>
    %c1 = arith.constant 1 : index
    %c0_80 = arith.constant 0 : index
    %c0_81 = arith.constant 0 : index
    %191 = vector.load %arg2[%c1, %c0_80, %c0_81] : memref<2x128x384xf32, #tpu.memory_space<vmem>>, vector<1x128x384xf32>
    %192 = vector.shape_cast %191 : vector<1x128x384xf32> to vector<128x384xf32>
    %c1_82 = arith.constant 1 : index
    %c0_83 = arith.constant 0 : index
    %c0_84 = arith.constant 0 : index
    %193 = vector.load %arg3[%c1_82, %c0_83, %c0_84] : memref<2x1x384xf32, #tpu.memory_space<vmem>>, vector<1x1x384xf32>
    %194 = vector.shape_cast %193 : vector<1x1x384xf32> to vector<1x384xf32>
    %c1_85 = arith.constant 1 : index
    %c0_86 = arith.constant 0 : index
    %c0_87 = arith.constant 0 : index
    %195 = vector.load %arg4[%c1_85, %c0_86, %c0_87] : memref<2x128x128xf32, #tpu.memory_space<vmem>>, vector<1x128x128xf32>
    %196 = vector.shape_cast %195 : vector<1x128x128xf32> to vector<128x128xf32>
    %c1_88 = arith.constant 1 : index
    %c0_89 = arith.constant 0 : index
    %c0_90 = arith.constant 0 : index
    %197 = vector.load %arg5[%c1_88, %c0_89, %c0_90] : memref<2x1x128xf32, #tpu.memory_space<vmem>>, vector<1x1x128xf32>
    %198 = vector.shape_cast %197 : vector<1x1x128xf32> to vector<1x128xf32>
    %cst_91 = arith.constant dense<0.000000e+00> : vector<16x384xf32>
    %199 = tpu.matmul %190, %192, %cst_91 {dimension_numbers = #tpu.dot_dimension_numbers<[1], [0], [0], [1], [0, 0, 1, 1], [], []>} : vector<16x128xf32>, vector<128x384xf32>, vector<16x384xf32> -> vector<16x384xf32>
    %200 = vector.broadcast %194 : vector<1x384xf32> to vector<16x384xf32>
    %201 = arith.addf %199, %200 : vector<16x384xf32>
    %202 = vector.extract_strided_slice %201 {offsets = [0, 0], sizes = [16, 128], strides = [1, 1]} : vector<16x384xf32> to vector<16x128xf32>
    %203 = vector.extract_strided_slice %201 {offsets = [0, 128], sizes = [16, 128], strides = [1, 1]} : vector<16x384xf32> to vector<16x128xf32>
    %204 = vector.extract_strided_slice %201 {offsets = [0, 256], sizes = [16, 128], strides = [1, 1]} : vector<16x384xf32> to vector<16x128xf32>
    %cst_92 = arith.constant 0.000000e+00 : f32
    %205 = vector.broadcast %cst_92 : f32 to vector<16x128xf32>
    %206 = vector.extract_strided_slice %202 {offsets = [0, 0], sizes = [16, 32], strides = [1, 1]} : vector<16x128xf32> to vector<16x32xf32>
    %207 = vector.shape_cast %206 : vector<16x32xf32> to vector<2x8x32xf32>
    %208 = vector.extract_strided_slice %203 {offsets = [0, 0], sizes = [16, 32], strides = [1, 1]} : vector<16x128xf32> to vector<16x32xf32>
    %209 = vector.shape_cast %208 : vector<16x32xf32> to vector<2x8x32xf32>
    %210 = vector.extract_strided_slice %204 {offsets = [0, 0], sizes = [16, 32], strides = [1, 1]} : vector<16x128xf32> to vector<16x32xf32>
    %211 = vector.shape_cast %210 : vector<16x32xf32> to vector<2x8x32xf32>
    "tpu.trace_start"() <{level = 10 : i32, message = "bqd,bkd->bqk"}> : () -> ()
    %cst_93 = arith.constant dense<0.000000e+00> : vector<2x8x8xf32>
    %212 = tpu.matmul %207, %209, %cst_93 {dimension_numbers = #tpu.dot_dimension_numbers<[2], [2], [1], [1], [0, 0, 0, 1, 1, 1], [0], [0]>} : vector<2x8x32xf32>, vector<2x8x32xf32>, vector<2x8x8xf32> -> vector<2x8x8xf32>
    "tpu.trace_stop"() : () -> ()
    %cst_94 = arith.constant 0.176776692 : f32
    %213 = vector.broadcast %cst_94 : f32 to vector<2x8x8xf32>
    %214 = arith.mulf %212, %213 : vector<2x8x8xf32>
    %cst_95 = arith.constant dense<0xFF800000> : vector<2x8xf32>
    %215 = vector.multi_reduction <maximumf>, %214, %cst_95 [2] : vector<2x8x8xf32> to vector<2x8xf32>
    %216 = vector.shape_cast %215 : vector<2x8xf32> to vector<2x8x1xf32>
    %217 = vector.broadcast %216 : vector<2x8x1xf32> to vector<2x8x8xf32>
    %218 = arith.subf %214, %217 : vector<2x8x8xf32>
    %219 = math.exp %218 : vector<2x8x8xf32>
    %cst_96 = arith.constant dense<0.000000e+00> : vector<2x8xf32>
    %220 = vector.multi_reduction <add>, %219, %cst_96 [2] : vector<2x8x8xf32> to vector<2x8xf32>
    %221 = vector.shape_cast %220 : vector<2x8xf32> to vector<2x8x1xf32>
    %222 = vector.broadcast %221 : vector<2x8x1xf32> to vector<2x8x8xf32>
    %223 = arith.divf %219, %222 : vector<2x8x8xf32>
    "tpu.trace_start"() <{level = 10 : i32, message = "bqk,bkd->bqd"}> : () -> ()
    %cst_97 = arith.constant dense<0.000000e+00> : vector<2x8x32xf32>
    %224 = tpu.matmul %223, %211, %cst_97 {dimension_numbers = #tpu.dot_dimension_numbers<[2], [1], [1], [2], [0, 0, 0, 1, 1, 2], [0], [0]>} : vector<2x8x8xf32>, vector<2x8x32xf32>, vector<2x8x32xf32> -> vector<2x8x32xf32>
    "tpu.trace_stop"() : () -> ()
    %225 = vector.shape_cast %224 : vector<2x8x32xf32> to vector<16x32xf32>
    %226 = vector.extract_strided_slice %196 {offsets = [0, 0], sizes = [32, 128], strides = [1, 1]} : vector<128x128xf32> to vector<32x128xf32>
    %cst_98 = arith.constant dense<0.000000e+00> : vector<16x128xf32>
    %227 = tpu.matmul %225, %226, %cst_98 {dimension_numbers = #tpu.dot_dimension_numbers<[1], [0], [0], [1], [0, 0, 1, 1], [], []>} : vector<16x32xf32>, vector<32x128xf32>, vector<16x128xf32> -> vector<16x128xf32>
    %228 = arith.addf %205, %227 : vector<16x128xf32>
    %229 = vector.extract_strided_slice %202 {offsets = [0, 32], sizes = [16, 32], strides = [1, 1]} : vector<16x128xf32> to vector<16x32xf32>
    %230 = vector.shape_cast %229 : vector<16x32xf32> to vector<2x8x32xf32>
    %231 = vector.extract_strided_slice %203 {offsets = [0, 32], sizes = [16, 32], strides = [1, 1]} : vector<16x128xf32> to vector<16x32xf32>
    %232 = vector.shape_cast %231 : vector<16x32xf32> to vector<2x8x32xf32>
    %233 = vector.extract_strided_slice %204 {offsets = [0, 32], sizes = [16, 32], strides = [1, 1]} : vector<16x128xf32> to vector<16x32xf32>
    %234 = vector.shape_cast %233 : vector<16x32xf32> to vector<2x8x32xf32>
    "tpu.trace_start"() <{level = 10 : i32, message = "bqd,bkd->bqk"}> : () -> ()
    %cst_99 = arith.constant dense<0.000000e+00> : vector<2x8x8xf32>
    %235 = tpu.matmul %230, %232, %cst_99 {dimension_numbers = #tpu.dot_dimension_numbers<[2], [2], [1], [1], [0, 0, 0, 1, 1, 1], [0], [0]>} : vector<2x8x32xf32>, vector<2x8x32xf32>, vector<2x8x8xf32> -> vector<2x8x8xf32>
    "tpu.trace_stop"() : () -> ()
    %cst_100 = arith.constant 0.176776692 : f32
    %236 = vector.broadcast %cst_100 : f32 to vector<2x8x8xf32>
    %237 = arith.mulf %235, %236 : vector<2x8x8xf32>
    %cst_101 = arith.constant dense<0xFF800000> : vector<2x8xf32>
    %238 = vector.multi_reduction <maximumf>, %237, %cst_101 [2] : vector<2x8x8xf32> to vector<2x8xf32>
    %239 = vector.shape_cast %238 : vector<2x8xf32> to vector<2x8x1xf32>
    %240 = vector.broadcast %239 : vector<2x8x1xf32> to vector<2x8x8xf32>
    %241 = arith.subf %237, %240 : vector<2x8x8xf32>
    %242 = math.exp %241 : vector<2x8x8xf32>
    %cst_102 = arith.constant dense<0.000000e+00> : vector<2x8xf32>
    %243 = vector.multi_reduction <add>, %242, %cst_102 [2] : vector<2x8x8xf32> to vector<2x8xf32>
    %244 = vector.shape_cast %243 : vector<2x8xf32> to vector<2x8x1xf32>
    %245 = vector.broadcast %244 : vector<2x8x1xf32> to vector<2x8x8xf32>
    %246 = arith.divf %242, %245 : vector<2x8x8xf32>
    "tpu.trace_start"() <{level = 10 : i32, message = "bqk,bkd->bqd"}> : () -> ()
    %cst_103 = arith.constant dense<0.000000e+00> : vector<2x8x32xf32>
    %247 = tpu.matmul %246, %234, %cst_103 {dimension_numbers = #tpu.dot_dimension_numbers<[2], [1], [1], [2], [0, 0, 0, 1, 1, 2], [0], [0]>} : vector<2x8x8xf32>, vector<2x8x32xf32>, vector<2x8x32xf32> -> vector<2x8x32xf32>
    "tpu.trace_stop"() : () -> ()
    %248 = vector.shape_cast %247 : vector<2x8x32xf32> to vector<16x32xf32>
    %249 = vector.extract_strided_slice %196 {offsets = [32, 0], sizes = [32, 128], strides = [1, 1]} : vector<128x128xf32> to vector<32x128xf32>
    %cst_104 = arith.constant dense<0.000000e+00> : vector<16x128xf32>
    %250 = tpu.matmul %248, %249, %cst_104 {dimension_numbers = #tpu.dot_dimension_numbers<[1], [0], [0], [1], [0, 0, 1, 1], [], []>} : vector<16x32xf32>, vector<32x128xf32>, vector<16x128xf32> -> vector<16x128xf32>
    %251 = arith.addf %228, %250 : vector<16x128xf32>
    %252 = vector.extract_strided_slice %202 {offsets = [0, 64], sizes = [16, 32], strides = [1, 1]} : vector<16x128xf32> to vector<16x32xf32>
    %253 = vector.shape_cast %252 : vector<16x32xf32> to vector<2x8x32xf32>
    %254 = vector.extract_strided_slice %203 {offsets = [0, 64], sizes = [16, 32], strides = [1, 1]} : vector<16x128xf32> to vector<16x32xf32>
    %255 = vector.shape_cast %254 : vector<16x32xf32> to vector<2x8x32xf32>
    %256 = vector.extract_strided_slice %204 {offsets = [0, 64], sizes = [16, 32], strides = [1, 1]} : vector<16x128xf32> to vector<16x32xf32>
    %257 = vector.shape_cast %256 : vector<16x32xf32> to vector<2x8x32xf32>
    "tpu.trace_start"() <{level = 10 : i32, message = "bqd,bkd->bqk"}> : () -> ()
    %cst_105 = arith.constant dense<0.000000e+00> : vector<2x8x8xf32>
    %258 = tpu.matmul %253, %255, %cst_105 {dimension_numbers = #tpu.dot_dimension_numbers<[2], [2], [1], [1], [0, 0, 0, 1, 1, 1], [0], [0]>} : vector<2x8x32xf32>, vector<2x8x32xf32>, vector<2x8x8xf32> -> vector<2x8x8xf32>
    "tpu.trace_stop"() : () -> ()
    %cst_106 = arith.constant 0.176776692 : f32
    %259 = vector.broadcast %cst_106 : f32 to vector<2x8x8xf32>
    %260 = arith.mulf %258, %259 : vector<2x8x8xf32>
    %cst_107 = arith.constant dense<0xFF800000> : vector<2x8xf32>
    %261 = vector.multi_reduction <maximumf>, %260, %cst_107 [2] : vector<2x8x8xf32> to vector<2x8xf32>
    %262 = vector.shape_cast %261 : vector<2x8xf32> to vector<2x8x1xf32>
    %263 = vector.broadcast %262 : vector<2x8x1xf32> to vector<2x8x8xf32>
    %264 = arith.subf %260, %263 : vector<2x8x8xf32>
    %265 = math.exp %264 : vector<2x8x8xf32>
    %cst_108 = arith.constant dense<0.000000e+00> : vector<2x8xf32>
    %266 = vector.multi_reduction <add>, %265, %cst_108 [2] : vector<2x8x8xf32> to vector<2x8xf32>
    %267 = vector.shape_cast %266 : vector<2x8xf32> to vector<2x8x1xf32>
    %268 = vector.broadcast %267 : vector<2x8x1xf32> to vector<2x8x8xf32>
    %269 = arith.divf %265, %268 : vector<2x8x8xf32>
    "tpu.trace_start"() <{level = 10 : i32, message = "bqk,bkd->bqd"}> : () -> ()
    %cst_109 = arith.constant dense<0.000000e+00> : vector<2x8x32xf32>
    %270 = tpu.matmul %269, %257, %cst_109 {dimension_numbers = #tpu.dot_dimension_numbers<[2], [1], [1], [2], [0, 0, 0, 1, 1, 2], [0], [0]>} : vector<2x8x8xf32>, vector<2x8x32xf32>, vector<2x8x32xf32> -> vector<2x8x32xf32>
    "tpu.trace_stop"() : () -> ()
    %271 = vector.shape_cast %270 : vector<2x8x32xf32> to vector<16x32xf32>
    %272 = vector.extract_strided_slice %196 {offsets = [64, 0], sizes = [32, 128], strides = [1, 1]} : vector<128x128xf32> to vector<32x128xf32>
    %cst_110 = arith.constant dense<0.000000e+00> : vector<16x128xf32>
    %273 = tpu.matmul %271, %272, %cst_110 {dimension_numbers = #tpu.dot_dimension_numbers<[1], [0], [0], [1], [0, 0, 1, 1], [], []>} : vector<16x32xf32>, vector<32x128xf32>, vector<16x128xf32> -> vector<16x128xf32>
    %274 = arith.addf %251, %273 : vector<16x128xf32>
    %275 = vector.extract_strided_slice %202 {offsets = [0, 96], sizes = [16, 32], strides = [1, 1]} : vector<16x128xf32> to vector<16x32xf32>
    %276 = vector.shape_cast %275 : vector<16x32xf32> to vector<2x8x32xf32>
    %277 = vector.extract_strided_slice %203 {offsets = [0, 96], sizes = [16, 32], strides = [1, 1]} : vector<16x128xf32> to vector<16x32xf32>
    %278 = vector.shape_cast %277 : vector<16x32xf32> to vector<2x8x32xf32>
    %279 = vector.extract_strided_slice %204 {offsets = [0, 96], sizes = [16, 32], strides = [1, 1]} : vector<16x128xf32> to vector<16x32xf32>
    %280 = vector.shape_cast %279 : vector<16x32xf32> to vector<2x8x32xf32>
    "tpu.trace_start"() <{level = 10 : i32, message = "bqd,bkd->bqk"}> : () -> ()
    %cst_111 = arith.constant dense<0.000000e+00> : vector<2x8x8xf32>
    %281 = tpu.matmul %276, %278, %cst_111 {dimension_numbers = #tpu.dot_dimension_numbers<[2], [2], [1], [1], [0, 0, 0, 1, 1, 1], [0], [0]>} : vector<2x8x32xf32>, vector<2x8x32xf32>, vector<2x8x8xf32> -> vector<2x8x8xf32>
    "tpu.trace_stop"() : () -> ()
    %cst_112 = arith.constant 0.176776692 : f32
    %282 = vector.broadcast %cst_112 : f32 to vector<2x8x8xf32>
    %283 = arith.mulf %281, %282 : vector<2x8x8xf32>
    %cst_113 = arith.constant dense<0xFF800000> : vector<2x8xf32>
    %284 = vector.multi_reduction <maximumf>, %283, %cst_113 [2] : vector<2x8x8xf32> to vector<2x8xf32>
    %285 = vector.shape_cast %284 : vector<2x8xf32> to vector<2x8x1xf32>
    %286 = vector.broadcast %285 : vector<2x8x1xf32> to vector<2x8x8xf32>
    %287 = arith.subf %283, %286 : vector<2x8x8xf32>
    %288 = math.exp %287 : vector<2x8x8xf32>
    %cst_114 = arith.constant dense<0.000000e+00> : vector<2x8xf32>
    %289 = vector.multi_reduction <add>, %288, %cst_114 [2] : vector<2x8x8xf32> to vector<2x8xf32>
    %290 = vector.shape_cast %289 : vector<2x8xf32> to vector<2x8x1xf32>
    %291 = vector.broadcast %290 : vector<2x8x1xf32> to vector<2x8x8xf32>
    %292 = arith.divf %288, %291 : vector<2x8x8xf32>
    "tpu.trace_start"() <{level = 10 : i32, message = "bqk,bkd->bqd"}> : () -> ()
    %cst_115 = arith.constant dense<0.000000e+00> : vector<2x8x32xf32>
    %293 = tpu.matmul %292, %280, %cst_115 {dimension_numbers = #tpu.dot_dimension_numbers<[2], [1], [1], [2], [0, 0, 0, 1, 1, 2], [0], [0]>} : vector<2x8x8xf32>, vector<2x8x32xf32>, vector<2x8x32xf32> -> vector<2x8x32xf32>
    "tpu.trace_stop"() : () -> ()
    %294 = vector.shape_cast %293 : vector<2x8x32xf32> to vector<16x32xf32>
    %295 = vector.extract_strided_slice %196 {offsets = [96, 0], sizes = [32, 128], strides = [1, 1]} : vector<128x128xf32> to vector<32x128xf32>
    %cst_116 = arith.constant dense<0.000000e+00> : vector<16x128xf32>
    %296 = tpu.matmul %294, %295, %cst_116 {dimension_numbers = #tpu.dot_dimension_numbers<[1], [0], [0], [1], [0, 0, 1, 1], [], []>} : vector<16x32xf32>, vector<32x128xf32>, vector<16x128xf32> -> vector<16x128xf32>
    %297 = arith.addf %274, %296 : vector<16x128xf32>
    %298 = vector.broadcast %198 : vector<1x128xf32> to vector<16x128xf32>
    %299 = arith.addf %297, %298 : vector<16x128xf32>
    %300 = arith.addf %190, %299 : vector<16x128xf32>
    %c1_117 = arith.constant 1 : index
    %c0_118 = arith.constant 0 : index
    %c0_119 = arith.constant 0 : index
    %301 = vector.load %arg6[%c1_117, %c0_118, %c0_119] : memref<2x1x128xf32, #tpu.memory_space<vmem>>, vector<1x1x128xf32>
    %302 = vector.shape_cast %301 : vector<1x1x128xf32> to vector<1x128xf32>
    %c1_120 = arith.constant 1 : index
    %c0_121 = arith.constant 0 : index
    %c0_122 = arith.constant 0 : index
    %303 = vector.load %arg7[%c1_120, %c0_121, %c0_122] : memref<2x1x128xf32, #tpu.memory_space<vmem>>, vector<1x1x128xf32>
    %304 = vector.shape_cast %303 : vector<1x1x128xf32> to vector<1x128xf32>
    %cst_123 = arith.constant dense<0.000000e+00> : vector<16xf32>
    %305 = vector.multi_reduction <add>, %300, %cst_123 [1] : vector<16x128xf32> to vector<16xf32>
    %306 = vector.shape_cast %305 : vector<16xf32> to vector<16x1xf32>
    %cst_124 = arith.constant 1.280000e+02 : f32
    %307 = vector.broadcast %cst_124 : f32 to vector<16x1xf32>
    %308 = arith.divf %306, %307 : vector<16x1xf32>
    %309 = vector.broadcast %308 : vector<16x1xf32> to vector<16x128xf32>
    %310 = arith.subf %300, %309 : vector<16x128xf32>
    %311 = arith.mulf %310, %310 : vector<16x128xf32>
    %cst_125 = arith.constant dense<0.000000e+00> : vector<16xf32>
    %312 = vector.multi_reduction <add>, %311, %cst_125 [1] : vector<16x128xf32> to vector<16xf32>
    %313 = vector.shape_cast %312 : vector<16xf32> to vector<16x1xf32>
    %cst_126 = arith.constant 1.280000e+02 : f32
    %314 = vector.broadcast %cst_126 : f32 to vector<16x1xf32>
    %315 = arith.divf %313, %314 : vector<16x1xf32>
    %316 = vector.broadcast %308 : vector<16x1xf32> to vector<16x128xf32>
    %317 = arith.subf %300, %316 : vector<16x128xf32>
    %cst_127 = arith.constant 9.99999974E-6 : f32
    %318 = vector.broadcast %cst_127 : f32 to vector<16x1xf32>
    %319 = arith.addf %315, %318 : vector<16x1xf32>
    %320 = math.rsqrt %319 : vector<16x1xf32>
    %321 = vector.broadcast %320 : vector<16x1xf32> to vector<16x128xf32>
    %322 = arith.mulf %317, %321 : vector<16x128xf32>
    %323 = vector.broadcast %302 : vector<1x128xf32> to vector<16x128xf32>
    %324 = arith.mulf %322, %323 : vector<16x128xf32>
    %325 = vector.broadcast %304 : vector<1x128xf32> to vector<16x128xf32>
    %326 = arith.addf %324, %325 : vector<16x128xf32>
    %c1_128 = arith.constant 1 : index
    %c0_129 = arith.constant 0 : index
    %c0_130 = arith.constant 0 : index
    %327 = vector.load %arg10[%c1_128, %c0_129, %c0_130] : memref<2x128x128xf32, #tpu.memory_space<vmem>>, vector<1x128x128xf32>
    %328 = vector.shape_cast %327 : vector<1x128x128xf32> to vector<128x128xf32>
    %cst_131 = arith.constant dense<0.000000e+00> : vector<16x128xf32>
    %329 = tpu.matmul %326, %328, %cst_131 {dimension_numbers = #tpu.dot_dimension_numbers<[1], [0], [0], [1], [0, 0, 1, 1], [], []>} : vector<16x128xf32>, vector<128x128xf32>, vector<16x128xf32> -> vector<16x128xf32>
    %c1_132 = arith.constant 1 : index
    %c0_133 = arith.constant 0 : index
    %c0_134 = arith.constant 0 : index
    %330 = vector.load %arg11[%c1_132, %c0_133, %c0_134] : memref<2x1x128xf32, #tpu.memory_space<vmem>>, vector<1x1x128xf32>
    %331 = vector.shape_cast %330 : vector<1x1x128xf32> to vector<1x128xf32>
    %332 = vector.broadcast %331 : vector<1x128xf32> to vector<16x128xf32>
    %333 = arith.addf %329, %332 : vector<16x128xf32>
    %cst_135 = arith.constant 5.000000e-01 : f32
    %334 = vector.broadcast %cst_135 : f32 to vector<16x128xf32>
    %335 = arith.mulf %334, %333 : vector<16x128xf32>
    %cst_136 = arith.constant 0.707106769 : f32
    %336 = vector.broadcast %cst_136 : f32 to vector<16x128xf32>
    %337 = arith.mulf %333, %336 : vector<16x128xf32>
    %338 = math.erf %337 : vector<16x128xf32>
    %cst_137 = arith.constant 1.000000e+00 : f32
    %339 = vector.broadcast %cst_137 : f32 to vector<16x128xf32>
    %340 = arith.addf %339, %338 : vector<16x128xf32>
    %341 = arith.mulf %335, %340 : vector<16x128xf32>
    %c1_138 = arith.constant 1 : index
    %c0_139 = arith.constant 0 : index
    %c0_140 = arith.constant 0 : index
    %342 = vector.load %arg12[%c1_138, %c0_139, %c0_140] : memref<2x128x128xf32, #tpu.memory_space<vmem>>, vector<1x128x128xf32>
    %343 = vector.shape_cast %342 : vector<1x128x128xf32> to vector<128x128xf32>
    %cst_141 = arith.constant dense<0.000000e+00> : vector<16x128xf32>
    %344 = tpu.matmul %341, %343, %cst_141 {dimension_numbers = #tpu.dot_dimension_numbers<[1], [0], [0], [1], [0, 0, 1, 1], [], []>} : vector<16x128xf32>, vector<128x128xf32>, vector<16x128xf32> -> vector<16x128xf32>
    %c1_142 = arith.constant 1 : index
    %c0_143 = arith.constant 0 : index
    %c0_144 = arith.constant 0 : index
    %345 = vector.load %arg13[%c1_142, %c0_143, %c0_144] : memref<2x1x128xf32, #tpu.memory_space<vmem>>, vector<1x1x128xf32>
    %346 = vector.shape_cast %345 : vector<1x1x128xf32> to vector<1x128xf32>
    %347 = vector.broadcast %346 : vector<1x128xf32> to vector<16x128xf32>
    %348 = arith.addf %344, %347 : vector<16x128xf32>
    %349 = arith.addf %326, %348 : vector<16x128xf32>
    %c1_145 = arith.constant 1 : index
    %c0_146 = arith.constant 0 : index
    %c0_147 = arith.constant 0 : index
    %350 = vector.load %arg8[%c1_145, %c0_146, %c0_147] : memref<2x1x128xf32, #tpu.memory_space<vmem>>, vector<1x1x128xf32>
    %351 = vector.shape_cast %350 : vector<1x1x128xf32> to vector<1x128xf32>
    %c1_148 = arith.constant 1 : index
    %c0_149 = arith.constant 0 : index
    %c0_150 = arith.constant 0 : index
    %352 = vector.load %arg9[%c1_148, %c0_149, %c0_150] : memref<2x1x128xf32, #tpu.memory_space<vmem>>, vector<1x1x128xf32>
    %353 = vector.shape_cast %352 : vector<1x1x128xf32> to vector<1x128xf32>
    %cst_151 = arith.constant dense<0.000000e+00> : vector<16xf32>
    %354 = vector.multi_reduction <add>, %349, %cst_151 [1] : vector<16x128xf32> to vector<16xf32>
    %355 = vector.shape_cast %354 : vector<16xf32> to vector<16x1xf32>
    %cst_152 = arith.constant 1.280000e+02 : f32
    %356 = vector.broadcast %cst_152 : f32 to vector<16x1xf32>
    %357 = arith.divf %355, %356 : vector<16x1xf32>
    %358 = vector.broadcast %357 : vector<16x1xf32> to vector<16x128xf32>
    %359 = arith.subf %349, %358 : vector<16x128xf32>
    %360 = arith.mulf %359, %359 : vector<16x128xf32>
    %cst_153 = arith.constant dense<0.000000e+00> : vector<16xf32>
    %361 = vector.multi_reduction <add>, %360, %cst_153 [1] : vector<16x128xf32> to vector<16xf32>
    %362 = vector.shape_cast %361 : vector<16xf32> to vector<16x1xf32>
    %cst_154 = arith.constant 1.280000e+02 : f32
    %363 = vector.broadcast %cst_154 : f32 to vector<16x1xf32>
    %364 = arith.divf %362, %363 : vector<16x1xf32>
    %365 = vector.broadcast %357 : vector<16x1xf32> to vector<16x128xf32>
    %366 = arith.subf %349, %365 : vector<16x128xf32>
    %cst_155 = arith.constant 9.99999974E-6 : f32
    %367 = vector.broadcast %cst_155 : f32 to vector<16x1xf32>
    %368 = arith.addf %364, %367 : vector<16x1xf32>
    %369 = math.rsqrt %368 : vector<16x1xf32>
    %370 = vector.broadcast %369 : vector<16x1xf32> to vector<16x128xf32>
    %371 = arith.mulf %366, %370 : vector<16x128xf32>
    %372 = vector.broadcast %351 : vector<1x128xf32> to vector<16x128xf32>
    %373 = arith.mulf %371, %372 : vector<16x128xf32>
    %374 = vector.broadcast %353 : vector<1x128xf32> to vector<16x128xf32>
    %375 = arith.addf %373, %374 : vector<16x128xf32>
    %376 = vector.shape_cast %375 : vector<16x128xf32> to vector<2x8x128xf32>
    %377 = vector.extract_strided_slice %376 {offsets = [0, 7, 0], sizes = [2, 1, 128], strides = [1, 1, 1]} : vector<2x8x128xf32> to vector<2x1x128xf32>
    %378 = vector.shape_cast %377 : vector<2x1x128xf32> to vector<2x128xf32>
    %c0_156 = arith.constant 0 : index
    %c0_157 = arith.constant 0 : index
    %379 = vector.load %arg14[%c0_156, %c0_157] : memref<128x128xf32, #tpu.memory_space<vmem>>, vector<128x128xf32>
    %cst_158 = arith.constant dense<0.000000e+00> : vector<2x128xf32>
    %380 = tpu.matmul %378, %379, %cst_158 {dimension_numbers = #tpu.dot_dimension_numbers<[1], [0], [0], [1], [0, 0, 1, 1], [], []>} : vector<2x128xf32>, vector<128x128xf32>, vector<2x128xf32> -> vector<2x128xf32>
    %c0_159 = arith.constant 0 : index
    %c0_160 = arith.constant 0 : index
    %381 = vector.load %arg15[%c0_159, %c0_160] : memref<1x128xf32, #tpu.memory_space<vmem>>, vector<1x128xf32>
    %382 = vector.broadcast %381 : vector<1x128xf32> to vector<2x128xf32>
    %383 = arith.addf %380, %382 : vector<2x128xf32>
    %c0_161 = arith.constant 0 : index
    %c0_162 = arith.constant 0 : index
    %384 = vector.load %arg16[%c0_161, %c0_162] : memref<2x128xf32, #tpu.memory_space<vmem>>, vector<2x128xf32>
    tpu.vector_store %arg16[%c0_161, %c0_162], %383 {strides = array<i32>} : memref<2x128xf32, #tpu.memory_space<vmem>>, vector<2x128xf32>,
    return
  }
}

</mosaic_0001>

<bundles_post_ra>
// kernel: tpu_custom_call.1
= control target key start
LH: loop header
LB: loop body
LE: loop exit
PB: predicated region body
PF: predicated region fallthrough
CT: control target
= control target key end

     0   :  { %s6416_s0 = inlined_call_operand.hbm [shape: f32[2,8,128], index: 0, kind: input, shape index: {}]   ;;  %s6417_s1 = inlined_call_operand.hbm [shape: f32[8,128], index: 1, kind: input, shape index: {}]   ;;  %s6418_s2 = inlined_call_operand.hbm [shape: f32[2,128,384], index: 2, kind: input, shape index: {}]   ;;  %s6419_s3 = inlined_call_operand.hbm [shape: f32[2,1,384], index: 3, kind: input, shape index: {}]   ;;  %s6420_s4 = inlined_call_operand.hbm [shape: f32[2,128,128], index: 4, kind: input, shape index: {}]   ;;  %s6421_s5 = inlined_call_operand.vmem [shape: f32[2,1,128], index: 5, kind: input, shape index: {}]   ;;  %s6422_s6 = inlined_call_operand.vmem [shape: f32[2,1,128], index: 6, kind: input, shape index: {}]   ;;  %s6423_s7 = inlined_call_operand.vmem [shape: f32[2,1,128], index: 7, kind: input, shape index: {}]   ;;  %s6424_s8 = inlined_call_operand.vmem [shape: f32[2,1,128], index: 8, kind: input, shape index: {}]   ;;  %s6425_s9 = inlined_call_operand.vmem [shape: f32[2,1,128], index: 9, kind: input, shape index: {}]   ;;  %s6426_s10 = inlined_call_operand.hbm [shape: f32[2,128,128], index: 10, kind: input, shape index: {}]   ;;  %s6427_s11 = inlined_call_operand.vmem [shape: f32[2,1,128], index: 11, kind: input, shape index: {}]   ;;  %s6428_s12 = inlined_call_operand.hbm [shape: f32[2,128,128], index: 12, kind: input, shape index: {}]   ;;  %s6429_s13 = inlined_call_operand.vmem [shape: f32[2,1,128], index: 13, kind: input, shape index: {}]   ;;  %s6430_s14 = inlined_call_operand.hbm [shape: f32[128,128], index: 14, kind: input, shape index: {}]   ;;  %s6431_s15 = inlined_call_operand.vmem [shape: f32[1,128], index: 15, kind: input, shape index: {}]   ;;  %s6432_s16 = inlined_call_operand.hbm [shape: f32[2,128], index: 16, kind: output, shape index: {}]  }
   0x1   :  { %6433 = sst [smem:[#allocation23_spill]] %s6416_s0 }
   0x2   :  { %21 = vsyncpa [#allocation3], 0 }
   0x3   :  { %22 = vsyncpa [#allocation6], 0 }
   0x4   :  { %23 = vsyncpa [#allocation9], 0 }
   0x5   :  { %24 = vsyncpa [#allocation12], 0 }
   0x6   :  { %25 = vsyncpa [#allocation15], 0 }
   0x7   :  { %26 = vsyncpa [#allocation4], 0  ;;  %s5777_s21 = smov [#allocation5]   ;;  %s5778_s23 = smov [#allocation8]  }
   0x8   :  { %s45_s22 = sshll.u32 %s5777_s21, 4  ;;  %s66_s24 = sshll.u32 %s5778_s23, 4  ;;  %s46_s22 = int_to_ptr.vmem [resolvable:$true] %s45_s22  ;;  %s67_s24 = int_to_ptr.vmem [resolvable:$true] %s66_s24 }
   0x9   :  { %s5593_s25 = scalar_lea.vmem %s46_s22, 128  ;;  %p5598_p1 = scmp.lt.s32.totalorder %s46_s22, %s46_s22 }
   0xa   :  { %p5594_p0 = scmp.ne.s32.totalorder %s46_s22, %s5593_s25  ;;  %p5599_p2 = scmp.lt.s32.totalorder %s5593_s25, %s5593_s25 }
   0xc   :  { %p5600_p3 = por %p5599_p2, %p5598_p1 }
   0xe   :  { %p5601_p4 = pnand %p5600_p3, %p5594_p0 }
  0x10   :  { %5604 = shalt.err (!%p5601_p4)
}
  0x11   :  { %48 = dma.hbm_to_vmem [thread:$0]  %s6417_s1, 128, %s46_s22, [#allocation6]  }
  0x12   :  { %s5613_s28 = scalar_lea.vmem %s67_s24, 96  ;;  %p5618_p6 = scmp.lt.s32.totalorder %s67_s24, %s67_s24 }
  0x13   :  { %p5614_p5 = scmp.ne.s32.totalorder %s67_s24, %s5613_s28  ;;  %p5619_p7 = scmp.lt.s32.totalorder %s5613_s28, %s5613_s28 }
  0x15   :  { %p5620_p8 = por %p5619_p7, %p5618_p6 }
  0x17   :  { %p5621_p9 = pnand %p5620_p8, %p5614_p5 }
  0x19   :  { %5624 = shalt.err (!%p5621_p9)
}
  0x1a   :  { %s5779_s29 = smov 48   ;;  %s5780_s30 = smov 3  }
  0x1b   :  { %72 = dma.hbm_to_vmem [thread:$0]  %s6419_s3, 96, %s67_s24, [#allocation9], %s5779_s29, %s5779_s29, %s5780_s30  }
  0x1c   :  { %s5781_s18 = smov [#allocation11]   ;;  %s5782_s20 = smov [#allocation2]  }
  0x1d   :  { %s100_s19 = sshll.u32 %s5781_s18, 4  ;;  %s32_s21 = sshll.u32 %s5782_s20, 4  ;;  %s101_s19 = int_to_ptr.vmem [resolvable:$true] %s100_s19  ;;  %s33_s21 = int_to_ptr.vmem [resolvable:$true] %s32_s21 }
  0x1e   :  { %s5633_s1 = scalar_lea.vmem %s101_s19, 4096  ;;  %p5638_p11 = scmp.lt.s32.totalorder %s101_s19, %s101_s19 }
  0x1f   :  { %p5634_p10 = scmp.ne.s32.totalorder %s101_s19, %s5633_s1  ;;  %p5639_p12 = scmp.lt.s32.totalorder %s5633_s1, %s5633_s1 }
  0x21   :  { %p5640_p13 = por %p5639_p12, %p5638_p11 }
  0x23   :  { %p5641_p0 = pnand %p5640_p13, %p5634_p10 }
  0x25   :  { %5644 = shalt.err (!%p5641_p0)
}
  0x26   :  { %s5783_s22 = smov 128   ;;  %s5784_s23 = smov 8  }
  0x27   :  { %106 = dma.hbm_to_vmem [thread:$0]  %s6426_s10, 4096, %s101_s19, [#allocation12], %s5783_s22, %s5783_s22, %s5784_s23  }
  0x28   :  { %s5653_s24 = scalar_lea.vmem %s33_s21, 256  ;;  %p5658_p2 = scmp.lt.s32.totalorder %s33_s21, %s33_s21 }
  0x29   :  { %p5654_p1 = scmp.ne.s32.totalorder %s33_s21, %s5653_s24  ;;  %p5659_p3 = scmp.lt.s32.totalorder %s5653_s24, %s5653_s24 }
  0x2b   :  { %p5660_p4 = por %p5659_p3, %p5658_p2 }
  0x2d   :  { %p5661_p5 = pnand %p5660_p4, %p5654_p1 }
  0x2f   :  { %5664 = shalt.err (!%p5661_p5)
}
  0x30   :  { %s6434_s28 = sld [smem:[#allocation23_spill]]  ;;  %s5785_s29 = smov [#allocation7]  }
  0x31   :  { %s54_s30 = sshll.u32 %s5785_s29, 4  ;;  %s55_s30 = int_to_ptr.vmem [resolvable:$true] %s54_s30 }
  0x32   :  { %s5673_s0 = scalar_lea.vmem %s55_s30, 12288  ;;  %p5678_p7 = scmp.lt.s32.totalorder %s55_s30, %s55_s30 }
  0x33   :  { %p5674_p6 = scmp.ne.s32.totalorder %s55_s30, %s5673_s0  ;;  %p5679_p8 = scmp.lt.s32.totalorder %s5673_s0, %s5673_s0 }
  0x35   :  { %p5680_p9 = por %p5679_p8, %p5678_p7 }
  0x36   :  { %38 = dma.hbm_to_vmem [thread:$0]  %s6434_s28, 256, %s33_s21, [#allocation3], %s5783_s22, %s5783_s22, %s5784_s23  }
  0x37   :  { %p5681_p10 = pnand %p5680_p9, %p5674_p6 }
  0x39   :  { %5684 = shalt.err (!%p5681_p10)
}
  0x3a   :  { %s5786_s10 = smov 384   ;;  %s5787_s17 = smov 24  }
  0x3b   :  { %60 = dma.hbm_to_vmem [thread:$0]  %s6418_s2, 12288, %s55_s30, [#allocation6], %s5786_s10, %s5786_s10, %s5787_s17  }
  0x3c   :  { %s5788_s20 = smov [#allocation10]   ;;  %s5789_s21 = smov [#allocation13]  }
  0x3d   :  { %s78_s1 = sshll.u32 %s5788_s20, 4  ;;  %s114_s25 = sshll.u32 %s5789_s21, 4  ;;  %s79_s1 = int_to_ptr.vmem [resolvable:$true] %s78_s1  ;;  %s115_s25 = int_to_ptr.vmem [resolvable:$true] %s114_s25 }
  0x3e   :  { %s5693_s3 = scalar_lea.vmem %s79_s1, 4096  ;;  %p5698_p12 = scmp.lt.s32.totalorder %s79_s1, %s79_s1 }
  0x3f   :  { %p5694_p11 = scmp.ne.s32.totalorder %s79_s1, %s5693_s3  ;;  %p5699_p13 = scmp.lt.s32.totalorder %s5693_s3, %s5693_s3 }
  0x41   :  { %p5700_p0 = por %p5699_p13, %p5698_p12 }
  0x43   :  { %p5701_p1 = pnand %p5700_p0, %p5694_p11 }
  0x45   :  { %5704 = shalt.err (!%p5701_p1)
}
  0x46   :  { %84 = dma.hbm_to_vmem [thread:$0]  %s6420_s4, 4096, %s79_s1, [#allocation9], %s5783_s22, %s5783_s22, %s5784_s23  }
  0x47   :  { %s5713_s2 = scalar_lea.vmem %s115_s25, 4096  ;;  %p5718_p3 = scmp.lt.s32.totalorder %s115_s25, %s115_s25 }
  0x48   :  { %p5714_p2 = scmp.ne.s32.totalorder %s115_s25, %s5713_s2  ;;  %p5719_p4 = scmp.lt.s32.totalorder %s5713_s2, %s5713_s2 }
  0x4a   :  { %p5720_p5 = por %p5719_p4, %p5718_p3 }
  0x4c   :  { %p5721_p6 = pnand %p5720_p5, %p5714_p2 }
  0x4e   :  { %5724 = shalt.err (!%p5721_p6)
}
  0x4f   :  { %120 = dma.hbm_to_vmem [thread:$0]  %s6428_s12, 4096, %s115_s25, [#allocation12], %s5783_s22, %s5783_s22, %s5784_s23  }
  0x50   :  { %s5790_s29 = smov [#allocation14]  }
  0x51   :  { %s128_s30 = sshll.u32 %s5790_s29, 4  ;;  %s129_s30 = int_to_ptr.vmem [resolvable:$true] %s128_s30 }
  0x52   :  { %s5733_s0 = scalar_lea.vmem %s129_s30, 2048  ;;  %p5738_p8 = scmp.lt.s32.totalorder %s129_s30, %s129_s30 }
  0x53   :  { %p5734_p7 = scmp.ne.s32.totalorder %s129_s30, %s5733_s0  ;;  %p5739_p9 = scmp.lt.s32.totalorder %s5733_s0, %s5733_s0 }
  0x55   :  { %p5740_p10 = por %p5739_p9, %p5738_p8 }
  0x57   :  { %p5741_p11 = pnand %p5740_p10, %p5734_p7 }
  0x59   :  { %5744 = shalt.err (!%p5741_p11)
}
  0x5a   :  { %134 = dma.hbm_to_vmem [thread:$0]  %s6430_s14, 2048, %s129_s30, [#allocation15], %s5783_s22, %s5783_s22, %s5784_s23  }
  0x5b   :  { %5765 = dma.done.wait [#allocation3], 256  }
  0x5c   :  { %5766 = vsyncadd [#allocation3], 4294967040 }
  0x5d   :  { %5767 = dma.done.wait [#allocation6], 12416  }
  0x5e   :  { %5768 = vsyncadd [#allocation6], 4294954880 }
  0x5f   :  { %5769 = dma.done.wait [#allocation9], 4192  }
  0x60   :  { %5770 = vsyncadd [#allocation9], 4294963104 }
  0x61   :  { %5771 = dma.done.wait [#allocation12], 8192  }
  0x62   :  { %5772 = vsyncadd [#allocation12], 4294959104 }
  0x63   :  { %5773 = dma.done.wait [#allocation15], 2048  }
  0x64   :  { %5774 = vsyncadd [#allocation15], 4294965248  ;;  %v5791_v0 = vmov 0.0   ;;  %v212_v1 = vld [vmem:[#allocation7 + $0x170] sm:$0xff]  ;;  %v211_v2 = vld [vmem:[#allocation7 + $0x168] sm:$0xff]  ;;  %vm5792_vm0 = vmmov 0   ;;  %v233_v38 = vlaneseq }
  0x65   :  { %312 = vmatprep.mubr.f32.mxu0 %v5791_v0  ;;  %v209_v3 = vld [vmem:[#allocation7 + $0x158] sm:$0xff]  ;;  %248 = vmatprep.subr.mxu0 %v212_v1  ;;  %v208_v4 = vld [vmem:[#allocation7 + $0x150] sm:$0xff]  ;;  %v206_v5 = vld [vmem:[#allocation7 + $0x140] sm:$0xff]  ;;  %vm400_vm1 = vcmask 261120   ;;  %s5793_s12 = smov 96   ;;  %vm555_vm2 = vcmask 64512  }
  0x66   :  { %249 = vmatpush1.msra.mxu0 %v211_v2  ;;  %v205_v6 = vld [vmem:[#allocation7 + $0x138] sm:$0xff]  ;;  %v203_v7 = vld [vmem:[#allocation7 + $0x128] sm:$0xff]  ;;  %v202_v8 = vld [vmem:[#allocation7 + $0x120] sm:$0xff]  ;;  %v5933_v39 = vshrl.u32 %v233_v38, 7  ;;  %s5794_s14 = smov 64   ;;  %s5795_s22 = smov 32  }
  0x67   :  { %250 = vmatprep.subr.mxu0 %v209_v3  ;;  %v200_v9 = vld [vmem:[#allocation7 + $0x110] sm:$0xff]  ;;  %v199_v10 = vld [vmem:[#allocation7 + $0x108] sm:$0xff]  ;;  %v197_v11 = vld [vmem:[#allocation7 + $0xf8] sm:$0xff]  ;;  %vm4568_vm3 = vcmask 1041409   ;;  %s5796_s18 = smov [#allocation16]  }
  0x68   :  { %251 = vmatpush1.msra.mxu0 %v208_v4  ;;  %v196_v12 = vld [vmem:[#allocation7 + $0xf0] sm:$0xff]  ;;  %v194_v13 = vld [vmem:[#allocation7 + $0xe0] sm:$0xff]  ;;  %v161_v14 = vld [vmem:[#allocation2] sm:$0xff]  ;;  %v239_v40 = vsub.s32 1, %v5933_v39  ;;  %v235_v42 = vsub.s32 0, %v5933_v39  ;;  %s4648_s19 = sshll.u32 %s5796_s18, 4  ;;  %s4649_s19 = int_to_ptr.vmem [resolvable:$true] %s4648_s19 }
  0x69   :  { %252 = vmatprep.subr.mxu0 %v206_v5  ;;  %v193_v15 = vld [vmem:[#allocation7 + $0xd8] sm:$0xff]  ;;  %v191_v17 = vld [vmem:[#allocation7 + $0xc8] sm:$0xff]  ;;  %v190_v19 = vld [vmem:[#allocation7 + $0xc0] sm:$0xff]  ;;  %p5750_p13 = scmp.lt.s32.totalorder %s4649_s19, %s4649_s19 }
  0x6a   :  { %253 = vmatpush1.msra.mxu0 %v205_v6  ;;  %v163_v16 = vld [vmem:[#allocation5] sm:$0xff]  ;;  %v188_v20 = vld [vmem:[#allocation7 + $0xb0] sm:$0xff]  ;;  %v187_v21 = vld [vmem:[#allocation7 + $0xa8] sm:$0xff] }
  0x6b   :  { %254 = vmatprep.subr.mxu0 %v203_v7  ;;  %v5922_v18 = vadd.f32 %v163_v16, %v161_v14  ;;  %v185_v22 = vld [vmem:[#allocation7 + $0x98] sm:$0xff]  ;;  %v184_v23 = vld [vmem:[#allocation7 + $0x90] sm:$0xff]  ;;  %v182_v24 = vld [vmem:[#allocation7 + $0x80] sm:$0xff] }
  0x6c   :  { %255 = vmatpush1.msra.mxu0 %v202_v8  ;;  %v181_v25 = vld [vmem:[#allocation7 + $0x78] sm:$0xff]  ;;  %v179_v26 = vld [vmem:[#allocation7 + $0x68] sm:$0xff]  ;;  %v178_v27 = vld [vmem:[#allocation7 + $0x60] sm:$0xff] }
  0x6d   :  { %256 = vmatprep.subr.mxu0 %v200_v9  ;;  %5016 = vmatprep.mubr.f32.mxu1 %v5922_v18  ;;  %v176_v28 = vld [vmem:[#allocation7 + $0x50] sm:$0xff]  ;;  %v175_v29 = vld [vmem:[#allocation7 + $0x48] sm:$0xff]  ;;  %v173_v30 = vld [vmem:[#allocation7 + $0x38] sm:$0xff] }
  0x6e   :  { %257 = vmatpush1.msra.mxu0 %v199_v10  ;;  %v172_v31 = vld [vmem:[#allocation7 + $0x30] sm:$0xff]  ;;  %v170_v32 = vld [vmem:[#allocation7 + $0x20] sm:$0xff]  ;;  %v169_v33 = vld [vmem:[#allocation7 + $0x18] sm:$0xff] }
  0x6f   :  { %258 = vmatprep.subr.mxu0 %v197_v11  ;;  %v167_v34 = vld [vmem:[#allocation7 + $0x8] sm:$0xff]  ;;  %v166_v35 = vld [vmem:[#allocation7] sm:$0xff]  ;;  %v162_v36 = vld [vmem:[#allocation2 + $0x8] sm:$0xff] }
  0x70   :  { %259 = vmatpush1.msra.mxu0 %v196_v12  ;;  %v5926_v37 = vadd.f32 %v163_v16, %v162_v36  ;;  %v5936_v41 = vld [vmem:[#allocation8] sm:$0x7]  ;;  %v213_v53 = vld [vmem:[#allocation7 + $0x178] sm:$0xff]  ;;  %v207_v55 = vld [vmem:[#allocation7 + $0x148] sm:$0xff] }
  0x71   :  { %260 = vmatprep.subr.mxu0 %v194_v13  ;;  %v240_v43 = vrot.slane %v5936_v41, %v239_v40  ;;  %v236_v45 = vrot.slane %v5936_v41, %v235_v42  ;;  %v210_v54 = vld [vmem:[#allocation7 + $0x160] sm:$0xff]  ;;  %4984 = vmatprep.subr.mxu1 %v213_v53  ;;  %v204_v56 = vld [vmem:[#allocation7 + $0x130] sm:$0xff]  ;;  %v201_v57 = vld [vmem:[#allocation7 + $0x118] sm:$0xff] }
  0x72   :  { %261 = vmatpush1.msra.mxu0 %v193_v15  ;;  %4985 = vmatpush3.msra.mxu1 %v213_v53  ;;  %v198_v58 = vld [vmem:[#allocation7 + $0x100] sm:$0xff]  ;;  %v195_v59 = vld [vmem:[#allocation7 + $0xe8] sm:$0xff]  ;;  %v192_v60 = vld [vmem:[#allocation7 + $0xd0] sm:$0xff] }
  0x73   :  { %262 = vmatprep.subr.mxu0 %v191_v17  ;;  %4986 = vmatprep.subr.mxu1 %v210_v54  ;;  %v189_v61 = vld [vmem:[#allocation7 + $0xb8] sm:$0xff]  ;;  %v186_v62 = vld [vmem:[#allocation7 + $0xa0] sm:$0xff]  ;;  %v183_v63 = vld [vmem:[#allocation7 + $0x88] sm:$0xff] }
  0x74   :  { %263 = vmatpush1.msra.mxu0 %v190_v19  ;;  %4987 = vmatpush3.msra.mxu1 %v210_v54  ;;  %v180_v1 = vld [vmem:[#allocation7 + $0x70] sm:$0xff]  ;;  %v177_v2 = vld [vmem:[#allocation7 + $0x58] sm:$0xff]  ;;  %v174_v3 = vld [vmem:[#allocation7 + $0x40] sm:$0xff] }
  0x75   :  { %264 = vmatprep.subr.mxu0 %v188_v20  ;;  %4988 = vmatprep.subr.mxu1 %v207_v55  ;;  %v171_v4 = vld [vmem:[#allocation7 + $0x28] sm:$0xff]  ;;  %v168_v5 = vld [vmem:[#allocation7 + $0x10] sm:$0xff] }
  0x76   :  { %265 = vmatpush1.msra.mxu0 %v187_v21  ;;  %4989 = vmatpush3.msra.mxu1 %v207_v55 }
  0x77   :  { %266 = vmatprep.subr.mxu0 %v185_v22  ;;  %4990 = vmatprep.subr.mxu1 %v204_v56 }
  0x78   :  { %267 = vmatpush1.msra.mxu0 %v184_v23  ;;  %4991 = vmatpush3.msra.mxu1 %v204_v56 }
  0x79   :  { %268 = vmatprep.subr.mxu0 %v182_v24  ;;  %4992 = vmatprep.subr.mxu1 %v201_v57 }
  0x7a   :  { %269 = vmatpush1.msra.mxu0 %v181_v25  ;;  %4993 = vmatpush3.msra.mxu1 %v201_v57  ;;  %v243_v25 = vsub.s32 2, %v5933_v39 }
  0x7b   :  { %270 = vmatprep.subr.mxu0 %v179_v26  ;;  %4994 = vmatprep.subr.mxu1 %v198_v58 }
  0x7c   :  { %271 = vmatpush1.msra.mxu0 %v178_v27  ;;  %4995 = vmatpush3.msra.mxu1 %v198_v58  ;;  %v244_v27 = vrot.slane %v5936_v41, %v243_v25 }
  0x7d   :  { %272 = vmatprep.subr.mxu0 %v176_v28  ;;  %4996 = vmatprep.subr.mxu1 %v195_v59 }
  0x7e   :  { %273 = vmatpush1.msra.mxu0 %v175_v29  ;;  %4997 = vmatpush3.msra.mxu1 %v195_v59 }
  0x7f   :  { %274 = vmatprep.subr.mxu0 %v173_v30  ;;  %4998 = vmatprep.subr.mxu1 %v192_v60 }
  0x80   :  { %275 = vmatpush1.msra.mxu0 %v172_v31  ;;  %4999 = vmatpush3.msra.mxu1 %v192_v60 }
  0x81   :  { %276 = vmatprep.subr.mxu0 %v170_v32  ;;  %5000 = vmatprep.subr.mxu1 %v189_v61 }
  0x82   :  { %277 = vmatpush1.msra.mxu0 %v169_v33  ;;  %5001 = vmatpush3.msra.mxu1 %v189_v61 }
  0x83   :  { %278 = vmatprep.subr.mxu0 %v167_v34  ;;  %5002 = vmatprep.subr.mxu1 %v186_v62 }
  0x84   :  { %279 = vmatpush1.msra.mxu0 %v166_v35  ;;  %5003 = vmatpush3.msra.mxu1 %v186_v62 }
  0x85   :  { %313 = vmatmul.mubr.f32.vlgmr.msra.gmra.mxu0 %v5922_v18  ;;  %5019 = vmatprep.subr.mxu0 %v5791_v0 }
  0x86   :  { %318 = vmatprep.mubr.f32.mxu0 %v5791_v0  ;;  %5004 = vmatprep.subr.mxu1 %v183_v63 }
  0x87   :  { %5005 = vmatpush3.msra.mxu1 %v183_v63 }
  0x88   :  { %5006 = vmatprep.subr.mxu1 %v180_v1 }
  0x89   :  { %319 = vmatmul.mubr.f32.gmra.mxu0 %v5926_v37  ;;  %5007 = vmatpush3.msra.mxu1 %v180_v1 }
  0x8a   :  { %5021 = vmatprep.mubr.msk.f32.mxu0 %vm5792_vm0, %v5791_v0  ;;  %5008 = vmatprep.subr.mxu1 %v177_v2 }
  0x8b   :  { %5009 = vmatpush3.msra.mxu1 %v177_v2 }
  0x8c   :  { %5010 = vmatprep.subr.mxu1 %v174_v3 }
  0x8d   :  { %5011 = vmatpush3.msra.mxu1 %v174_v3 }
  0x8e   :  { %5012 = vmatprep.subr.mxu1 %v171_v4 }
  0x8f   :  { %5013 = vmatpush3.msra.mxu1 %v171_v4 }
  0x90   :  { %5014 = vmatprep.subr.mxu1 %v168_v5 }
  0x91   :  { %5015 = vmatpush3.msra.mxu1 %v168_v5 }
  0x92   :  { %5017 = vmatmul.mubr.f32.vlgmr.msra.gmra.mxu1 %v5926_v37  ;;  %5029 = vmatprep.subr.mxu1 %v5791_v0 }
  0x93   :  { %5031 = vmatprep.mubr.msk.f32.mxu1 %vm5792_vm0, %v5791_v0 }
 0x145   :  { %v314_v44 = vpop.f32.mrf.mxu0 }
 0x146   :  { %v5949_v49 = vadd.f32 %v314_v44, %v236_v45 }
 0x147   :  { %v316_v46 = vpop.f32.mrf.mxu0 }
 0x148   :  { %v5945_v47 = vadd.f32 %v316_v46, %v240_v43 }
 0x149   :  { %v320_v48 = vpop.f32.mrf.mxu0 }
 0x14a   :  { %5020 = vmatpush3.xpose.msk.msra.mxu0 %vm400_vm1, %v5945_v47  ;;  %v5960_v52 = vadd.f32 %v320_v48, %v236_v45 }
 0x14b   :  { %v322_v50 = vpop.f32.mrf.mxu0  ;;  %5024 = vmatprep.subr.mxu0 %v5791_v0 }
 0x14c   :  { %v5952_v51 = vadd.f32 %v322_v50, %v240_v43 }
 0x14d   :  { %5022 = vmatmul.mubr.msk.f32.vlgmr.msra.gmra.mxu0 %vm400_vm1, %v5949_v49 }
 0x14e   :  { %804 = vrot.lane.b32.xlu1 %v5952_v51, %s5793_s12  ;;  %5025 = vmatpush3.xpose.msk.msra.mxu0 %vm400_vm1, %v5952_v51 }
 0x14f   :  { %5026 = vmatprep.mubr.msk.f32.mxu0 %vm5792_vm0, %v5791_v0  ;;  %5034 = vmatprep.subr.mxu0 %v5791_v0 }
 0x151   :  { %5027 = vmatmul.mubr.msk.f32.vlgmr.msra.gmra.mxu0 %vm400_vm1, %v5960_v52 }
 0x152   :  { %724 = vrot.lane.b32.xlu1 %v5949_v49, %s5793_s12  ;;  %5036 = vmatprep.mubr.msk.f32.mxu0 %vm5792_vm0, %v5791_v0  ;;  %v5018_v26 = vpop.f32.mrf.mxu1 }
 0x153   :  { %v5987_v29 = vadd.f32 %v5018_v26, %v244_v27 }
 0x154   :  { %v391_v28 = vpop.f32.mrf.mxu1 }
 0x155   :  { %v5989_v30 = vadd.f32 %v391_v28, %v244_v27  ;;  %5035 = vmatpush3.msra.mxu0 %v5987_v29 }
 0x156   :  { %5044 = vmatprep.subr.mxu0 %v5791_v0 }
 0x157   :  { %5030 = vmatpush3.msra.mxu1 %v5989_v30 }
 0x158   :  { %5039 = vmatprep.subr.mxu1 %v5791_v0 }
 0x1c0   :  { %v805_v31 = vpop.permute.xlu1 %804 }
 0x1c4   :  { %v725_v32 = vpop.permute.xlu1 %724 }
 0x20d   :  { %v473_v6 = vpop.f32.mrf.mxu0 }
 0x20e   :  { %v553_v7 = vmul.f32 0.17677669, %v473_v6 }
 0x20f   :  { %v5023_v8 = vpop.f32.mrf.mxu0 }
 0x210   :  { %v556_v9 = vsel %vm555_vm2, %v553_v7, -inf }
 0x211   :  { %557 = vmax.xlane.f32.xlu0 %v556_v9  ;;  %v549_v10 = vpop.f32.mrf.mxu0  ;;  %v222_v9 = vld [vmem:[#allocation10 + $0x38] sm:$0xff] }
 0x212   :  { %v554_v11 = vmul.f32 0.17677669, %v549_v10 }
 0x213   :  { %v5028_v12 = vpop.f32.mrf.mxu0 }
 0x214   :  { %v559_v13 = vsel %vm555_vm2, %v554_v11, -inf }
 0x215   :  { %560 = vmax.xlane.f32.xlu0 %v559_v13 }
 0x22b   :  { %726 = vrot.lane.b32.xlu0 %v5945_v47, %s5793_s12 }
 0x29a   :  { %v558_v14 = vpop.xlane.xlu0 %557 }
 0x29b   :  { %v562_v15 = vsub.f32 %v553_v7, %v558_v14 }
 0x29d   :  { %v564_v16 = vmul.f32 1.442695, %v562_v15 }
 0x29e   :  { %v561_v17 = vpop.xlane.xlu0 %560 }
 0x29f   :  { %5497 = vpow2.f32 %v564_v16  ;;  %v563_v19 = vsub.f32 %v554_v11, %v561_v17 }
 0x2a1   :  { %v566_v20 = vmul.f32 1.442695, %v563_v19 }
 0x2a2   :  { %v727_v38 = vpop.permute.xlu0 %726 }
 0x2a3   :  { %5499 = vpow2.f32 %v566_v20 }
 0x2ac   :  { %v5498_v21 = vpop.eup %5497 }
 0x2ad   :  { %v568_v22 = vsel %vm555_vm2, %v5498_v21, 0.0 }
 0x2ae   :  { %569 = vadd.xlane.f32.xlu1 %v568_v22  ;;  %v220_v22 = vld [vmem:[#allocation10 + $0x28] sm:$0xff] }
 0x2b0   :  { %v5500_v23 = vpop.eup %5499 }
 0x2b1   :  { %v571_v24 = vsel %vm555_vm2, %v5500_v23, 0.0 }
 0x2b2   :  { %572 = vadd.xlane.f32.xlu1 %v571_v24  ;;  %v218_v24 = vld [vmem:[#allocation10 + $0x18] sm:$0xff] }
 0x2c3   :  { %802 = vrot.lane.b32.xlu1 %v5960_v52, %s5793_s12 }
 0x337   :  { %v570_v33 = vpop.xlane.xlu1 %569 }
 0x338   :  { %5501 = vrcp.f32 %v570_v33 }
 0x33b   :  { %v573_v34 = vpop.xlane.xlu1 %572 }
 0x33c   :  { %5503 = vrcp.f32 %v573_v34 }
 0x33f   :  { %v803_v44 = vpop.permute.xlu1 %802 }
 0x345   :  { %v5502_v35 = vpop.eup %5501 }
 0x346   :  { %v575_v36 = vmul.f32 %v5502_v35, %v5498_v21  ;;  %v221_v21 = vld [vmem:[#allocation10 + $0x30] sm:$0xff]  ;;  %v216_v35 = vld [vmem:[#allocation10 + $0x8] sm:$0xff] }
 0x348   :  { %5032 = vmatmul.mubr.msk.f32.vlgmr.msra.gmra.mxu1 %vm555_vm2, %v575_v36  ;;  %v215_v36 = vld [vmem:[#allocation10] sm:$0xff] }
 0x349   :  { %v5504_v41 = vpop.eup %5503  ;;  %5040 = vmatpush3.xpose.msk.msra.mxu1 %vm400_vm1, %v727_v38  ;;  %5041 = vmatprep.mubr.msk.f32.mxu1 %vm5792_vm0, %v5791_v0 }
 0x34a   :  { %v577_v43 = vmul.f32 %v5504_v41, %v5500_v23  ;;  %5049 = vmatprep.subr.mxu1 %v5791_v0  ;;  %v219_v23 = vld [vmem:[#allocation10 + $0x20] sm:$0xff] }
 0x34c   :  { %5037 = vmatmul.mubr.msk.f32.vlgmr.msra.gmra.mxu0 %vm555_vm2, %v577_v43  ;;  %5042 = vmatmul.mubr.msk.f32.vlgmr.msra.gmra.mxu1 %vm400_vm1, %v725_v32  ;;  %v217_v32 = vld [vmem:[#allocation10 + $0x10] sm:$0xff] }
 0x34d   :  { %5045 = vmatpush3.xpose.msk.msra.mxu0 %vm400_vm1, %v805_v31  ;;  %5046 = vmatprep.mubr.msk.f32.mxu0 %vm5792_vm0, %v5791_v0 }
 0x34e   :  { %5054 = vmatprep.subr.mxu0 %v5791_v0  ;;  %5051 = vmatprep.mubr.msk.f32.mxu1 %vm5792_vm0, %v5791_v0 }
 0x350   :  { %5047 = vmatmul.mubr.msk.f32.vlgmr.msra.gmra.mxu0 %vm400_vm1, %v803_v44 }
 0x351   :  { %5056 = vmatprep.mubr.msk.f32.mxu0 %vm5792_vm0, %v5791_v0 }
 0x408   :  { %v6011_v45 = vpop.f32.mrf.mxu1 }
 0x40a   :  { %v5033_v46 = vpop.f32.mrf.mxu1 }
 0x40c   :  { %v6013_v48 = vpop.f32.mrf.mxu0  ;;  %v798_v50 = vpop.f32.mrf.mxu1 }
 0x40d   :  { %v880_v53 = vmul.f32 0.17677669, %v798_v50 }
 0x40e   :  { %v5038_v54 = vpop.f32.mrf.mxu0  ;;  %v5043_v55 = vpop.f32.mrf.mxu1 }
 0x40f   :  { %v882_v56 = vsel %vm555_vm2, %v880_v53, -inf }
 0x410   :  { %883 = vmax.xlane.f32.xlu0 %v882_v56  ;;  %v876_v57 = vpop.f32.mrf.mxu0 }
 0x411   :  { %v881_v58 = vmul.f32 0.17677669, %v876_v57 }
 0x412   :  { %v5048_v59 = vpop.f32.mrf.mxu0 }
 0x413   :  { %v885_v60 = vsel %vm555_vm2, %v881_v58, -inf }
 0x414   :  { %886 = vmax.xlane.f32.xlu1 %v885_v60 }
 0x425   :  { %982 = vrot.lane.b32.xlu1 %v5987_v29, %s5793_s12 }
 0x429   :  { %1300 = vrot.lane.b32.xlu1 %v5952_v51, %s5794_s14 }
 0x42d   :  { %1298 = vrot.lane.b32.xlu1 %v5960_v52, %s5794_s14 }
 0x431   :  { %1220 = vrot.lane.b32.xlu1 %v5949_v49, %s5794_s14 }
 0x435   :  { %1637 = vrot.lane.b32.xlu1 %v5945_v47, %s5795_s22 }
 0x499   :  { %v884_v61 = vpop.xlane.xlu0 %883 }
 0x49a   :  { %v888_v62 = vsub.f32 %v880_v53, %v884_v61 }
 0x49c   :  { %v890_v63 = vmul.f32 1.442695, %v888_v62 }
 0x49d   :  { %v887_v1 = vpop.xlane.xlu1 %886 }
 0x49e   :  { %5505 = vpow2.f32 %v890_v63  ;;  %v889_v2 = vsub.f32 %v881_v58, %v887_v1 }
 0x4a0   :  { %v892_v3 = vmul.f32 1.442695, %v889_v2 }
 0x4a1   :  { %v983_v4 = vpop.permute.xlu1 %982 }
 0x4a2   :  { %5507 = vpow2.f32 %v892_v3  ;;  %5055 = vmatpush3.msra.mxu0 %v983_v4 }
 0x4a3   :  { %5059 = vmatprep.subr.mxu0 %v222_v9 }
 0x4a5   :  { %v1301_v12 = vpop.permute.xlu1 %1300 }
 0x4a9   :  { %v1299_v15 = vpop.permute.xlu1 %1298 }
 0x4ab   :  { %v5506_v5 = vpop.eup %5505 }
 0x4ac   :  { %v894_v6 = vsel %vm555_vm2, %v5506_v5, 0.0 }
 0x4ad   :  { %895 = vadd.xlane.f32.xlu0 %v894_v6  ;;  %v1221_v20 = vpop.permute.xlu1 %1220 }
 0x4af   :  { %v5508_v7 = vpop.eup %5507 }
 0x4b0   :  { %v897_v8 = vsel %vm555_vm2, %v5508_v7, 0.0 }
 0x4b1   :  { %898 = vadd.xlane.f32.xlu0 %v897_v8 }
 0x4c7   :  { %905 = vrot.lane.b32.xlu0 %v5989_v30, %s5793_s12 }
 0x4cb   :  { %1222 = vrot.lane.b32.xlu0 %v5945_v47, %s5794_s14 }
 0x536   :  { %v896_v10 = vpop.xlane.xlu0 %895 }
 0x537   :  { %5509 = vrcp.f32 %v896_v10 }
 0x53a   :  { %v899_v11 = vpop.xlane.xlu0 %898 }
 0x53b   :  { %5511 = vrcp.f32 %v899_v11 }
 0x53e   :  { %v906_v13 = vpop.permute.xlu0 %905 }
 0x53f   :  { %5050 = vmatpush3.msra.mxu1 %v906_v13 }
 0x540   :  { %5081 = vmatprep.subr.mxu1 %v5791_v0 }
 0x542   :  { %v1223_v17 = vpop.permute.xlu0 %1222 }
 0x544   :  { %v5510_v14 = vpop.eup %5509 }
 0x545   :  { %v901_v16 = vmul.f32 %v5510_v14, %v5506_v5 }
 0x547   :  { %5052 = vmatmul.mubr.msk.f32.vlgmr.msra.gmra.mxu1 %vm555_vm2, %v901_v16 }
 0x548   :  { %v5512_v19 = vpop.eup %5511  ;;  %5082 = vmatpush3.xpose.msk.msra.mxu1 %vm400_vm1, %v1223_v17  ;;  %5083 = vmatprep.mubr.msk.f32.mxu1 %vm5792_vm0, %v5791_v0 }
 0x549   :  { %v903_v47 = vmul.f32 %v5512_v19, %v5508_v7  ;;  %5091 = vmatprep.subr.mxu1 %v5791_v0 }
 0x54b   :  { %5057 = vmatmul.mubr.msk.f32.vlgmr.msra.gmra.mxu0 %vm555_vm2, %v903_v47  ;;  %5084 = vmatmul.mubr.msk.f32.vlgmr.msra.gmra.mxu1 %vm400_vm1, %v1221_v20 }
 0x54c   :  { %5060 = vmatpush3.msra.mxu0 %v222_v9  ;;  %5093 = vmatprep.mubr.msk.f32.mxu1 %vm5792_vm0, %v5791_v0 }
 0x54d   :  { %5061 = vmatprep.subr.mxu0 %v221_v21 }
 0x54e   :  { %5062 = vmatpush3.msra.mxu0 %v221_v21 }
 0x54f   :  { %5063 = vmatprep.subr.mxu0 %v220_v22 }
 0x550   :  { %5064 = vmatpush3.msra.mxu0 %v220_v22 }
 0x551   :  { %5065 = vmatprep.subr.mxu0 %v219_v23 }
 0x552   :  { %5066 = vmatpush3.msra.mxu0 %v219_v23  ;;  %v226_v23 = vld [vmem:[#allocation10 + $0x58] sm:$0xff] }
 0x553   :  { %5070 = vmatprep.subr.mxu0 %v218_v24 }
 0x607   :  { %v977_v26 = vpop.f32.mrf.mxu1 }
 0x608   :  { %5067 = vmatprep.mubr.msk.f32.mxu0 %vm400_vm1, %v977_v26  ;;  %v224_v26 = vld [vmem:[#allocation10 + $0x48] sm:$0xff] }
 0x609   :  { %v5053_v27 = vpop.f32.mrf.mxu1 }
 0x60a   :  { %v223_v27 = vld [vmem:[#allocation10 + $0x40] sm:$0xff] }
 0x60b   :  { %v1054_v28 = vpop.f32.mrf.mxu0  ;;  %v1294_v31 = vpop.f32.mrf.mxu1 }
 0x60c   :  { %5068 = vmatmul.mubr.msk.f32.vlgmr.msra.gmra.mxu0 %vm400_vm1, %v1054_v28  ;;  %v1376_v61 = vmul.f32 0.17677669, %v1294_v31 }
 0x60d   :  { %5071 = vmatpush3.msra.mxu0 %v218_v24  ;;  %v5058_v33 = vpop.f32.mrf.mxu0  ;;  %5078 = vmatprep.mubr.msk.f32.mxu0 %vm400_vm1, %v6011_v45  ;;  %v5085_v34 = vpop.f32.mrf.mxu1  ;;  %v225_v24 = vld [vmem:[#allocation10 + $0x50] sm:$0xff] }
 0x60e   :  { %5072 = vmatprep.subr.mxu0 %v217_v32 }
 0x60f   :  { %5073 = vmatpush3.msra.mxu0 %v217_v32 }
 0x610   :  { %5074 = vmatprep.subr.mxu0 %v216_v35 }
 0x611   :  { %5075 = vmatpush3.msra.mxu0 %v216_v35 }
 0x612   :  { %5076 = vmatprep.subr.mxu0 %v215_v36 }
 0x613   :  { %5077 = vmatpush3.msra.mxu0 %v215_v36 }
 0x614   :  { %5079 = vmatmul.mubr.msk.f32.vlgmr.msra.gmra.mxu0 %vm400_vm1, %v6013_v48  ;;  %5086 = vmatprep.subr.mxu0 %v5791_v0 }
 0x615   :  { %5087 = vmatpush3.xpose.msk.msra.mxu0 %vm400_vm1, %v1301_v12  ;;  %5088 = vmatprep.mubr.msk.f32.mxu0 %vm5792_vm0, %v5791_v0 }
 0x616   :  { %5096 = vmatprep.subr.mxu0 %v5791_v0 }
 0x618   :  { %5089 = vmatmul.mubr.msk.f32.vlgmr.msra.gmra.mxu0 %vm400_vm1, %v1299_v15 }
 0x619   :  { %5098 = vmatprep.mubr.msk.f32.mxu0 %vm5792_vm0, %v5791_v0 }
 0x6cc   :  { %v5069_v38 = vpop.f32.mrf.mxu0 }
 0x6ce   :  { %v1130_v41 = vpop.f32.mrf.mxu0 }
 0x6d4   :  { %v5080_v43 = vpop.f32.mrf.mxu0 }
 0x6d5   :  { %v6057_v44 = vadd.f32 %v5080_v43, %v5069_v38 }
 0x6d6   :  { %v1211_v45 = vpop.f32.mrf.mxu0 }
 0x6d7   :  { %v6059_v46 = vadd.f32 %v1211_v45, %v1130_v41 }
 0x6d8   :  { %v1372_v48 = vpop.f32.mrf.mxu0 }
 0x6d9   :  { %v1377_v50 = vmul.f32 0.17677669, %v1372_v48 }
 0x6da   :  { %v5090_v53 = vpop.f32.mrf.mxu0 }
 0x6db   :  { %v1381_v54 = vsel %vm555_vm2, %v1377_v50, -inf }
 0x6dc   :  { %1382 = vmax.xlane.f32.xlu0 %v1381_v54  ;;  %v230_v54 = vld [vmem:[#allocation10 + $0x78] sm:$0xff] }
 0x6f2   :  { %1476 = vrot.lane.b32.xlu0 %v5987_v29, %s5794_s14 }
 0x6f6   :  { %1635 = vrot.lane.b32.xlu0 %v5949_v49, %s5795_s22  ;;  %v1378_v49 = vsel %vm555_vm2, %v1376_v61, -inf }
 0x6fa   :  { %1713 = vrot.lane.b32.xlu0 %v5960_v52, %s5795_s22  ;;  %v1638_v52 = vpop.permute.xlu1 %1637 }
 0x765   :  { %v1383_v55 = vpop.xlane.xlu0 %1382 }
 0x766   :  { %v1385_v56 = vsub.f32 %v1377_v50, %v1383_v55 }
 0x768   :  { %v1388_v57 = vmul.f32 1.442695, %v1385_v56 }
 0x769   :  { %v1477_v58 = vpop.permute.xlu0 %1476 }
 0x76a   :  { %5513 = vpow2.f32 %v1388_v57  ;;  %5097 = vmatpush3.msra.mxu0 %v1477_v58 }
 0x76b   :  { %5112 = vmatprep.subr.mxu0 %v5791_v0 }
 0x76d   :  { %v1636_v2 = vpop.permute.xlu0 %1635 }
 0x771   :  { %v1714_v3 = vpop.permute.xlu0 %1713 }
 0x777   :  { %v5514_v59 = vpop.eup %5513 }
 0x778   :  { %v1393_v60 = vsel %vm555_vm2, %v5514_v59, 0.0 }
 0x779   :  { %1394 = vadd.xlane.f32.xlu1 %v1393_v60  ;;  %v228_v60 = vld [vmem:[#allocation10 + $0x68] sm:$0xff] }
 0x78a   :  { %1715 = vrot.lane.b32.xlu1 %v5952_v51, %s5795_s22 }
 0x7ae   :  { %1379 = vmax.xlane.f32.xlu1 %v1378_v49 }
 0x802   :  { %v1395_v62 = vpop.xlane.xlu1 %1394 }
 0x803   :  { %5515 = vrcp.f32 %v1395_v62 }
 0x806   :  { %v1716_v51 = vpop.permute.xlu1 %1715 }
 0x810   :  { %v5516_v63 = vpop.eup %5515 }
 0x811   :  { %v1399_v1 = vmul.f32 %v5516_v63, %v5514_v59 }
 0x813   :  { %5099 = vmatmul.mubr.msk.f32.vlgmr.msra.gmra.mxu0 %vm555_vm2, %v1399_v1 }
 0x814   :  { %5113 = vmatpush3.xpose.msk.msra.mxu0 %vm400_vm1, %v1638_v52  ;;  %5114 = vmatprep.mubr.msk.f32.mxu0 %vm5792_vm0, %v5791_v0 }
 0x815   :  { %5117 = vmatprep.subr.mxu0 %v5791_v0 }
 0x817   :  { %5115 = vmatmul.mubr.msk.f32.vlgmr.msra.gmra.mxu0 %vm400_vm1, %v1636_v2 }
 0x818   :  { %5118 = vmatpush3.xpose.msk.msra.mxu0 %vm400_vm1, %v1716_v51  ;;  %5119 = vmatprep.mubr.msk.f32.mxu0 %vm5792_vm0, %v5791_v0 }
 0x819   :  { %5127 = vmatprep.subr.mxu0 %v5791_v0 }
 0x81b   :  { %5120 = vmatmul.mubr.msk.f32.vlgmr.msra.gmra.mxu0 %vm400_vm1, %v1714_v3  ;;  %v4693_v3 = vld [vmem:[%s6421_s5] ss:$0 sm:$0xff] }
 0x81c   :  { %5129 = vmatprep.mubr.msk.f32.mxu0 %vm5792_vm0, %v5791_v0 }
 0x837   :  { %v1380_v4 = vpop.xlane.xlu1 %1379 }
 0x838   :  { %v1384_v5 = vsub.f32 %v1376_v61, %v1380_v4  ;;  %v227_v61 = vld [vmem:[#allocation10 + $0x60] sm:$0xff] }
 0x83a   :  { %v1386_v6 = vmul.f32 1.442695, %v1384_v5 }
 0x83c   :  { %5517 = vpow2.f32 %v1386_v6 }
 0x849   :  { %v5518_v7 = vpop.eup %5517 }
 0x84a   :  { %v1390_v8 = vsel %vm555_vm2, %v5518_v7, 0.0 }
 0x84b   :  { %1391 = vadd.xlane.f32.xlu0 %v1390_v8 }
 0x861   :  { %1400 = vrot.lane.b32.xlu0 %v5989_v30, %s5794_s14 }
 0x865   :  { %1891 = vrot.lane.b32.xlu0 %v5987_v29, %s5795_s22 }
 0x8d3   :  { %v1548_v9 = vpop.f32.mrf.mxu0 }
 0x8d4   :  { %v1392_v10 = vpop.xlane.xlu0 %1391 }
 0x8d5   :  { %5519 = vrcp.f32 %v1392_v10  ;;  %v5100_v11 = vpop.f32.mrf.mxu0 }
 0x8d7   :  { %v1709_v12 = vpop.f32.mrf.mxu0 }
 0x8d8   :  { %v1791_v13 = vmul.f32 0.17677669, %v1709_v12  ;;  %v1401_v14 = vpop.permute.xlu0 %1400  ;;  %v2116_v12 = vld [vmem:[#allocation11 + $0x78] sm:$0xff] }
 0x8d9   :  { %5092 = vmatpush3.msra.mxu1 %v1401_v14  ;;  %v5116_v15 = vpop.f32.mrf.mxu0 }
 0x8da   :  { %v1793_v16 = vsel %vm555_vm2, %v1791_v13, -inf  ;;  %5101 = vmatprep.subr.mxu1 %v226_v23 }
 0x8db   :  { %1794 = vmax.xlane.f32.xlu1 %v1793_v16  ;;  %v1787_v17 = vpop.f32.mrf.mxu0 }
 0x8dc   :  { %v1792_v19 = vmul.f32 0.17677669, %v1787_v17  ;;  %v1892_v47 = vpop.permute.xlu0 %1891 }
 0x8dd   :  { %v5121_v20 = vpop.f32.mrf.mxu0  ;;  %5128 = vmatpush3.msra.mxu0 %v1892_v47  ;;  %v2114_v47 = vld [vmem:[#allocation11 + $0x68] sm:$0xff] }
 0x8de   :  { %v1796_v21 = vsel %vm555_vm2, %v1792_v19, -inf  ;;  %5143 = vmatprep.subr.mxu0 %v2116_v12  ;;  %v2113_v20 = vld [vmem:[#allocation11 + $0x60] sm:$0xff] }
 0x8df   :  { %1797 = vmax.xlane.f32.xlu1 %v1796_v21  ;;  %v2112_v21 = vld [vmem:[#allocation11 + $0x58] sm:$0xff] }
 0x8e2   :  { %v5520_v29 = vpop.eup %5519 }
 0x8e3   :  { %v1397_v22 = vmul.f32 %v5520_v29, %v5518_v7  ;;  %v2111_v29 = vld [vmem:[#allocation11 + $0x50] sm:$0xff] }
 0x8e5   :  { %5094 = vmatmul.mubr.msk.f32.vlgmr.msra.gmra.mxu1 %vm555_vm2, %v1397_v22  ;;  %v2110_v22 = vld [vmem:[#allocation11 + $0x48] sm:$0xff] }
 0x8e6   :  { %5102 = vmatpush3.msra.mxu1 %v226_v23  ;;  %v2109_v23 = vld [vmem:[#allocation11 + $0x40] sm:$0xff] }
 0x8e7   :  { %5103 = vmatprep.subr.mxu1 %v225_v24 }
 0x8e8   :  { %5104 = vmatpush3.msra.mxu1 %v225_v24  ;;  %v2108_v24 = vld [vmem:[#allocation11 + $0x38] sm:$0xff] }
 0x8e9   :  { %5105 = vmatprep.subr.mxu1 %v224_v26 }
 0x8ea   :  { %5106 = vmatpush3.msra.mxu1 %v224_v26  ;;  %v2107_v26 = vld [vmem:[#allocation11 + $0x30] sm:$0xff] }
 0x8eb   :  { %5107 = vmatprep.subr.mxu1 %v223_v27 }
 0x8ec   :  { %5108 = vmatpush3.msra.mxu1 %v223_v27  ;;  %v2106_v27 = vld [vmem:[#allocation11 + $0x28] sm:$0xff] }
 0x8ed   :  { %5122 = vmatprep.subr.mxu1 %v5791_v0 }
 0x964   :  { %v1795_v28 = vpop.xlane.xlu1 %1794 }
 0x965   :  { %v1799_v31 = vsub.f32 %v1791_v13, %v1795_v28  ;;  %v2115_v13 = vld [vmem:[#allocation11 + $0x70] sm:$0xff]  ;;  %v2105_v28 = vld [vmem:[#allocation11 + $0x20] sm:$0xff] }
 0x967   :  { %v1801_v32 = vmul.f32 1.442695, %v1799_v31  ;;  %v2104_v31 = vld [vmem:[#allocation11 + $0x18] sm:$0xff] }
 0x968   :  { %v1798_v33 = vpop.xlane.xlu1 %1797 }
 0x969   :  { %5521 = vpow2.f32 %v1801_v32  ;;  %v1800_v34 = vsub.f32 %v1792_v19, %v1798_v33  ;;  %v2103_v32 = vld [vmem:[#allocation11 + $0x10] sm:$0xff]  ;;  %v2102_v33 = vld [vmem:[#allocation11 + $0x8] sm:$0xff] }
 0x96b   :  { %v1803_v35 = vmul.f32 1.442695, %v1800_v34  ;;  %v2101_v34 = vld [vmem:[#allocation11] sm:$0xff] }
 0x96d   :  { %5523 = vpow2.f32 %v1803_v35  ;;  %v2224_v35 = vld [vmem:[#allocation13 + $0x78] sm:$0xff] }
 0x976   :  { %v5522_v36 = vpop.eup %5521 }
 0x977   :  { %v1805_v38 = vsel %vm555_vm2, %v5522_v36, 0.0 }
 0x978   :  { %1806 = vadd.xlane.f32.xlu1 %v1805_v38  ;;  %v2222_v38 = vld [vmem:[#allocation13 + $0x68] sm:$0xff] }
 0x97a   :  { %v5524_v41 = vpop.eup %5523 }
 0x97b   :  { %v1808_v43 = vsel %vm555_vm2, %v5524_v41, 0.0 }
 0x97c   :  { %1809 = vadd.xlane.f32.xlu1 %v1808_v43 }
 0x98d   :  { %1815 = vrot.lane.b32.xlu1 %v5989_v30, %s5795_s22  ;;  %v229_v30 = vld [vmem:[#allocation10 + $0x70] sm:$0xff] }
 0x9a5   :  { %v1472_v45 = vpop.f32.mrf.mxu1 }
 0x9a6   :  { %5109 = vmatprep.mubr.msk.f32.mxu1 %vm400_vm1, %v1472_v45 }
 0x9a7   :  { %v5095_v48 = vpop.f32.mrf.mxu1  ;;  %5110 = vmatmul.mubr.msk.f32.vlgmr.msra.gmra.mxu1 %vm400_vm1, %v1548_v9 }
 0x9a8   :  { %5124 = vmatprep.mubr.msk.f32.mxu1 %vm5792_vm0, %v5791_v0 }
 0xa01   :  { %v1807_v50 = vpop.xlane.xlu1 %1806 }
 0xa02   :  { %5525 = vrcp.f32 %v1807_v50 }
 0xa05   :  { %v1810_v53 = vpop.xlane.xlu1 %1809 }
 0xa06   :  { %5527 = vrcp.f32 %v1810_v53 }
 0xa09   :  { %v1816_v55 = vpop.permute.xlu1 %1815 }
 0xa0a   :  { %5123 = vmatpush3.msra.mxu1 %v1816_v55  ;;  %v4694_v55 = vld [vmem:[%s6422_s6] ss:$0 sm:$0xff] }
 0xa0b   :  { %5132 = vmatprep.subr.mxu1 %v230_v54 }
 0xa0f   :  { %v5526_v56 = vpop.eup %5525 }
 0xa10   :  { %v1812_v57 = vmul.f32 %v5526_v56, %v5522_v36  ;;  %v2223_v36 = vld [vmem:[#allocation13 + $0x70] sm:$0xff] }
 0xa12   :  { %5125 = vmatmul.mubr.msk.f32.vlgmr.msra.gmra.mxu1 %vm555_vm2, %v1812_v57  ;;  %v4695_v57 = vld [vmem:[%s6423_s7] ss:$0 sm:$0xff] }
 0xa13   :  { %v5528_v58 = vpop.eup %5527  ;;  %5133 = vmatpush3.msra.mxu1 %v230_v54 }
 0xa14   :  { %v1814_v59 = vmul.f32 %v5528_v58, %v5524_v41  ;;  %5134 = vmatprep.subr.mxu1 %v229_v30 }
 0xa15   :  { %5135 = vmatpush3.msra.mxu1 %v229_v30 }
 0xa16   :  { %5130 = vmatmul.mubr.msk.f32.vlgmr.msra.gmra.mxu0 %vm555_vm2, %v1814_v59  ;;  %5136 = vmatprep.subr.mxu1 %v228_v60 }
 0xa17   :  { %5137 = vmatpush3.msra.mxu1 %v228_v60  ;;  %5144 = vmatpush3.msra.mxu0 %v2116_v12 }
 0xa18   :  { %5138 = vmatprep.subr.mxu1 %v227_v61  ;;  %5145 = vmatprep.subr.mxu0 %v2115_v13 }
 0xa19   :  { %5139 = vmatpush3.msra.mxu1 %v227_v61  ;;  %5146 = vmatpush3.msra.mxu0 %v2115_v13 }
 0xa1a   :  { %5147 = vmatprep.subr.mxu0 %v2114_v47  ;;  %5178 = vmatprep.subr.mxu1 %v2224_v35 }
 0xa1b   :  { %5148 = vmatpush3.msra.mxu0 %v2114_v47 }
 0xa1c   :  { %5149 = vmatprep.subr.mxu0 %v2113_v20 }
 0xa1d   :  { %5150 = vmatpush3.msra.mxu0 %v2113_v20 }
 0xa1e   :  { %5151 = vmatprep.subr.mxu0 %v2112_v21 }
 0xa1f   :  { %5152 = vmatpush3.msra.mxu0 %v2112_v21 }
 0xa20   :  { %5153 = vmatprep.subr.mxu0 %v2111_v29 }
 0xa21   :  { %5154 = vmatpush3.msra.mxu0 %v2111_v29  ;;  %v4697_v29 = vld [vmem:[%s6429_s13] ss:$0 sm:$0xff] }
 0xa22   :  { %5155 = vmatprep.subr.mxu0 %v2110_v22 }
 0xa23   :  { %5156 = vmatpush3.msra.mxu0 %v2110_v22 }
 0xa24   :  { %5157 = vmatprep.subr.mxu0 %v2109_v23 }
 0xa25   :  { %5158 = vmatpush3.msra.mxu0 %v2109_v23 }
 0xa26   :  { %5159 = vmatprep.subr.mxu0 %v2108_v24 }
 0xa27   :  { %5160 = vmatpush3.msra.mxu0 %v2108_v24 }
 0xa28   :  { %5161 = vmatprep.subr.mxu0 %v2107_v26 }
 0xa29   :  { %5162 = vmatpush3.msra.mxu0 %v2107_v26 }
 0xa2a   :  { %5163 = vmatprep.subr.mxu0 %v2106_v27 }
 0xa2b   :  { %5164 = vmatpush3.msra.mxu0 %v2106_v27 }
 0xa2c   :  { %5165 = vmatprep.subr.mxu0 %v2105_v28 }
 0xa2d   :  { %5166 = vmatpush3.msra.mxu0 %v2105_v28  ;;  %v2396_v28 = vld [vmem:[#allocation7 + $0x2f0] sm:$0xff] }
 0xa2e   :  { %5167 = vmatprep.subr.mxu0 %v2104_v31 }
 0xa2f   :  { %5168 = vmatpush3.msra.mxu0 %v2104_v31  ;;  %v2395_v31 = vld [vmem:[#allocation7 + $0x2e8] sm:$0xff] }
 0xa30   :  { %5169 = vmatprep.subr.mxu0 %v2103_v32 }
 0xa31   :  { %5170 = vmatpush3.msra.mxu0 %v2103_v32  ;;  %v2393_v32 = vld [vmem:[#allocation7 + $0x2d8] sm:$0xff] }
 0xa32   :  { %5171 = vmatprep.subr.mxu0 %v2102_v33 }
 0xa33   :  { %5172 = vmatpush3.msra.mxu0 %v2102_v33  ;;  %v2392_v33 = vld [vmem:[#allocation7 + $0x2d0] sm:$0xff] }
 0xa34   :  { %5173 = vmatprep.subr.mxu0 %v2101_v34 }
 0xa35   :  { %5174 = vmatpush3.msra.mxu0 %v2101_v34  ;;  %v2397_v34 = vld [vmem:[#allocation7 + $0x2f8] sm:$0xff] }
 0xa36   :  { %2435 = vmatprep.subr.mxu0 %v2396_v28 }
 0xa67   :  { %v5111_v49 = vpop.f32.mrf.mxu1 }
 0xa68   :  { %v1634_v52 = vadd.f32 %v5111_v49, %v6057_v44 }
 0xa69   :  { %v1624_v62 = vpop.f32.mrf.mxu1 }
 0xa6a   :  { %v1633_v5 = vadd.f32 %v1624_v62, %v6059_v46  ;;  %v2220_v62 = vld [vmem:[#allocation13 + $0x58] sm:$0xff] }
 0xad2   :  { %v1887_v63 = vpop.f32.mrf.mxu1 }
 0xad3   :  { %5140 = vmatprep.mubr.msk.f32.mxu1 %vm400_vm1, %v1887_v63  ;;  %v2219_v63 = vld [vmem:[#allocation13 + $0x50] sm:$0xff] }
 0xad4   :  { %v5126_v1 = vpop.f32.mrf.mxu1 }
 0xad5   :  { %v2218_v1 = vld [vmem:[#allocation13 + $0x48] sm:$0xff] }
 0xad6   :  { %v1963_v2 = vpop.f32.mrf.mxu0 }
 0xad7   :  { %5141 = vmatmul.mubr.msk.f32.vlgmr.msra.gmra.mxu1 %vm400_vm1, %v1963_v2  ;;  %v2217_v2 = vld [vmem:[#allocation13 + $0x40] sm:$0xff] }
 0xad8   :  { %v5131_v51 = vpop.f32.mrf.mxu0  ;;  %5179 = vmatpush3.msra.mxu1 %v2224_v35  ;;  %v2390_v35 = vld [vmem:[#allocation7 + $0x2c0] sm:$0xff] }
 0xad9   :  { %5180 = vmatprep.subr.mxu1 %v2223_v36  ;;  %v2216_v51 = vld [vmem:[#allocation13 + $0x38] sm:$0xff] }
 0xada   :  { %5181 = vmatpush3.msra.mxu1 %v2223_v36  ;;  %v2394_v36 = vld [vmem:[#allocation7 + $0x2e0] sm:$0xff] }
 0xadb   :  { %5182 = vmatprep.subr.mxu1 %v2222_v38 }
 0xadc   :  { %5183 = vmatpush3.msra.mxu1 %v2222_v38  ;;  %v2389_v38 = vld [vmem:[#allocation7 + $0x2b8] sm:$0xff] }
 0xb97   :  { %v5142_v4 = vpop.f32.mrf.mxu1 }
 0xb98   :  { %v2049_v6 = vadd.f32 %v5142_v4, %v1634_v52  ;;  %v2221_v52 = vld [vmem:[#allocation13 + $0x60] sm:$0xff]  ;;  %v2214_v4 = vld [vmem:[#allocation13 + $0x28] sm:$0xff] }
 0xb99   :  { %v2039_v7 = vpop.f32.mrf.mxu1  ;;  %5184 = vmatprep.subr.mxu1 %v2221_v52 }
 0xb9a   :  { %v2057_v8 = vadd.f32 %v4693_v3, %v2049_v6  ;;  %v2048_v44 = vadd.f32 %v2039_v7, %v1633_v5  ;;  %5185 = vmatpush3.msra.mxu1 %v2221_v52  ;;  %v2213_v5 = vld [vmem:[#allocation13 + $0x20] sm:$0xff]  ;;  %v2212_v6 = vld [vmem:[#allocation13 + $0x18] sm:$0xff]  ;;  %v2211_v7 = vld [vmem:[#allocation13 + $0x10] sm:$0xff] }
 0xb9b   :  { %5186 = vmatprep.subr.mxu1 %v2220_v62  ;;  %v2378_v52 = vld [vmem:[#allocation7 + $0x260] sm:$0xff] }
 0xb9c   :  { %v2056_v9 = vadd.f32 %v4693_v3, %v2048_v44  ;;  %v2059_v10 = vadd.f32 %v2057_v8, %v5926_v37  ;;  %5187 = vmatpush3.msra.mxu1 %v2220_v62  ;;  %v2215_v3 = vld [vmem:[#allocation13 + $0x30] sm:$0xff]  ;;  %v2210_v8 = vld [vmem:[#allocation13 + $0x8] sm:$0xff]  ;;  %v2209_v44 = vld [vmem:[#allocation13] sm:$0xff] }
 0xb9d   :  { %5188 = vmatprep.subr.mxu1 %v2219_v63  ;;  %v2385_v62 = vld [vmem:[#allocation7 + $0x298] sm:$0xff] }
 0xb9e   :  { %2064 = vadd.xlane.f32.xlu1 %v2059_v10  ;;  %v2058_v11 = vadd.f32 %v2056_v9, %v5922_v18  ;;  %5189 = vmatpush3.msra.mxu1 %v2219_v63  ;;  %v4696_v9 = vld [vmem:[%s6427_s11] ss:$0 sm:$0xff]  ;;  %v2377_v63 = vld [vmem:[#allocation7 + $0x258] sm:$0xff] }
 0xb9f   :  { %5190 = vmatprep.subr.mxu1 %v2218_v1 }
 0xba0   :  { %2062 = vadd.xlane.f32.xlu0 %v2058_v11  ;;  %5191 = vmatpush3.msra.mxu1 %v2218_v1  ;;  %v2375_v1 = vld [vmem:[#allocation7 + $0x248] sm:$0xff] }
 0xba1   :  { %5192 = vmatprep.subr.mxu1 %v2217_v2 }
 0xba2   :  { %5193 = vmatpush3.msra.mxu1 %v2217_v2  ;;  %v2382_v2 = vld [vmem:[#allocation7 + $0x280] sm:$0xff] }
 0xba3   :  { %5194 = vmatprep.subr.mxu1 %v2216_v51 }
 0xba4   :  { %5195 = vmatpush3.msra.mxu1 %v2216_v51  ;;  %v2374_v51 = vld [vmem:[#allocation7 + $0x240] sm:$0xff] }
 0xba5   :  { %5196 = vmatprep.subr.mxu1 %v2215_v3 }
 0xba6   :  { %5197 = vmatpush3.msra.mxu1 %v2215_v3  ;;  %v2372_v3 = vld [vmem:[#allocation7 + $0x230] sm:$0xff] }
 0xba7   :  { %5198 = vmatprep.subr.mxu1 %v2214_v4 }
 0xba8   :  { %5199 = vmatpush3.msra.mxu1 %v2214_v4  ;;  %v2379_v4 = vld [vmem:[#allocation7 + $0x268] sm:$0xff] }
 0xba9   :  { %5200 = vmatprep.subr.mxu1 %v2213_v5 }
 0xbaa   :  { %5201 = vmatpush3.msra.mxu1 %v2213_v5  ;;  %v2371_v5 = vld [vmem:[#allocation7 + $0x228] sm:$0xff] }
 0xbab   :  { %5202 = vmatprep.subr.mxu1 %v2212_v6 }
 0xbac   :  { %5203 = vmatpush3.msra.mxu1 %v2212_v6  ;;  %v2369_v6 = vld [vmem:[#allocation7 + $0x218] sm:$0xff] }
 0xbad   :  { %5204 = vmatprep.subr.mxu1 %v2211_v7 }
 0xbae   :  { %5205 = vmatpush3.msra.mxu1 %v2211_v7  ;;  %v2376_v7 = vld [vmem:[#allocation7 + $0x250] sm:$0xff] }
 0xbaf   :  { %5206 = vmatprep.subr.mxu1 %v2210_v8 }
 0xbb0   :  { %5207 = vmatpush3.msra.mxu1 %v2210_v8  ;;  %v2368_v8 = vld [vmem:[#allocation7 + $0x210] sm:$0xff] }
 0xbb1   :  { %5208 = vmatprep.subr.mxu1 %v2209_v44 }
 0xbb2   :  { %5209 = vmatpush3.msra.mxu1 %v2209_v44  ;;  %v2366_v44 = vld [vmem:[#allocation7 + $0x200] sm:$0xff] }
 0xbb3   :  { %5213 = vmatprep.subr.mxu1 %v2397_v34 }
 0xc27   :  { %v2065_v14 = vpop.xlane.xlu1 %2064 }
 0xc28   :  { %v2068_v46 = vmul.f32 0.0078125, %v2065_v14 }
 0xc29   :  { %v2063_v15 = vpop.xlane.xlu0 %2062 }
 0xc2a   :  { %v2067_v16 = vmul.f32 0.0078125, %v2063_v15  ;;  %v6116_v19 = vsub.f32 %v2059_v10, %v2068_v46 }
 0xc2c   :  { %v6114_v17 = vsub.f32 %v2058_v11, %v2067_v16  ;;  %v2072_v18 = vmul.f32 %v6116_v19, %v6116_v19 }
 0xc2e   :  { %v2071_v37 = vmul.f32 %v6114_v17, %v6114_v17 }
 0xc30   :  { %2073 = vadd.xlane.f32.xlu0 %v2071_v37 }
 0xc34   :  { %2075 = vadd.xlane.f32.xlu0 %v2072_v18 }
 0xcb9   :  { %v2074_v41 = vpop.xlane.xlu0 %2073 }
 0xcba   :  { %v2077_v43 = vmul.f32 0.0078125, %v2074_v41  ;;  %v2387_v41 = vld [vmem:[#allocation7 + $0x2a8] sm:$0xff] }
 0xcbc   :  { %v2079_v45 = vadd.f32 1e-05, %v2077_v43  ;;  %v2386_v43 = vld [vmem:[#allocation7 + $0x2a0] sm:$0xff] }
 0xcbd   :  { %v2076_v48 = vpop.xlane.xlu0 %2075 }
 0xcbe   :  { %5529 = vrsqrt.f32 %v2079_v45  ;;  %v2078_v50 = vmul.f32 0.0078125, %v2076_v48 }
 0xcc0   :  { %v2080_v53 = vadd.f32 1e-05, %v2078_v50 }
 0xcc2   :  { %5531 = vrsqrt.f32 %v2080_v53 }
 0xccb   :  { %v5530_v54 = vpop.eup %5529 }
 0xccc   :  { %v2083_v56 = vmul.f32 %v5530_v54, %v6114_v17 }
 0xcce   :  { %v2091_v30 = vmul.f32 %v4694_v55, %v2083_v56 }
 0xccf   :  { %v5532_v58 = vpop.eup %5531 }
 0xcd0   :  { %v2084_v59 = vmul.f32 %v5532_v58, %v6116_v19  ;;  %v6130_v60 = vadd.f32 %v4695_v57, %v2091_v30  ;;  %v2384_v30 = vld [vmem:[#allocation7 + $0x290] sm:$0xff]  ;;  %v2391_v58 = vld [vmem:[#allocation7 + $0x2c8] sm:$0xff] }
 0xcd2   :  { %v2092_v61 = vmul.f32 %v4694_v55, %v2084_v59  ;;  %5175 = vmatprep.mubr.f32.mxu0 %v6130_v60  ;;  %v2383_v59 = vld [vmem:[#allocation7 + $0x288] sm:$0xff] }
 0xcd4   :  { %v6133_v49 = vadd.f32 %v4695_v57, %v2092_v61  ;;  %v2388_v61 = vld [vmem:[#allocation7 + $0x2b0] sm:$0xff] }
 0xcd6   :  { %5176 = vmatmul.mubr.f32.vlgmr.msra.gmra.mxu0 %v6133_v49 }
 0xcd7   :  { %2499 = vmatprep.mubr.f32.mxu0 %v5791_v0  ;;  %2436 = vmatpush1.msra.mxu0 %v2395_v31 }
 0xcd8   :  { %2437 = vmatprep.subr.mxu0 %v2393_v32 }
 0xcd9   :  { %2438 = vmatpush1.msra.mxu0 %v2392_v33 }
 0xcda   :  { %2439 = vmatprep.subr.mxu0 %v2390_v35 }
 0xcdb   :  { %2440 = vmatpush1.msra.mxu0 %v2389_v38 }
 0xcdc   :  { %2441 = vmatprep.subr.mxu0 %v2387_v41 }
 0xcdd   :  { %2442 = vmatpush1.msra.mxu0 %v2386_v43 }
 0xcde   :  { %2443 = vmatprep.subr.mxu0 %v2384_v30 }
 0xcdf   :  { %2444 = vmatpush1.msra.mxu0 %v2383_v59 }
 0xd96   :  { %v5177_v10 = vpop.f32.mrf.mxu0 }
 0xd97   :  { %v2196_v11 = vadd.f32 %v5177_v10, %v4696_v9  ;;  %v2365_v10 = vld [vmem:[#allocation7 + $0x1f8] sm:$0xff] }
 0xd98   :  { %v2190_v12 = vpop.f32.mrf.mxu0 }
 0xd99   :  { %v2202_v13 = vmul.f32 0.70710677, %v2196_v11  ;;  %v2191_v14 = vadd.f32 %v4696_v9, %v2190_v12  ;;  %v2200_v18 = vmul.f32 0.5, %v2196_v11  ;;  %v2373_v9 = vld [vmem:[#allocation7 + $0x238] sm:$0xff]  ;;  %v2363_v11 = vld [vmem:[#allocation7 + $0x1e8] sm:$0xff]  ;;  %v2370_v12 = vld [vmem:[#allocation7 + $0x220] sm:$0xff] }
 0xd9b   :  { %5533 = verf.f32 %v2202_v13  ;;  %v2201_v15 = vmul.f32 0.70710677, %v2191_v14  ;;  %v2199_v19 = vmul.f32 0.5, %v2191_v14  ;;  %v2362_v13 = vld [vmem:[#allocation7 + $0x1e0] sm:$0xff]  ;;  %v2360_v14 = vld [vmem:[#allocation7 + $0x1d0] sm:$0xff] }
 0xd9d   :  { %5535 = verf.f32 %v2201_v15  ;;  %v2367_v15 = vld [vmem:[#allocation7 + $0x208] sm:$0xff] }
 0xda8   :  { %v5534_v46 = vpop.eup %5533 }
 0xda9   :  { %v2206_v17 = vadd.f32 1.0, %v5534_v46  ;;  %v2359_v46 = vld [vmem:[#allocation7 + $0x1c8] sm:$0xff] }
 0xdaa   :  { %v5536_v16 = vpop.eup %5535 }
 0xdab   :  { %v2205_v37 = vadd.f32 1.0, %v5536_v16  ;;  %v2208_v20 = vmul.f32 %v2206_v17, %v2200_v18  ;;  %v2357_v16 = vld [vmem:[#allocation7 + $0x1b8] sm:$0xff]  ;;  %v2364_v17 = vld [vmem:[#allocation7 + $0x1f0] sm:$0xff] }
 0xdac   :  { %v2361_v18 = vld [vmem:[#allocation7 + $0x1d8] sm:$0xff] }
 0xdad   :  { %v2207_v47 = vmul.f32 %v2205_v37, %v2199_v19  ;;  %v2356_v19 = vld [vmem:[#allocation7 + $0x1b0] sm:$0xff]  ;;  %v2354_v37 = vld [vmem:[#allocation7 + $0x1a0] sm:$0xff] }
 0xdaf   :  { %5210 = vmatprep.mubr.f32.mxu1 %v2207_v47  ;;  %v2353_v47 = vld [vmem:[#allocation7 + $0x198] sm:$0xff] }
 0xdb0   :  { %5211 = vmatmul.mubr.f32.vlgmr.msra.gmra.mxu1 %v2208_v20  ;;  %v2351_v20 = vld [vmem:[#allocation7 + $0x188] sm:$0xff] }
 0xdb1   :  { %5214 = vmatpush3.msra.mxu1 %v2397_v34  ;;  %v4698_v34 = vld [vmem:[%s6424_s8] ss:$0 sm:$0xff] }
 0xdb2   :  { %5215 = vmatprep.subr.mxu1 %v2394_v36 }
 0xdb3   :  { %5216 = vmatpush3.msra.mxu1 %v2394_v36  ;;  %v4699_v36 = vld [vmem:[%s6425_s9] ss:$0 sm:$0xff] }
 0xdb4   :  { %5217 = vmatprep.subr.mxu1 %v2391_v58 }
 0xdb5   :  { %5218 = vmatpush3.msra.mxu1 %v2391_v58 }
 0xdb6   :  { %5219 = vmatprep.subr.mxu1 %v2388_v61 }
 0xdb7   :  { %5220 = vmatpush3.msra.mxu1 %v2388_v61 }
 0xdb8   :  { %5221 = vmatprep.subr.mxu1 %v2385_v62 }
 0xdb9   :  { %5222 = vmatpush3.msra.mxu1 %v2385_v62 }
 0xdba   :  { %5223 = vmatprep.subr.mxu1 %v2382_v2 }
 0xdbb   :  { %5224 = vmatpush3.msra.mxu1 %v2382_v2 }
 0xdbc   :  { %5225 = vmatprep.subr.mxu1 %v2379_v4 }
 0xdbd   :  { %5226 = vmatpush3.msra.mxu1 %v2379_v4 }
 0xdbe   :  { %5227 = vmatprep.subr.mxu1 %v2376_v7 }
 0xdbf   :  { %5228 = vmatpush3.msra.mxu1 %v2376_v7 }
 0xdc0   :  { %5229 = vmatprep.subr.mxu1 %v2373_v9 }
 0xdc1   :  { %5230 = vmatpush3.msra.mxu1 %v2373_v9 }
 0xdc2   :  { %5231 = vmatprep.subr.mxu1 %v2370_v12 }
 0xdc3   :  { %5232 = vmatpush3.msra.mxu1 %v2370_v12 }
 0xdc4   :  { %5233 = vmatprep.subr.mxu1 %v2367_v15 }
 0xdc5   :  { %5234 = vmatpush3.msra.mxu1 %v2367_v15 }
 0xdc6   :  { %5235 = vmatprep.subr.mxu1 %v2364_v17 }
 0xdc7   :  { %5236 = vmatpush3.msra.mxu1 %v2364_v17 }
 0xdc8   :  { %5237 = vmatprep.subr.mxu1 %v2361_v18 }
 0xdc9   :  { %5238 = vmatpush3.msra.mxu1 %v2361_v18 }
 0xe70   :  { %v5212_v21 = vpop.f32.mrf.mxu1 }
 0xe71   :  { %v2304_v24 = vadd.f32 %v5212_v21, %v4697_v29  ;;  %v2358_v21 = vld [vmem:[#allocation7 + $0x1c0] sm:$0xff] }
 0xe72   :  { %v2298_v22 = vpop.f32.mrf.mxu1  ;;  %5239 = vmatprep.subr.mxu1 %v2358_v21 }
 0xe73   :  { %v2299_v23 = vadd.f32 %v4697_v29, %v2298_v22  ;;  %v2308_v27 = vadd.f32 %v2304_v24, %v6133_v49  ;;  %v2380_v49 = vld [vmem:[#allocation7 + $0x270] sm:$0xff]  ;;  %v2350_v29 = vld [vmem:[#allocation7 + $0x180] sm:$0xff]  ;;  %5240 = vmatpush3.msra.mxu1 %v2358_v21  ;;  %v2355_v22 = vld [vmem:[#allocation7 + $0x1a8] sm:$0xff] }
 0xe74   :  { %5241 = vmatprep.subr.mxu1 %v2355_v22 }
 0xe75   :  { %v2307_v26 = vadd.f32 %v2299_v23, %v6130_v60  ;;  %v2381_v60 = vld [vmem:[#allocation7 + $0x278] sm:$0xff]  ;;  %v2352_v23 = vld [vmem:[#allocation7 + $0x190] sm:$0xff]  ;;  %5242 = vmatpush3.msra.mxu1 %v2355_v22 }
 0xe76   :  { %2445 = vmatprep.subr.mxu0 %v2381_v60  ;;  %5243 = vmatprep.subr.mxu1 %v2352_v23 }
 0xe77   :  { %2311 = vadd.xlane.f32.xlu0 %v2307_v26  ;;  %2446 = vmatpush1.msra.mxu0 %v2380_v49 }
 0xe78   :  { %2447 = vmatprep.subr.mxu0 %v2378_v52  ;;  %5244 = vmatpush3.msra.mxu1 %v2352_v23 }
 0xe79   :  { %2448 = vmatpush1.msra.mxu0 %v2377_v63  ;;  %5253 = vmatprep.subr.mxu1 %v5791_v0 }
 0xe7a   :  { %2449 = vmatprep.subr.mxu0 %v2375_v1 }
 0xe7b   :  { %2313 = vadd.xlane.f32.xlu0 %v2308_v27  ;;  %2450 = vmatpush1.msra.mxu0 %v2374_v51 }
 0xe7c   :  { %2451 = vmatprep.subr.mxu0 %v2372_v3 }
 0xe7d   :  { %2452 = vmatpush1.msra.mxu0 %v2371_v5 }
 0xe7e   :  { %2453 = vmatprep.subr.mxu0 %v2369_v6 }
 0xe7f   :  { %2454 = vmatpush1.msra.mxu0 %v2368_v8 }
 0xe80   :  { %2455 = vmatprep.subr.mxu0 %v2366_v44 }
 0xe81   :  { %2456 = vmatpush1.msra.mxu0 %v2365_v10 }
 0xe82   :  { %2457 = vmatprep.subr.mxu0 %v2363_v11 }
 0xe83   :  { %2458 = vmatpush1.msra.mxu0 %v2362_v13 }
 0xe84   :  { %2459 = vmatprep.subr.mxu0 %v2360_v14 }
 0xe85   :  { %2460 = vmatpush1.msra.mxu0 %v2359_v46 }
 0xe86   :  { %2461 = vmatprep.subr.mxu0 %v2357_v16 }
 0xe87   :  { %2462 = vmatpush1.msra.mxu0 %v2356_v19 }
 0xe88   :  { %2463 = vmatprep.subr.mxu0 %v2354_v37 }
 0xe89   :  { %2464 = vmatpush1.msra.mxu0 %v2353_v47 }
 0xe8a   :  { %2465 = vmatprep.subr.mxu0 %v2351_v20 }
 0xe8b   :  { %2466 = vmatpush1.msra.mxu0 %v2350_v29 }
 0xe8c   :  { %5248 = vmatprep.subr.mxu0 %v5791_v0 }
 0xf00   :  { %v2312_v45 = vpop.xlane.xlu0 %2311 }
 0xf01   :  { %v2315_v48 = vmul.f32 0.0078125, %v2312_v45 }
 0xf03   :  { %v6145_v50 = vsub.f32 %v2307_v26, %v2315_v48 }
 0xf04   :  { %v2314_v53 = vpop.xlane.xlu0 %2313 }
 0xf05   :  { %v2316_v54 = vmul.f32 0.0078125, %v2314_v53  ;;  %v2319_v55 = vmul.f32 %v6145_v50, %v6145_v50 }
 0xf07   :  { %v6149_v56 = vsub.f32 %v2308_v27, %v2316_v54  ;;  %2321 = vadd.xlane.f32.xlu0 %v2319_v55 }
 0xf09   :  { %v2320_v57 = vmul.f32 %v6149_v56, %v6149_v56 }
 0xf0b   :  { %2323 = vadd.xlane.f32.xlu1 %v2320_v57 }
 0xf90   :  { %v2322_v24 = vpop.xlane.xlu0 %2321 }
 0xf91   :  { %v2325_v26 = vmul.f32 0.0078125, %v2322_v24 }
 0xf93   :  { %v2327_v27 = vadd.f32 1e-05, %v2325_v26 }
 0xf94   :  { %v2324_v28 = vpop.xlane.xlu1 %2323 }
 0xf95   :  { %5537 = vrsqrt.f32 %v2327_v27  ;;  %v2326_v31 = vmul.f32 0.0078125, %v2324_v28 }
 0xf97   :  { %v2328_v32 = vadd.f32 1e-05, %v2326_v31 }
 0xf99   :  { %5539 = vrsqrt.f32 %v2328_v32 }
 0xfa2   :  { %v5538_v33 = vpop.eup %5537 }
 0xfa3   :  { %v2331_v35 = vmul.f32 %v5538_v33, %v6145_v50  ;;  %v2399_v50 = vld [vmem:[#allocation8 + $0x3] sm:$0x7] }
 0xfa4   :  { %v2427_v54 = vrot.slane %v2399_v50, %v239_v40  ;;  %v2431_v60 = vrot.slane %v2399_v50, %v243_v25 }
 0xfa5   :  { %v2339_v38 = vmul.f32 %v4698_v34, %v2331_v35 }
 0xfa6   :  { %v5540_v41 = vpop.eup %5539 }
 0xfa7   :  { %v6162_v43 = vadd.f32 %v4699_v36, %v2339_v38  ;;  %v2332_v45 = vmul.f32 %v5540_v41, %v6149_v56  ;;  %v2423_v56 = vrot.slane %v2399_v50, %v235_v42 }
 0xfa9   :  { %2500 = vmatmul.mubr.f32.vlgmr.msra.gmra.mxu0 %v6162_v43  ;;  %5245 = vmatprep.mubr.f32.mxu1 %v6162_v43  ;;  %v2340_v48 = vmul.f32 %v4698_v34, %v2332_v45 }
 0xfaa   :  { %2505 = vmatprep.mubr.f32.mxu0 %v5791_v0 }
 0xfab   :  { %v6168_v53 = vadd.f32 %v4699_v36, %v2340_v48 }
 0xfad   :  { %2506 = vmatmul.mubr.f32.gmra.mxu0 %v6168_v53  ;;  %5246 = vmatmul.mubr.f32.vlgmr.msra.gmra.mxu1 %v6168_v53 }
 0xfae   :  { %5250 = vmatprep.mubr.msk.f32.mxu0 %vm5792_vm0, %v5791_v0  ;;  %5255 = vmatprep.mubr.msk.f32.mxu1 %vm5792_vm0, %v5791_v0 }
0x1069   :  { %v2501_v55 = vpop.f32.mrf.mxu0 }
0x106a   :  { %v6186_v61 = vadd.f32 %v2501_v55, %v2423_v56 }
0x106b   :  { %v2503_v57 = vpop.f32.mrf.mxu0 }
0x106c   :  { %v6180_v30 = vadd.f32 %v2503_v57, %v2427_v54 }
0x106d   :  { %v2507_v58 = vpop.f32.mrf.mxu0  ;;  %v5247_v59 = vpop.f32.mrf.mxu1 }
0x106e   :  { %5249 = vmatpush3.xpose.msk.msra.mxu0 %vm400_vm1, %v6180_v30  ;;  %v6198_v39 = vadd.f32 %v2507_v58, %v2423_v56  ;;  %v6203_v25 = vadd.f32 %v5247_v59, %v2431_v60  ;;  %v2404_v59 = vld [vmem:[#allocation10 + $0x98] sm:$0xff] }
0x106f   :  { %v2509_v49 = vpop.f32.mrf.mxu0  ;;  %v2578_v52 = vpop.f32.mrf.mxu1  ;;  %5258 = vmatprep.subr.mxu0 %v5791_v0 }
0x1070   :  { %v6189_v40 = vadd.f32 %v2509_v49, %v2427_v54  ;;  %v6191_v42 = vadd.f32 %v2578_v52, %v2431_v60  ;;  %v2408_v52 = vld [vmem:[#allocation10 + $0xb8] sm:$0xff] }
0x1071   :  { %5251 = vmatmul.mubr.msk.f32.vlgmr.msra.gmra.mxu0 %vm400_vm1, %v6186_v61 }
0x1072   :  { %5254 = vmatpush3.xpose.msk.msra.mxu1 %vm400_vm1, %v6189_v40  ;;  %5259 = vmatpush3.msra.mxu0 %v6191_v42 }
0x1073   :  { %5263 = vmatprep.subr.mxu1 %v5791_v0  ;;  %5260 = vmatprep.mubr.msk.f32.mxu0 %vm5792_vm0, %v5791_v0 }
0x1074   :  { %5268 = vmatprep.subr.mxu0 %v5791_v0 }
0x1075   :  { %5256 = vmatmul.mubr.msk.f32.vlgmr.msra.gmra.mxu1 %vm400_vm1, %v6198_v39 }
0x1076   :  { %5264 = vmatpush3.msra.mxu1 %v6203_v25  ;;  %5265 = vmatprep.mubr.msk.f32.mxu1 %vm5792_vm0, %v5791_v0 }
0x1077   :  { %5273 = vmatprep.subr.mxu1 %v5791_v0 }
0x1131   :  { %v2659_v62 = vpop.f32.mrf.mxu0 }
0x1132   :  { %v2739_v63 = vmul.f32 0.17677669, %v2659_v62 }
0x1133   :  { %v5252_v1 = vpop.f32.mrf.mxu0 }
0x1134   :  { %v2741_v2 = vsel %vm555_vm2, %v2739_v63, -inf }
0x1135   :  { %v2735_v51 = vpop.f32.mrf.mxu1  ;;  %2742 = vmax.xlane.f32.xlu0 %v2741_v2  ;;  %v2407_v2 = vld [vmem:[#allocation10 + $0xb0] sm:$0xff] }
0x1136   :  { %v2740_v3 = vmul.f32 0.17677669, %v2735_v51 }
0x1137   :  { %v5257_v4 = vpop.f32.mrf.mxu1 }
0x1138   :  { %v2744_v5 = vsel %vm555_vm2, %v2740_v3, -inf  ;;  %v2403_v4 = vld [vmem:[#allocation10 + $0x90] sm:$0xff] }
0x1139   :  { %2745 = vmax.xlane.f32.xlu1 %v2744_v5  ;;  %v2401_v5 = vld [vmem:[#allocation10 + $0x80] sm:$0xff] }
0x114a   :  { %2989 = vrot.lane.b32.xlu1 %v6189_v40, %s5793_s12 }
0x114e   :  { %2909 = vrot.lane.b32.xlu1 %v6186_v61, %s5793_s12 }
0x11be   :  { %v2743_v6 = vpop.xlane.xlu0 %2742 }
0x11bf   :  { %v2747_v7 = vsub.f32 %v2739_v63, %v2743_v6 }
0x11c1   :  { %v2749_v8 = vmul.f32 1.442695, %v2747_v7 }
0x11c2   :  { %v2746_v44 = vpop.xlane.xlu1 %2745 }
0x11c3   :  { %5541 = vpow2.f32 %v2749_v8  ;;  %v2748_v9 = vsub.f32 %v2740_v3, %v2746_v44  ;;  %v2406_v8 = vld [vmem:[#allocation10 + $0xa8] sm:$0xff]  ;;  %v2405_v44 = vld [vmem:[#allocation10 + $0xa0] sm:$0xff] }
0x11c5   :  { %v2751_v10 = vmul.f32 1.442695, %v2748_v9 }
0x11c6   :  { %v2990_v15 = vpop.permute.xlu1 %2989 }
0x11c7   :  { %5543 = vpow2.f32 %v2751_v10 }
0x11ca   :  { %v2910_v46 = vpop.permute.xlu1 %2909 }
0x11d0   :  { %v5542_v11 = vpop.eup %5541 }
0x11d1   :  { %v2753_v12 = vsel %vm555_vm2, %v5542_v11, 0.0 }
0x11d2   :  { %2754 = vadd.xlane.f32.xlu0 %v2753_v12 }
0x11d4   :  { %v5544_v13 = vpop.eup %5543 }
0x11d5   :  { %v2756_v14 = vsel %vm555_vm2, %v5544_v13, 0.0 }
0x11d6   :  { %2757 = vadd.xlane.f32.xlu1 %v2756_v14 }
0x11e7   :  { %2987 = vrot.lane.b32.xlu1 %v6198_v39, %s5793_s12 }
0x11e8   :  { %2911 = vrot.lane.b32.xlu0 %v6180_v30, %s5793_s12 }
0x125b   :  { %v2755_v16 = vpop.xlane.xlu0 %2754 }
0x125c   :  { %5545 = vrcp.f32 %v2755_v16 }
0x125f   :  { %v2758_v17 = vpop.xlane.xlu1 %2757  ;;  %v2912_v18 = vpop.permute.xlu0 %2911 }
0x1260   :  { %5547 = vrcp.f32 %v2758_v17 }
0x1263   :  { %v2988_v21 = vpop.permute.xlu1 %2987 }
0x1269   :  { %v5546_v19 = vpop.eup %5545 }
0x126a   :  { %v2760_v37 = vmul.f32 %v5546_v19, %v5542_v11 }
0x126c   :  { %5261 = vmatmul.mubr.msk.f32.vlgmr.msra.gmra.mxu0 %vm555_vm2, %v2760_v37 }
0x126d   :  { %v5548_v47 = vpop.eup %5547  ;;  %5269 = vmatpush3.xpose.msk.msra.mxu0 %vm400_vm1, %v2912_v18  ;;  %5270 = vmatprep.mubr.msk.f32.mxu0 %vm5792_vm0, %v5791_v0 }
0x126e   :  { %v2762_v20 = vmul.f32 %v5548_v47, %v5544_v13  ;;  %5278 = vmatprep.subr.mxu0 %v5791_v0 }
0x1270   :  { %5266 = vmatmul.mubr.msk.f32.vlgmr.msra.gmra.mxu1 %vm555_vm2, %v2762_v20  ;;  %5271 = vmatmul.mubr.msk.f32.vlgmr.msra.gmra.mxu0 %vm400_vm1, %v2910_v46 }
0x1271   :  { %5274 = vmatpush3.xpose.msk.msra.mxu1 %vm400_vm1, %v2990_v15  ;;  %5275 = vmatprep.mubr.msk.f32.mxu1 %vm5792_vm0, %v5791_v0 }
0x1272   :  { %5283 = vmatprep.subr.mxu1 %v5791_v0  ;;  %5280 = vmatprep.mubr.msk.f32.mxu0 %vm5792_vm0, %v5791_v0 }
0x1274   :  { %5276 = vmatmul.mubr.msk.f32.vlgmr.msra.gmra.mxu1 %vm400_vm1, %v2988_v21 }
0x1275   :  { %5285 = vmatprep.mubr.msk.f32.mxu1 %vm5792_vm0, %v5791_v0 }
0x132c   :  { %v2832_v29 = vpop.f32.mrf.mxu0 }
0x132e   :  { %v5262_v22 = vpop.f32.mrf.mxu0 }
0x1330   :  { %v6240_v23 = vpop.f32.mrf.mxu1  ;;  %v2983_v24 = vpop.f32.mrf.mxu0 }
0x1331   :  { %v3065_v26 = vmul.f32 0.17677669, %v2983_v24 }
0x1332   :  { %v5267_v27 = vpop.f32.mrf.mxu1  ;;  %v5272_v28 = vpop.f32.mrf.mxu0 }
0x1333   :  { %v3067_v31 = vsel %vm555_vm2, %v3065_v26, -inf }
0x1334   :  { %v3061_v32 = vpop.f32.mrf.mxu1  ;;  %3068 = vmax.xlane.f32.xlu0 %v3067_v31 }
0x1335   :  { %v3066_v33 = vmul.f32 0.17677669, %v3061_v32 }
0x1336   :  { %v5277_v34 = vpop.f32.mrf.mxu1 }
0x1337   :  { %v3070_v35 = vsel %vm555_vm2, %v3066_v33, -inf }
0x1338   :  { %3071 = vmax.xlane.f32.xlu1 %v3070_v35 }
0x1349   :  { %3167 = vrot.lane.b32.xlu1 %v6203_v25, %s5793_s12 }
0x134d   :  { %3485 = vrot.lane.b32.xlu1 %v6189_v40, %s5794_s14 }
0x1351   :  { %3483 = vrot.lane.b32.xlu1 %v6198_v39, %s5794_s14 }
0x1355   :  { %3405 = vrot.lane.b32.xlu1 %v6186_v61, %s5794_s14 }
0x1359   :  { %3822 = vrot.lane.b32.xlu1 %v6180_v30, %s5795_s22 }
0x13bd   :  { %v3069_v36 = vpop.xlane.xlu0 %3068 }
0x13be   :  { %v3073_v38 = vsub.f32 %v3065_v26, %v3069_v36 }
0x13c0   :  { %v3075_v41 = vmul.f32 1.442695, %v3073_v38 }
0x13c1   :  { %v3072_v45 = vpop.xlane.xlu1 %3071 }
0x13c2   :  { %5549 = vpow2.f32 %v3075_v41  ;;  %v3074_v48 = vsub.f32 %v3066_v33, %v3072_v45 }
0x13c4   :  { %v3077_v50 = vmul.f32 1.442695, %v3074_v48 }
0x13c5   :  { %v3168_v54 = vpop.permute.xlu1 %3167 }
0x13c6   :  { %5551 = vpow2.f32 %v3077_v50  ;;  %5284 = vmatpush3.msra.mxu1 %v3168_v54 }
0x13c7   :  { %5299 = vmatprep.subr.mxu1 %v2404_v59 }
0x13c9   :  { %v3486_v6 = vpop.permute.xlu1 %3485 }
0x13cd   :  { %v3484_v7 = vpop.permute.xlu1 %3483 }
0x13cf   :  { %v5550_v55 = vpop.eup %5549 }
0x13d0   :  { %v3079_v56 = vsel %vm555_vm2, %v5550_v55, 0.0 }
0x13d1   :  { %3080 = vadd.xlane.f32.xlu0 %v3079_v56  ;;  %v3406_v14 = vpop.permute.xlu1 %3405 }
0x13d3   :  { %v5552_v57 = vpop.eup %5551 }
0x13d4   :  { %v3082_v58 = vsel %vm555_vm2, %v5552_v57, 0.0 }
0x13d5   :  { %3083 = vadd.xlane.f32.xlu0 %v3082_v58  ;;  %v3823_v28 = vpop.permute.xlu1 %3822 }
0x13eb   :  { %3090 = vrot.lane.b32.xlu0 %v6191_v42, %s5793_s12 }
0x13ef   :  { %3407 = vrot.lane.b32.xlu0 %v6180_v30, %s5794_s14  ;;  %v2402_v30 = vld [vmem:[#allocation10 + $0x88] sm:$0xff] }
0x145a   :  { %v3081_v60 = vpop.xlane.xlu0 %3080 }
0x145b   :  { %5553 = vrcp.f32 %v3081_v60 }
0x145e   :  { %v3084_v49 = vpop.xlane.xlu0 %3083 }
0x145f   :  { %5555 = vrcp.f32 %v3084_v49 }
0x1462   :  { %v3091_v62 = vpop.permute.xlu0 %3090 }
0x1463   :  { %5279 = vmatpush3.msra.mxu0 %v3091_v62 }
0x1464   :  { %5288 = vmatprep.subr.mxu0 %v2408_v52 }
0x1466   :  { %v3408_v12 = vpop.permute.xlu0 %3407 }
0x1468   :  { %v5554_v63 = vpop.eup %5553 }
0x1469   :  { %v3086_v1 = vmul.f32 %v5554_v63, %v5550_v55 }
0x146b   :  { %5281 = vmatmul.mubr.msk.f32.vlgmr.msra.gmra.mxu0 %vm555_vm2, %v3086_v1 }
0x146c   :  { %v5556_v51 = vpop.eup %5555  ;;  %5289 = vmatpush3.msra.mxu0 %v2408_v52 }
0x146d   :  { %v3088_v3 = vmul.f32 %v5556_v51, %v5552_v57  ;;  %5290 = vmatprep.subr.mxu0 %v2407_v2  ;;  %v2412_v51 = vld [vmem:[#allocation10 + $0xd8] sm:$0xff] }
0x146e   :  { %5291 = vmatpush3.msra.mxu0 %v2407_v2 }
0x146f   :  { %5286 = vmatmul.mubr.msk.f32.vlgmr.msra.gmra.mxu1 %vm555_vm2, %v3088_v3  ;;  %5292 = vmatprep.subr.mxu0 %v2406_v8  ;;  %v2411_v3 = vld [vmem:[#allocation10 + $0xd0] sm:$0xff] }
0x1470   :  { %5300 = vmatpush3.msra.mxu1 %v2404_v59  ;;  %5307 = vmatprep.mubr.msk.f32.mxu1 %vm400_vm1, %v2832_v29 }
0x1471   :  { %5301 = vmatprep.subr.mxu1 %v2403_v4  ;;  %5293 = vmatpush3.msra.mxu0 %v2406_v8 }
0x1472   :  { %5302 = vmatpush3.msra.mxu1 %v2403_v4  ;;  %5294 = vmatprep.subr.mxu0 %v2405_v44  ;;  %v2410_v4 = vld [vmem:[#allocation10 + $0xc8] sm:$0xff] }
0x1473   :  { %5303 = vmatprep.subr.mxu1 %v2402_v30  ;;  %5295 = vmatpush3.msra.mxu0 %v2405_v44 }
0x1474   :  { %5304 = vmatpush3.msra.mxu1 %v2402_v30  ;;  %5310 = vmatprep.subr.mxu0 %v5791_v0  ;;  %v2409_v30 = vld [vmem:[#allocation10 + $0xc0] sm:$0xff] }
0x1475   :  { %5305 = vmatprep.subr.mxu1 %v2401_v5 }
0x1476   :  { %5306 = vmatpush3.msra.mxu1 %v2401_v5 }
0x1477   :  { %5308 = vmatmul.mubr.msk.f32.vlgmr.msra.gmra.mxu1 %vm400_vm1, %v6240_v23  ;;  %5315 = vmatprep.subr.mxu1 %v5791_v0 }
0x1478   :  { %5316 = vmatpush3.xpose.msk.msra.mxu1 %vm400_vm1, %v3486_v6  ;;  %5317 = vmatprep.mubr.msk.f32.mxu1 %vm5792_vm0, %v5791_v0 }
0x1479   :  { %5325 = vmatprep.subr.mxu1 %v5791_v0 }
0x147b   :  { %5318 = vmatmul.mubr.msk.f32.vlgmr.msra.gmra.mxu1 %vm400_vm1, %v3484_v7 }
0x147c   :  { %5327 = vmatprep.mubr.msk.f32.mxu1 %vm5792_vm0, %v5791_v0 }
0x152b   :  { %v3162_v9 = vpop.f32.mrf.mxu0 }
0x152c   :  { %5296 = vmatprep.mubr.msk.f32.mxu0 %vm400_vm1, %v3162_v9 }
0x152d   :  { %v5282_v10 = vpop.f32.mrf.mxu0 }
0x152f   :  { %v3239_v11 = vpop.f32.mrf.mxu1 }
0x1530   :  { %5297 = vmatmul.mubr.msk.f32.vlgmr.msra.gmra.mxu0 %vm400_vm1, %v3239_v11 }
0x1531   :  { %5311 = vmatpush3.xpose.msk.msra.mxu0 %vm400_vm1, %v3408_v12  ;;  %v5287_v13 = vpop.f32.mrf.mxu1  ;;  %5312 = vmatprep.mubr.msk.f32.mxu0 %vm5792_vm0, %v5791_v0 }
0x1532   :  { %5320 = vmatprep.subr.mxu0 %v5791_v0 }
0x1534   :  { %5313 = vmatmul.mubr.msk.f32.vlgmr.msra.gmra.mxu0 %vm400_vm1, %v3406_v14 }
0x1535   :  { %5322 = vmatprep.mubr.msk.f32.mxu0 %vm5792_vm0, %v5791_v0 }
0x1537   :  { %v6283_v15 = vpop.f32.mrf.mxu1 }
0x1539   :  { %v6285_v46 = vpop.f32.mrf.mxu1 }
0x153b   :  { %v3557_v16 = vpop.f32.mrf.mxu1 }
0x153c   :  { %v3562_v17 = vmul.f32 0.17677669, %v3557_v16 }
0x153d   :  { %v5319_v19 = vpop.f32.mrf.mxu1 }
0x153e   :  { %v3566_v37 = vsel %vm555_vm2, %v3562_v17, -inf }
0x153f   :  { %3567 = vmax.xlane.f32.xlu0 %v3566_v37  ;;  %v2416_v37 = vld [vmem:[#allocation10 + $0xf8] sm:$0xff] }
0x1555   :  { %3661 = vrot.lane.b32.xlu0 %v6203_v25, %s5794_s14 }
0x1559   :  { %3820 = vrot.lane.b32.xlu0 %v6186_v61, %s5795_s22 }
0x155d   :  { %3898 = vrot.lane.b32.xlu0 %v6198_v39, %s5795_s22 }
0x15c8   :  { %v3568_v18 = vpop.xlane.xlu0 %3567 }
0x15c9   :  { %v3570_v47 = vsub.f32 %v3562_v17, %v3568_v18 }
0x15cb   :  { %v3573_v20 = vmul.f32 1.442695, %v3570_v47 }
0x15cc   :  { %v3662_v21 = vpop.permute.xlu0 %3661 }
0x15cd   :  { %5557 = vpow2.f32 %v3573_v20  ;;  %5326 = vmatpush3.msra.mxu1 %v3662_v21 }
0x15ce   :  { %5341 = vmatprep.subr.mxu1 %v5791_v0 }
0x15d0   :  { %v3821_v34 = vpop.permute.xlu0 %3820 }
0x15d4   :  { %v3899_v35 = vpop.permute.xlu0 %3898 }
0x15da   :  { %v5558_v29 = vpop.eup %5557 }
0x15db   :  { %v3578_v22 = vsel %vm555_vm2, %v5558_v29, 0.0 }
0x15dc   :  { %3579 = vadd.xlane.f32.xlu1 %v3578_v22  ;;  %v2414_v22 = vld [vmem:[#allocation10 + $0xe8] sm:$0xff] }
0x15ed   :  { %3900 = vrot.lane.b32.xlu1 %v6189_v40, %s5795_s22 }
0x15f0   :  { %v6298_v23 = vpop.f32.mrf.mxu0 }
0x15f2   :  { %v6300_v61 = vpop.f32.mrf.mxu0 }
0x15f4   :  { %v3479_v39 = vpop.f32.mrf.mxu0 }
0x15f5   :  { %v3561_v26 = vmul.f32 0.17677669, %v3479_v39  ;;  %v2413_v39 = vld [vmem:[#allocation10 + $0xe0] sm:$0xff] }
0x15f6   :  { %v5314_v24 = vpop.f32.mrf.mxu0 }
0x15f7   :  { %v3563_v27 = vsel %vm555_vm2, %v3561_v26, -inf  ;;  %v3402_v24 = vadd.f32 %v6283_v15, %v6298_v23 }
0x1611   :  { %3564 = vmax.xlane.f32.xlu1 %v3563_v27 }
0x1665   :  { %v3580_v31 = vpop.xlane.xlu1 %3579 }
0x1666   :  { %5559 = vrcp.f32 %v3580_v31 }
0x1669   :  { %v3901_v40 = vpop.permute.xlu1 %3900 }
0x1673   :  { %v5560_v32 = vpop.eup %5559 }
0x1674   :  { %v3584_v33 = vmul.f32 %v5560_v32, %v5558_v29 }
0x1676   :  { %5328 = vmatmul.mubr.msk.f32.vlgmr.msra.gmra.mxu1 %vm555_vm2, %v3584_v33 }
0x1677   :  { %5342 = vmatpush3.xpose.msk.msra.mxu1 %vm400_vm1, %v3823_v28  ;;  %5343 = vmatprep.mubr.msk.f32.mxu1 %vm5792_vm0, %v5791_v0 }
0x1678   :  { %5346 = vmatprep.subr.mxu1 %v5791_v0 }
0x167a   :  { %5344 = vmatmul.mubr.msk.f32.vlgmr.msra.gmra.mxu1 %vm400_vm1, %v3821_v34 }
0x167b   :  { %5347 = vmatpush3.xpose.msk.msra.mxu1 %vm400_vm1, %v3901_v40  ;;  %5348 = vmatprep.mubr.msk.f32.mxu1 %vm5792_vm0, %v5791_v0  ;;  %v3397_v40 = vadd.f32 %v6285_v46, %v6300_v61 }
0x167c   :  { %5356 = vmatprep.subr.mxu1 %v5791_v0 }
0x167e   :  { %5349 = vmatmul.mubr.msk.f32.vlgmr.msra.gmra.mxu1 %vm400_vm1, %v3899_v35  ;;  %v4733_v35 = vld [vmem:[%s6421_s5 + $0x1] ss:$0 sm:$0xff] }
0x167f   :  { %5358 = vmatprep.mubr.msk.f32.mxu1 %vm5792_vm0, %v5791_v0 }
0x169a   :  { %v3565_v36 = vpop.xlane.xlu1 %3564 }
0x169b   :  { %v3569_v38 = vsub.f32 %v3561_v26, %v3565_v36 }
0x169d   :  { %v3571_v41 = vmul.f32 1.442695, %v3569_v38 }
0x169f   :  { %5561 = vpow2.f32 %v3571_v41 }
0x16ac   :  { %v5562_v45 = vpop.eup %5561 }
0x16ad   :  { %v3575_v48 = vsel %vm555_vm2, %v5562_v45, 0.0 }
0x16ae   :  { %3576 = vadd.xlane.f32.xlu0 %v3575_v48 }
0x16c4   :  { %3585 = vrot.lane.b32.xlu0 %v6191_v42, %s5794_s14 }
0x16c8   :  { %4076 = vrot.lane.b32.xlu0 %v6203_v25, %s5795_s22 }
0x1736   :  { %v3733_v50 = vpop.f32.mrf.mxu1 }
0x1737   :  { %v3577_v54 = vpop.xlane.xlu0 %3576 }
0x1738   :  { %5563 = vrcp.f32 %v3577_v54  ;;  %v5329_v55 = vpop.f32.mrf.mxu1 }
0x1739   :  { %v4303_v55 = vld [vmem:[#allocation11 + $0xf8] sm:$0xff] }
0x173a   :  { %v3894_v56 = vpop.f32.mrf.mxu1 }
0x173b   :  { %v3976_v57 = vmul.f32 0.17677669, %v3894_v56  ;;  %v3586_v58 = vpop.permute.xlu0 %3585  ;;  %v4302_v56 = vld [vmem:[#allocation11 + $0xf0] sm:$0xff] }
0x173c   :  { %5321 = vmatpush3.msra.mxu0 %v3586_v58  ;;  %v5345_v59 = vpop.f32.mrf.mxu1 }
0x173d   :  { %v3978_v60 = vsel %vm555_vm2, %v3976_v57, -inf  ;;  %5330 = vmatprep.subr.mxu0 %v2412_v51 }
0x173e   :  { %v3972_v49 = vpop.f32.mrf.mxu1  ;;  %3979 = vmax.xlane.f32.xlu1 %v3978_v60 }
0x173f   :  { %v3977_v52 = vmul.f32 0.17677669, %v3972_v49  ;;  %v4077_v62 = vpop.permute.xlu0 %4076  ;;  %v4301_v49 = vld [vmem:[#allocation11 + $0xe8] sm:$0xff] }
0x1740   :  { %v5350_v63 = vpop.f32.mrf.mxu1  ;;  %5357 = vmatpush3.msra.mxu1 %v4077_v62  ;;  %v4299_v62 = vld [vmem:[#allocation11 + $0xd8] sm:$0xff] }
0x1741   :  { %v3981_v1 = vsel %vm555_vm2, %v3977_v52, -inf  ;;  %5372 = vmatprep.subr.mxu1 %v4303_v55  ;;  %v4298_v63 = vld [vmem:[#allocation11 + $0xd0] sm:$0xff] }
0x1742   :  { %3982 = vmax.xlane.f32.xlu1 %v3981_v1  ;;  %v4297_v1 = vld [vmem:[#allocation11 + $0xc8] sm:$0xff] }
0x1745   :  { %v5564_v25 = vpop.eup %5563 }
0x1746   :  { %v3582_v2 = vmul.f32 %v5564_v25, %v5562_v45  ;;  %v4296_v25 = vld [vmem:[#allocation11 + $0xc0] sm:$0xff] }
0x1748   :  { %5323 = vmatmul.mubr.msk.f32.vlgmr.msra.gmra.mxu0 %vm555_vm2, %v3582_v2  ;;  %v4295_v2 = vld [vmem:[#allocation11 + $0xb8] sm:$0xff] }
0x1749   :  { %5331 = vmatpush3.msra.mxu0 %v2412_v51  ;;  %v4294_v51 = vld [vmem:[#allocation11 + $0xb0] sm:$0xff] }
0x174a   :  { %5332 = vmatprep.subr.mxu0 %v2411_v3 }
0x174b   :  { %5333 = vmatpush3.msra.mxu0 %v2411_v3  ;;  %v4293_v3 = vld [vmem:[#allocation11 + $0xa8] sm:$0xff] }
0x174c   :  { %5334 = vmatprep.subr.mxu0 %v2410_v4 }
0x174d   :  { %5335 = vmatpush3.msra.mxu0 %v2410_v4  ;;  %v4292_v4 = vld [vmem:[#allocation11 + $0xa0] sm:$0xff] }
0x174e   :  { %5336 = vmatprep.subr.mxu0 %v2409_v30 }
0x174f   :  { %5337 = vmatpush3.msra.mxu0 %v2409_v30  ;;  %v4291_v30 = vld [vmem:[#allocation11 + $0x98] sm:$0xff] }
0x1750   :  { %5351 = vmatprep.subr.mxu0 %v5791_v0 }
0x17c7   :  { %v3980_v5 = vpop.xlane.xlu1 %3979 }
0x17c8   :  { %v3984_v6 = vsub.f32 %v3976_v57, %v3980_v5  ;;  %v4290_v5 = vld [vmem:[#allocation11 + $0x90] sm:$0xff] }
0x17ca   :  { %v3986_v7 = vmul.f32 1.442695, %v3984_v6  ;;  %v4289_v6 = vld [vmem:[#allocation11 + $0x88] sm:$0xff] }
0x17cb   :  { %v3983_v8 = vpop.xlane.xlu1 %3982 }
0x17cc   :  { %5565 = vpow2.f32 %v3986_v7  ;;  %v3985_v44 = vsub.f32 %v3977_v52, %v3983_v8  ;;  %v4300_v52 = vld [vmem:[#allocation11 + $0xe0] sm:$0xff]  ;;  %v4413_v8 = vld [vmem:[#allocation13 + $0xf8] sm:$0xff] }
0x17cd   :  { %v4288_v7 = vld [vmem:[#allocation11 + $0x80] sm:$0xff] }
0x17ce   :  { %v3988_v9 = vmul.f32 1.442695, %v3985_v44  ;;  %v4412_v44 = vld [vmem:[#allocation13 + $0xf0] sm:$0xff] }
0x17d0   :  { %5567 = vpow2.f32 %v3988_v9  ;;  %v4411_v9 = vld [vmem:[#allocation13 + $0xe8] sm:$0xff] }
0x17d9   :  { %v5566_v10 = vpop.eup %5565 }
0x17da   :  { %v3990_v11 = vsel %vm555_vm2, %v5566_v10, 0.0 }
0x17db   :  { %3991 = vadd.xlane.f32.xlu1 %v3990_v11 }
0x17dd   :  { %v5568_v12 = vpop.eup %5567 }
0x17de   :  { %v3993_v13 = vsel %vm555_vm2, %v5568_v12, 0.0 }
0x17df   :  { %3994 = vadd.xlane.f32.xlu1 %v3993_v13 }
0x17f0   :  { %4000 = vrot.lane.b32.xlu1 %v6191_v42, %s5795_s22  ;;  %v2415_v42 = vld [vmem:[#allocation10 + $0xf0] sm:$0xff] }
0x1808   :  { %v3657_v14 = vpop.f32.mrf.mxu0 }
0x1809   :  { %5338 = vmatprep.mubr.msk.f32.mxu0 %vm400_vm1, %v3657_v14 }
0x180a   :  { %v5324_v16 = vpop.f32.mrf.mxu0  ;;  %5339 = vmatmul.mubr.msk.f32.vlgmr.msra.gmra.mxu0 %vm400_vm1, %v3733_v50 }
0x180b   :  { %5353 = vmatprep.mubr.msk.f32.mxu0 %vm5792_vm0, %v5791_v0 }
0x1864   :  { %v3992_v17 = vpop.xlane.xlu1 %3991 }
0x1865   :  { %5569 = vrcp.f32 %v3992_v17 }
0x1868   :  { %v3995_v19 = vpop.xlane.xlu1 %3994 }
0x1869   :  { %5571 = vrcp.f32 %v3995_v19  ;;  %v4736_v19 = vld [vmem:[%s6422_s6 + $0x1] ss:$0 sm:$0xff] }
0x186c   :  { %v4001_v18 = vpop.permute.xlu1 %4000 }
0x186d   :  { %5352 = vmatpush3.msra.mxu0 %v4001_v18  ;;  %v4737_v18 = vld [vmem:[%s6423_s7 + $0x1] ss:$0 sm:$0xff] }
0x186e   :  { %5361 = vmatprep.subr.mxu0 %v2416_v37 }
0x1872   :  { %v5570_v47 = vpop.eup %5569 }
0x1873   :  { %v3997_v20 = vmul.f32 %v5570_v47, %v5566_v10 }
0x1875   :  { %5354 = vmatmul.mubr.msk.f32.vlgmr.msra.gmra.mxu0 %vm555_vm2, %v3997_v20 }
0x1876   :  { %v5572_v21 = vpop.eup %5571  ;;  %5362 = vmatpush3.msra.mxu0 %v2416_v37 }
0x1877   :  { %v3999_v29 = vmul.f32 %v5572_v21, %v5568_v12  ;;  %5363 = vmatprep.subr.mxu0 %v2415_v42 }
0x1878   :  { %5364 = vmatpush3.msra.mxu0 %v2415_v42 }
0x1879   :  { %5359 = vmatmul.mubr.msk.f32.vlgmr.msra.gmra.mxu1 %vm555_vm2, %v3999_v29  ;;  %5365 = vmatprep.subr.mxu0 %v2414_v22 }
0x187a   :  { %5366 = vmatpush3.msra.mxu0 %v2414_v22  ;;  %5373 = vmatpush3.msra.mxu1 %v4303_v55 }
0x187b   :  { %5367 = vmatprep.subr.mxu0 %v2413_v39  ;;  %5374 = vmatprep.subr.mxu1 %v4302_v56 }
0x187c   :  { %5368 = vmatpush3.msra.mxu0 %v2413_v39  ;;  %5375 = vmatpush3.msra.mxu1 %v4302_v56  ;;  %v4410_v39 = vld [vmem:[#allocation13 + $0xe0] sm:$0xff] }
0x187d   :  { %5376 = vmatprep.subr.mxu1 %v4301_v49  ;;  %5407 = vmatprep.subr.mxu0 %v4413_v8 }
0x187e   :  { %5377 = vmatpush3.msra.mxu1 %v4301_v49 }
0x187f   :  { %5378 = vmatprep.subr.mxu1 %v4300_v52 }
0x1880   :  { %5379 = vmatpush3.msra.mxu1 %v4300_v52 }
0x1881   :  { %5380 = vmatprep.subr.mxu1 %v4299_v62 }
0x1882   :  { %5381 = vmatpush3.msra.mxu1 %v4299_v62 }
0x1883   :  { %5382 = vmatprep.subr.mxu1 %v4298_v63 }
0x1884   :  { %5383 = vmatpush3.msra.mxu1 %v4298_v63 }
0x1885   :  { %5384 = vmatprep.subr.mxu1 %v4297_v1 }
0x1886   :  { %5385 = vmatpush3.msra.mxu1 %v4297_v1 }
0x1887   :  { %5386 = vmatprep.subr.mxu1 %v4296_v25 }
0x1888   :  { %5387 = vmatpush3.msra.mxu1 %v4296_v25 }
0x1889   :  { %5388 = vmatprep.subr.mxu1 %v4295_v2 }
0x188a   :  { %5389 = vmatpush3.msra.mxu1 %v4295_v2 }
0x188b   :  { %5390 = vmatprep.subr.mxu1 %v4294_v51 }
0x188c   :  { %5391 = vmatpush3.msra.mxu1 %v4294_v51 }
0x188d   :  { %5392 = vmatprep.subr.mxu1 %v4293_v3 }
0x188e   :  { %5393 = vmatpush3.msra.mxu1 %v4293_v3 }
0x188f   :  { %5394 = vmatprep.subr.mxu1 %v4292_v4 }
0x1890   :  { %5395 = vmatpush3.msra.mxu1 %v4292_v4 }
0x1891   :  { %5396 = vmatprep.subr.mxu1 %v4291_v30 }
0x1892   :  { %5397 = vmatpush3.msra.mxu1 %v4291_v30 }
0x1893   :  { %5398 = vmatprep.subr.mxu1 %v4290_v5 }
0x1894   :  { %5399 = vmatpush3.msra.mxu1 %v4290_v5 }
0x1895   :  { %5400 = vmatprep.subr.mxu1 %v4289_v6 }
0x1896   :  { %5401 = vmatpush3.msra.mxu1 %v4289_v6 }
0x1897   :  { %5402 = vmatprep.subr.mxu1 %v4288_v7 }
0x1898   :  { %5403 = vmatpush3.msra.mxu1 %v4288_v7  ;;  %v4556_v7 = vld [vmem:[#allocation14 + $0x78] sm:$0xff] }
0x1899   :  { %5442 = vmatprep.subr.mxu1 %v5791_v0 }
0x18ca   :  { %v5340_v26 = vpop.f32.mrf.mxu0 }
0x18cb   :  { %v3819_v27 = vadd.f32 %v5340_v26, %v3402_v24  ;;  %v4409_v24 = vld [vmem:[#allocation13 + $0xd8] sm:$0xff]  ;;  %v4408_v26 = vld [vmem:[#allocation13 + $0xd0] sm:$0xff] }
0x18cc   :  { %v3809_v28 = vpop.f32.mrf.mxu0 }
0x18cd   :  { %v3818_v15 = vadd.f32 %v3809_v28, %v3397_v40  ;;  %v4406_v28 = vld [vmem:[#allocation13 + $0xc0] sm:$0xff]  ;;  %v4401_v40 = vld [vmem:[#allocation13 + $0x98] sm:$0xff] }
0x1935   :  { %v4072_v31 = vpop.f32.mrf.mxu0 }
0x1936   :  { %5369 = vmatprep.mubr.msk.f32.mxu0 %vm400_vm1, %v4072_v31  ;;  %v4405_v31 = vld [vmem:[#allocation13 + $0xb8] sm:$0xff] }
0x1937   :  { %v5355_v32 = vpop.f32.mrf.mxu0 }
0x1938   :  { %v4404_v32 = vld [vmem:[#allocation13 + $0xb0] sm:$0xff] }
0x1939   :  { %v4148_v33 = vpop.f32.mrf.mxu1 }
0x193a   :  { %5370 = vmatmul.mubr.msk.f32.vlgmr.msra.gmra.mxu0 %vm400_vm1, %v4148_v33  ;;  %v4403_v33 = vld [vmem:[#allocation13 + $0xa8] sm:$0xff] }
0x193b   :  { %v5360_v34 = vpop.f32.mrf.mxu1  ;;  %5408 = vmatpush3.msra.mxu0 %v4413_v8  ;;  %v4555_v8 = vld [vmem:[#allocation14 + $0x70] sm:$0xff] }
0x193c   :  { %5409 = vmatprep.subr.mxu0 %v4412_v44  ;;  %v4402_v34 = vld [vmem:[#allocation13 + $0xa0] sm:$0xff] }
0x193d   :  { %5410 = vmatpush3.msra.mxu0 %v4412_v44  ;;  %v4554_v44 = vld [vmem:[#allocation14 + $0x68] sm:$0xff] }
0x193e   :  { %5411 = vmatprep.subr.mxu0 %v4411_v9 }
0x193f   :  { %5412 = vmatpush3.msra.mxu0 %v4411_v9  ;;  %v4553_v9 = vld [vmem:[#allocation14 + $0x60] sm:$0xff] }
0x1940   :  { %5413 = vmatprep.subr.mxu0 %v4410_v39 }
0x1941   :  { %5414 = vmatpush3.msra.mxu0 %v4410_v39 }
0x1942   :  { %5415 = vmatprep.subr.mxu0 %v4409_v24 }
0x1943   :  { %5416 = vmatpush3.msra.mxu0 %v4409_v24 }
0x1944   :  { %5417 = vmatprep.subr.mxu0 %v4408_v26 }
0x1945   :  { %5418 = vmatpush3.msra.mxu0 %v4408_v26 }
0x19fa   :  { %v5371_v36 = vpop.f32.mrf.mxu0 }
0x19fb   :  { %v4234_v23 = vadd.f32 %v5371_v36, %v3819_v27  ;;  %v4407_v27 = vld [vmem:[#allocation13 + $0xc8] sm:$0xff] }
0x19fc   :  { %v4224_v38 = vpop.f32.mrf.mxu0  ;;  %5419 = vmatprep.subr.mxu0 %v4407_v27  ;;  %v4399_v36 = vld [vmem:[#allocation13 + $0x88] sm:$0xff] }
0x19fd   :  { %v4242_v41 = vadd.f32 %v4733_v35, %v4234_v23  ;;  %v4233_v45 = vadd.f32 %v4224_v38, %v3818_v15  ;;  %5420 = vmatpush3.msra.mxu0 %v4407_v27  ;;  %v4398_v15 = vld [vmem:[#allocation13 + $0x80] sm:$0xff] }
0x19fe   :  { %5421 = vmatprep.subr.mxu0 %v4406_v28  ;;  %v4739_v23 = vld [vmem:[%s6427_s11 + $0x1] ss:$0 sm:$0xff] }
0x19ff   :  { %v4241_v48 = vadd.f32 %v4733_v35, %v4233_v45  ;;  %v4244_v50 = vadd.f32 %v4242_v41, %v6168_v53  ;;  %5422 = vmatpush3.msra.mxu0 %v4406_v28  ;;  %v4400_v35 = vld [vmem:[#allocation13 + $0x90] sm:$0xff]  ;;  %v4744_v27 = vld [vmem:[%s6424_s8 + $0x1] ss:$0 sm:$0xff] }
0x1a00   :  { %5423 = vmatprep.subr.mxu0 %v4405_v31 }
0x1a01   :  { %4251 = vadd.xlane.f32.xlu1 %v4244_v50  ;;  %v4243_v54 = vadd.f32 %v4241_v48, %v6162_v43  ;;  %5424 = vmatpush3.msra.mxu0 %v4405_v31 }
0x1a02   :  { %5425 = vmatprep.subr.mxu0 %v4404_v32 }
0x1a03   :  { %4249 = vadd.xlane.f32.xlu0 %v4243_v54  ;;  %5426 = vmatpush3.msra.mxu0 %v4404_v32 }
0x1a04   :  { %5427 = vmatprep.subr.mxu0 %v4403_v33 }
0x1a05   :  { %5428 = vmatpush3.msra.mxu0 %v4403_v33 }
0x1a06   :  { %5429 = vmatprep.subr.mxu0 %v4402_v34 }
0x1a07   :  { %5430 = vmatpush3.msra.mxu0 %v4402_v34 }
0x1a08   :  { %5431 = vmatprep.subr.mxu0 %v4401_v40 }
0x1a09   :  { %5432 = vmatpush3.msra.mxu0 %v4401_v40 }
0x1a0a   :  { %5433 = vmatprep.subr.mxu0 %v4400_v35 }
0x1a0b   :  { %5434 = vmatpush3.msra.mxu0 %v4400_v35 }
0x1a0c   :  { %5435 = vmatprep.subr.mxu0 %v4399_v36 }
0x1a0d   :  { %5436 = vmatpush3.msra.mxu0 %v4399_v36 }
0x1a0e   :  { %5437 = vmatprep.subr.mxu0 %v4398_v15 }
0x1a0f   :  { %5438 = vmatpush3.msra.mxu0 %v4398_v15 }
0x1a8a   :  { %v4252_v46 = vpop.xlane.xlu1 %4251 }
0x1a8b   :  { %v4254_v57 = vmul.f32 0.0078125, %v4252_v46 }
0x1a8c   :  { %v4250_v61 = vpop.xlane.xlu0 %4249 }
0x1a8d   :  { %v4253_v58 = vmul.f32 0.0078125, %v4250_v61  ;;  %v6348_v60 = vsub.f32 %v4244_v50, %v4254_v57 }
0x1a8f   :  { %v6346_v59 = vsub.f32 %v4243_v54, %v4253_v58  ;;  %v4258_v43 = vmul.f32 %v6348_v60, %v6348_v60 }
0x1a91   :  { %v4257_v53 = vmul.f32 %v6346_v59, %v6346_v59 }
0x1a93   :  { %4259 = vadd.xlane.f32.xlu0 %v4257_v53 }
0x1a97   :  { %4261 = vadd.xlane.f32.xlu0 %v4258_v43  ;;  %v4741_v43 = vld [vmem:[%s6429_s13 + $0x1] ss:$0 sm:$0xff] }
0x1b1c   :  { %v4260_v10 = vpop.xlane.xlu0 %4259 }
0x1b1d   :  { %v4263_v11 = vmul.f32 0.0078125, %v4260_v10  ;;  %v4552_v10 = vld [vmem:[#allocation14 + $0x58] sm:$0xff] }
0x1b1f   :  { %v4265_v12 = vadd.f32 1e-05, %v4263_v11  ;;  %v4551_v11 = vld [vmem:[#allocation14 + $0x50] sm:$0xff] }
0x1b20   :  { %v4262_v13 = vpop.xlane.xlu0 %4261 }
0x1b21   :  { %5573 = vrsqrt.f32 %v4265_v12  ;;  %v4264_v14 = vmul.f32 0.0078125, %v4262_v13  ;;  %v4550_v12 = vld [vmem:[#allocation14 + $0x48] sm:$0xff]  ;;  %v4549_v13 = vld [vmem:[#allocation14 + $0x40] sm:$0xff] }
0x1b23   :  { %v4266_v16 = vadd.f32 1e-05, %v4264_v14  ;;  %v4548_v14 = vld [vmem:[#allocation14 + $0x38] sm:$0xff] }
0x1b25   :  { %5575 = vrsqrt.f32 %v4266_v16  ;;  %v4547_v16 = vld [vmem:[#allocation14 + $0x30] sm:$0xff] }
0x1b2e   :  { %v5574_v17 = vpop.eup %5573 }
0x1b2f   :  { %v4269_v37 = vmul.f32 %v5574_v17, %v6346_v59  ;;  %v4546_v17 = vld [vmem:[#allocation14 + $0x28] sm:$0xff] }
0x1b31   :  { %v4277_v47 = vmul.f32 %v4736_v19, %v4269_v37  ;;  %v4544_v37 = vld [vmem:[#allocation14 + $0x18] sm:$0xff] }
0x1b32   :  { %v5576_v20 = vpop.eup %5575 }
0x1b33   :  { %v4270_v42 = vmul.f32 %v5576_v20, %v6348_v60  ;;  %v6363_v21 = vadd.f32 %v4737_v18, %v4277_v47  ;;  %v4542_v47 = vld [vmem:[#allocation14 + $0x8] sm:$0xff]  ;;  %v4541_v20 = vld [vmem:[#allocation14] sm:$0xff] }
0x1b35   :  { %v4278_v29 = vmul.f32 %v4736_v19, %v4270_v42  ;;  %5404 = vmatprep.mubr.f32.mxu1 %v6363_v21  ;;  %v4545_v19 = vld [vmem:[#allocation14 + $0x20] sm:$0xff] }
0x1b37   :  { %v6366_v22 = vadd.f32 %v4737_v18, %v4278_v29  ;;  %v4543_v18 = vld [vmem:[#allocation14 + $0x10] sm:$0xff] }
0x1b39   :  { %5405 = vmatmul.mubr.f32.vlgmr.msra.gmra.mxu1 %v6366_v22 }
0x1b3a   :  { %5474 = vmatprep.mubr.msk.f32.mxu1 %vm5792_vm0, %v5791_v0  ;;  %5443 = vmatpush3.msra.mxu1 %v4556_v7 }
0x1b3b   :  { %5444 = vmatprep.subr.mxu1 %v5791_v0 }
0x1b3c   :  { %5445 = vmatpush3.msra.mxu1 %v4555_v8 }
0x1b3d   :  { %5446 = vmatprep.subr.mxu1 %v5791_v0 }
0x1b3e   :  { %5447 = vmatpush3.msra.mxu1 %v4554_v44 }
0x1b3f   :  { %5448 = vmatprep.subr.mxu1 %v5791_v0 }
0x1b40   :  { %5449 = vmatpush3.msra.mxu1 %v4553_v9 }
0x1b41   :  { %5450 = vmatprep.subr.mxu1 %v5791_v0 }
0x1b42   :  { %5451 = vmatpush3.msra.mxu1 %v4552_v10 }
0x1b43   :  { %5452 = vmatprep.subr.mxu1 %v5791_v0 }
0x1b44   :  { %5453 = vmatpush3.msra.mxu1 %v4551_v11 }
0x1b45   :  { %5454 = vmatprep.subr.mxu1 %v5791_v0 }
0x1b46   :  { %5455 = vmatpush3.msra.mxu1 %v4550_v12 }
0x1b47   :  { %5456 = vmatprep.subr.mxu1 %v5791_v0 }
0x1b48   :  { %5457 = vmatpush3.msra.mxu1 %v4549_v13 }
0x1b49   :  { %5458 = vmatprep.subr.mxu1 %v5791_v0 }
0x1b4a   :  { %5459 = vmatpush3.msra.mxu1 %v4548_v14 }
0x1b4b   :  { %5460 = vmatprep.subr.mxu1 %v5791_v0 }
0x1b4c   :  { %5461 = vmatpush3.msra.mxu1 %v4547_v16 }
0x1b4d   :  { %5462 = vmatprep.subr.mxu1 %v5791_v0 }
0x1b4e   :  { %5463 = vmatpush3.msra.mxu1 %v4546_v17 }
0x1b4f   :  { %5464 = vmatprep.subr.mxu1 %v5791_v0 }
0x1b50   :  { %5465 = vmatpush3.msra.mxu1 %v4545_v19 }
0x1b51   :  { %5466 = vmatprep.subr.mxu1 %v5791_v0 }
0x1b52   :  { %5467 = vmatpush3.msra.mxu1 %v4544_v37 }
0x1b53   :  { %5468 = vmatprep.subr.mxu1 %v5791_v0 }
0x1b54   :  { %5469 = vmatpush3.msra.mxu1 %v4543_v18 }
0x1b55   :  { %5470 = vmatprep.subr.mxu1 %v5791_v0 }
0x1b56   :  { %5471 = vmatpush3.msra.mxu1 %v4542_v47 }
0x1b57   :  { %5472 = vmatprep.subr.mxu1 %v5791_v0  ;;  %v4745_v0 = vld [vmem:[%s6425_s9 + $0x1] ss:$0 sm:$0xff]  ;;  %s5745_s9 = scalar_lea.vmem %s4649_s19, 32 }
0x1b58   :  { %5473 = vmatpush3.msra.mxu1 %v4541_v20  ;;  %p5746_p12 = scmp.ne.s32.totalorder %s4649_s19, %s5745_s9  ;;  %p5751_p0 = scmp.lt.s32.totalorder %s5745_s9, %s5745_s9 }
0x1b5a   :  { %p5752_p1 = por %p5751_p0, %p5750_p13 }
0x1b5c   :  { %p5753_p2 = pnand %p5752_p1, %p5746_p12 }
0x1bf9   :  { %v5406_v38 = vpop.f32.mrf.mxu1 }
0x1bfa   :  { %v4384_v41 = vadd.f32 %v5406_v38, %v4739_v23  ;;  %v4746_v38 = vld [vmem:[%s6431_s15] ss:$0 sm:$0xff] }
0x1bfb   :  { %v4378_v45 = vpop.f32.mrf.mxu1 }
0x1bfc   :  { %v4390_v48 = vmul.f32 0.70710677, %v4384_v41  ;;  %v4379_v50 = vadd.f32 %v4739_v23, %v4378_v45  ;;  %v4388_v58 = vmul.f32 0.5, %v4384_v41 }
0x1bfe   :  { %5577 = verf.f32 %v4390_v48  ;;  %v4389_v54 = vmul.f32 0.70710677, %v4379_v50  ;;  %v4387_v61 = vmul.f32 0.5, %v4379_v50 }
0x1c00   :  { %5579 = verf.f32 %v4389_v54 }
0x1c0b   :  { %v5578_v55 = vpop.eup %5577 }
0x1c0c   :  { %v4394_v46 = vadd.f32 1.0, %v5578_v55 }
0x1c0d   :  { %v5580_v56 = vpop.eup %5579 }
0x1c0e   :  { %v4393_v57 = vadd.f32 1.0, %v5580_v56  ;;  %v4396_v60 = vmul.f32 %v4394_v46, %v4388_v58 }
0x1c10   :  { %v4395_v59 = vmul.f32 %v4393_v57, %v4387_v61 }
0x1c12   :  { %5439 = vmatprep.mubr.f32.mxu0 %v4395_v59 }
0x1c13   :  { %5440 = vmatmul.mubr.f32.vlgmr.msra.gmra.mxu0 %v4396_v60 }
0x1cd3   :  { %v5441_v53 = vpop.f32.mrf.mxu0 }
0x1cd4   :  { %v4494_v62 = vadd.f32 %v5441_v53, %v4741_v43 }
0x1cd5   :  { %v4488_v49 = vpop.f32.mrf.mxu0 }
0x1cd6   :  { %v4489_v52 = vadd.f32 %v4741_v43, %v4488_v49  ;;  %v4498_v1 = vadd.f32 %v4494_v62, %v6366_v22 }
0x1cd8   :  { %v4497_v63 = vadd.f32 %v4489_v52, %v6363_v21 }
0x1cda   :  { %4503 = vadd.xlane.f32.xlu0 %v4497_v63 }
0x1cde   :  { %4505 = vadd.xlane.f32.xlu0 %v4498_v1 }
0x1d63   :  { %v4504_v25 = vpop.xlane.xlu0 %4503 }
0x1d64   :  { %v4507_v2 = vmul.f32 0.0078125, %v4504_v25 }
0x1d66   :  { %v6379_v51 = vsub.f32 %v4497_v63, %v4507_v2 }
0x1d67   :  { %v4506_v3 = vpop.xlane.xlu0 %4505 }
0x1d68   :  { %v4508_v4 = vmul.f32 0.0078125, %v4506_v3  ;;  %v4511_v30 = vmul.f32 %v6379_v51, %v6379_v51 }
0x1d6a   :  { %v6383_v5 = vsub.f32 %v4498_v1, %v4508_v4  ;;  %4513 = vadd.xlane.f32.xlu0 %v4511_v30 }
0x1d6c   :  { %v4512_v6 = vmul.f32 %v6383_v5, %v6383_v5 }
0x1d6e   :  { %4515 = vadd.xlane.f32.xlu1 %v4512_v6 }
0x1df3   :  { %v4514_v42 = vpop.xlane.xlu0 %4513 }
0x1df4   :  { %v4517_v21 = vmul.f32 0.0078125, %v4514_v42 }
0x1df6   :  { %v4519_v29 = vadd.f32 1e-05, %v4517_v21 }
0x1df7   :  { %v4516_v22 = vpop.xlane.xlu1 %4515 }
0x1df8   :  { %5581 = vrsqrt.f32 %v4519_v29  ;;  %v4518_v39 = vmul.f32 0.0078125, %v4516_v22 }
0x1dfa   :  { %v4520_v24 = vadd.f32 1e-05, %v4518_v39 }
0x1dfc   :  { %5583 = vrsqrt.f32 %v4520_v24 }
0x1e05   :  { %v5582_v26 = vpop.eup %5581 }
0x1e06   :  { %v4523_v28 = vmul.f32 %v5582_v26, %v6379_v51 }
0x1e08   :  { %v4531_v31 = vmul.f32 %v4744_v27, %v4523_v28 }
0x1e09   :  { %v5584_v32 = vpop.eup %5583 }
0x1e0a   :  { %v4524_v33 = vmul.f32 %v5584_v32, %v6383_v5  ;;  %v4539_v40 = vadd.f32 %v4745_v0, %v4531_v31 }
0x1e0c   :  { %v4532_v34 = vmul.f32 %v4744_v27, %v4524_v33  ;;  %v4566_v36 = vrot.slane %v4539_v40, 7 }
0x1e0e   :  { %v4540_v35 = vadd.f32 %v4745_v0, %v4532_v34 }
0x1e10   :  { %v4567_v15 = vrot.slane %v4540_v35, 6 }
0x1e12   :  { %v4569_v23 = vsel %vm4568_vm3, %v4567_v15, %v4566_v36 }
0x1e13   :  { %5475 = vmatmul.mubr.f32.vlgmr.msra.gmra.mxu1 %v4569_v23 }
0x1ed3   :  { %v4637_v41 = vpop.f32.mrf.mxu1 }
0x1ed4   :  { %v4638_v45 = vadd.f32 %v4746_v38, %v4637_v41 }
0x1ed5   :  { %v5476_v48 = vpop.f32.mrf.mxu1 }
0x1ed6   :  { %4641 = vst [vmem:[#allocation16] sm:$0x3] %v4638_v45 }
0x1ed7   :  { %5756 = shalt.err (!%p5753_p2)
}
0x1ed8   :  { %4651 = dma.vmem_to_hbm [thread:$0]  %s4649_s19, 32, %s6432_s16, [#allocation4]  }
0x1ed9   :  { %5775 = dma.done.wait [#allocation4], 32  }
0x1eda   :  { %5776 = vsyncadd [#allocation4], 4294967264 }
0x1edb   :  { %4655 = vsyncpa [#allocation3], 1 }
0x1edc   :  { %4656 = vsyncpa [#allocation6], 1 }
0x1edd   :  { %4657 = vsyncpa [#allocation9], 1 }
0x1ede   :  { %4658 = vsyncpa [#allocation12], 1 }
0x1edf   :  { %4659 = vsyncpa [#allocation15], 1 }
0x1ee0   :  { %4660 = vsyncpa [#allocation4], 1 }

</bundles_post_ra>
